<compile_context>
chip_gen: v7x
topology: tpu7x:2x2x1
jax: 0.10.0
libtpu: 0.0.40
codegen_flags: <defaults>
</compile_context>

<pallas_src>
import jax
import jax.numpy as jnp
from jax.experimental import pallas as pl
from jax.experimental.pallas import tpu as pltpu

KH = KW = 3
PAD = 1
EPS = 1e-5


def _round_up(x, m):
    return ((x + m - 1) // m) * m


# -------- Conv 3x3 (9 accumulating MXU matmuls) + per-image BN statistics ----
def _conv_stats_kernel(x_ref, w_ref, y_ref, s_ref, xp_ref):
    # x_ref : (1, H, W, Cin_p)       bf16, one image
    # w_ref : (KH*KW, Cin_p, Cout_p) bf16, tap-major weights
    # y_ref : (1, H*W, Cout_p)       bf16 conv output (lane-dense last dim)
    # s_ref : (1, 2, Cout_p)         f32 per-image [sum(y), sum((y-mu_img)^2)]
    # xp_ref: (H+2, W+2, Cin_p)      bf16 VMEM scratch with zero halo
    H = x_ref.shape[1]
    W = x_ref.shape[2]
    Cin = x_ref.shape[3]
    Cout = w_ref.shape[2]

    # Zero only the 1-pixel border; the interior is fully overwritten below.
    zrow = jnp.zeros((1, W + 2 * PAD, Cin), xp_ref.dtype)
    xp_ref[0:1, :, :] = zrow
    xp_ref[H + 1:H + 2, :, :] = zrow
    zcol = jnp.zeros((H + 2 * PAD, 1, Cin), xp_ref.dtype)
    xp_ref[:, 0:1, :] = zcol
    xp_ref[:, W + 1:W + 2, :] = zcol

    # Fill interior with this image.
    xp_ref[PAD:PAD + H, PAD:PAD + W, :] = x_ref[0]

    # 9 accumulating matmuls, one per tap: (H*W, Cin_p) x (Cin_p, Cout_p),
    # bf16 operands, f32 accumulation.  No im2col slab is materialized.
    acc = jnp.zeros((H * W, Cout), jnp.float32)
    for kh in range(KH):
        for kw in range(KW):
            win = xp_ref[kh:kh + H, kw:kw + W, :]          # (H, W, Cin_p)
            win2 = win.reshape(H * W, Cin)
            acc = acc + jnp.dot(win2, w_ref[kh * KW + kw],
                                preferred_element_type=jnp.float32)

    # Conv output stored bf16 (stats are taken from the f32 accumulator).
    y_ref[0] = acc.astype(y_ref.dtype)

    # Per-image mean-shifted statistics (numerically stable variance combine).
    cnt = H * W
    s0 = jnp.sum(acc, axis=0, keepdims=True)               # (1, Cout_p)
    mu = s0 * (1.0 / cnt)
    d = acc - mu
    m2 = jnp.sum(d * d, axis=0, keepdims=True)              # (1, Cout_p)
    s_ref[0, 0:1, :] = s0
    s_ref[0, 1:2, :] = m2


def conv3x3_with_stats(x_nhwc, w_taps):
    N, H, W, Cin_p = x_nhwc.shape
    Cout_p = w_taps.shape[-1]
    return pl.pallas_call(
        _conv_stats_kernel,
        out_shape=(
            jax.ShapeDtypeStruct((N, H * W, Cout_p), jnp.bfloat16),
            jax.ShapeDtypeStruct((N, 2, Cout_p), jnp.float32),
        ),
        grid_spec=pltpu.PrefetchScalarGridSpec(
            num_scalar_prefetch=0,
            grid=(N,),
            in_specs=[
                pl.BlockSpec((1, H, W, Cin_p), lambda n: (n, 0, 0, 0)),
                pl.BlockSpec((KH * KW, Cin_p, Cout_p), lambda n: (0, 0, 0)),
            ],
            out_specs=(
                pl.BlockSpec((1, H * W, Cout_p), lambda n: (n, 0, 0)),
                pl.BlockSpec((1, 2, Cout_p), lambda n: (n, 0, 0)),
            ),
            scratch_shapes=[
                pltpu.VMEM((H + 2 * PAD, W + 2 * PAD, Cin_p), jnp.bfloat16),
            ],
        ),
        compiler_params=pltpu.CompilerParams(
            dimension_semantics=("parallel",),
            vmem_limit_bytes=64 * 1024 * 1024,
        ),
    )(x_nhwc, w_taps)


# ------ BN apply, fused channel-slice + NHWC->NCHW transpose on the output ---
def _bn_apply_kernel(y_ref, scale_ref, bias_ref, o_ref):
    # y_ref : (1, TR, Cout_p) bf16 conv output rows
    # scale : (1, Cout_p) f32 ; bias : (1, Cout_p) f32
    # o_ref : (1, Cout, TR) f32  -- NCHW-flat output, only the real channels
    y = y_ref[0].astype(jnp.float32)                 # (TR, Cout_p)
    z = y * scale_ref[...] + bias_ref[...]           # (TR, Cout_p)
    zt = jnp.transpose(z)                            # (Cout_p, TR)
    o_ref[0] = zt[:o_ref.shape[1], :]


def bn_apply_nchw(y_flat, scale, bias, cout):
    N, P, Cout_p = y_flat.shape
    tr = min(512, P)
    return pl.pallas_call(
        _bn_apply_kernel,
        out_shape=jax.ShapeDtypeStruct((N, cout, P), jnp.float32),
        grid_spec=pltpu.PrefetchScalarGridSpec(
            num_scalar_prefetch=0,
            grid=(N, pl.cdiv(P, tr)),
            in_specs=[
                pl.BlockSpec((1, tr, Cout_p), lambda n, r: (n, r, 0)),
                pl.BlockSpec((1, Cout_p), lambda n, r: (0, 0)),
                pl.BlockSpec((1, Cout_p), lambda n, r: (0, 0)),
            ],
            out_specs=pl.BlockSpec((1, cout, tr), lambda n, r: (n, 0, r)),
        ),
        compiler_params=pltpu.CompilerParams(
            dimension_semantics=("parallel", "parallel"),
            vmem_limit_bytes=64 * 1024 * 1024,
        ),
    )(y_flat, scale, bias)


# ------------------------------ Module wrapper ------------------------------
@jax.jit
def conv_bn_2d(x_nchw, w_oihw, gamma, beta):
    N, Cin, H, W = x_nchw.shape
    Cout = w_oihw.shape[0]
    Cin_p = max(16, _round_up(Cin, 16))        # bf16 sublane-packing friendly
    Cout_p = max(128, _round_up(Cout, 128))    # lane-dense output channels

    # NCHW -> NHWC; pad channels only (no spatial pad copy in HBM); bf16 feed.
    x_nhwc = jnp.transpose(x_nchw, (0, 2, 3, 1))
    x_nhwc = jnp.pad(x_nhwc, ((0, 0), (0, 0), (0, 0), (0, Cin_p - Cin)))
    x_nhwc = x_nhwc.astype(jnp.bfloat16)

    # OIHW -> (KH*KW, Cin_p, Cout_p) tap-major bf16 weights.
    w_hwio = jnp.transpose(w_oihw, (2, 3, 1, 0))
    w_hwio = jnp.pad(
        w_hwio, ((0, 0), (0, 0), (0, Cin_p - Cin), (0, Cout_p - Cout)))
    w_taps = w_hwio.reshape(KH * KW, Cin_p, Cout_p).astype(jnp.bfloat16)

    # Conv + fused per-image BN partial statistics (single HBM pass over y).
    y_flat, stats = conv3x3_with_stats(x_nhwc, w_taps)

    # Tiny O(Cout) reduce in plain JAX: stable parallel-variance combine
    # (biased, training-mode batch variance).
    cnt_img = H * W
    count = N * cnt_img
    sums = stats[:, 0, :]                       # (N, Cout_p)
    m2s = stats[:, 1, :]                        # (N, Cout_p)
    mean = jnp.sum(sums, axis=0) / count
    mu_img = sums / cnt_img
    var = (jnp.sum(m2s, axis=0)
           + cnt_img * jnp.sum((mu_img - mean[None, :]) ** 2, axis=0)) / count

    gamma_p = jnp.pad(gamma.astype(jnp.float32), (0, Cout_p - Cout))
    beta_p = jnp.pad(beta.astype(jnp.float32), (0, Cout_p - Cout))
    scale = gamma_p * jax.lax.rsqrt(var + EPS)
    bias = beta_p - mean * scale

    # Normalize + apply, emitting NCHW-flat real-channel output directly.
    out_flat = bn_apply_nchw(
        y_flat, scale.reshape(1, Cout_p), bias.reshape(1, Cout_p), Cout)
    return out_flat.reshape(N, Cout, H, W)      # free reshape, already NCHW


# ------------------------------- Reference ----------------------------------
def _reference(x_nchw, w_oihw, gamma, beta):
    y = jax.lax.conv_general_dilated(
        x_nchw, w_oihw,
        window_strides=(1, 1),
        padding=((PAD, PAD), (PAD, PAD)),
        dimension_numbers=("NCHW", "OIHW", "NCHW"),
    )
    mean = jnp.mean(y, axis=(0, 2, 3), keepdims=True)
    var = jnp.mean((y - mean) ** 2, axis=(0, 2, 3), keepdims=True)
    g = gamma.reshape(1, -1, 1, 1)
    b = beta.reshape(1, -1, 1, 1)
    return (y - mean) * jax.lax.rsqrt(var + EPS) * g + b


if __name__ == "__main__":
    key = jax.random.PRNGKey(0)
    kx, kw = jax.random.split(key)

    N, Cin, Cout, H, W = 2, 4, 8, 16, 16
    x = jax.random.normal(kx, (N, Cin, H, W), dtype=jnp.float32)

    # Deterministic parameter init (Conv2d weight OIHW; BN gamma=1, beta=0).
    fan_in = Cin * KH * KW
    bound = 1.0 / (fan_in ** 0.5)
    w = jax.random.uniform(
        kw, (Cout, Cin, KH, KW), minval=-bound, maxval=bound, dtype=jnp.float32
    )
    gamma = jnp.ones((Cout,), jnp.float32)
    beta = jnp.zeros((Cout,), jnp.float32)

    out = conv_bn_2d(x, w, gamma, beta)
    out = jax.block_until_ready(out)

    ref = _reference(x, w, gamma, beta)
    assert out.shape == (N, Cout, H, W)
    err = float(jnp.max(jnp.abs(out - ref)))
    # bf16 MXU operands + bf16 intermediate (f32 accumulation) -> ~1e-2 level.
    assert err < 5e-2, err

    print("KERNEL_OK")
</pallas_src>

<mosaic_0001>
module attributes {stable_mosaic.version = 11 : i64} {
  func.func @_conv_stats_kernel(%arg0: i32, %arg1: memref<1x16x16x16xbf16, #tpu.memory_space<vmem>>, %arg2: memref<9x16x128xbf16, #tpu.memory_space<vmem>>, %arg3: memref<1x256x128xbf16, #tpu.memory_space<vmem>>, %arg4: memref<1x2x128xf32, #tpu.memory_space<vmem>>, %arg5: memref<18x18x16xbf16, #tpu.memory_space<vmem>>) attributes {dimension_semantics = [#tpu.dimension_semantics<parallel>], iteration_bounds = array<i64: 2>, scalar_prefetch = 0 : i64, scratch_operands = 1 : i64, tpu.core_type = #tpu.core_type<tc>, window_params = [{transform_indices = @transform_0, window_bounds = array<i64: 1, 16, 16, 16>}, {pipeline_mode = #tpu.pipeline_mode<synchronous>, transform_indices = @transform_1, window_bounds = array<i64: 9, 16, 128>}, {transform_indices = @transform_2, window_bounds = array<i64: 1, 256, 128>}, {transform_indices = @transform_3, window_bounds = array<i64: 1, 2, 128>}]} {
    %cst = arith.constant 0.000000e+00 : bf16
    %0 = vector.broadcast %cst : bf16 to vector<1x18x16xbf16>
    %c0 = arith.constant 0 : index
    %c0_0 = arith.constant 0 : index
    %c0_1 = arith.constant 0 : index
    %1 = vector.load %arg5[%c0, %c0_0, %c0_1] : memref<18x18x16xbf16, #tpu.memory_space<vmem>>, vector<1x18x16xbf16>
    tpu.vector_store %arg5[%c0, %c0_0, %c0_1], %0 {strides = array<i32>} : memref<18x18x16xbf16, #tpu.memory_space<vmem>>, vector<1x18x16xbf16>,
    %c17 = arith.constant 17 : index
    %c0_2 = arith.constant 0 : index
    %c0_3 = arith.constant 0 : index
    %2 = vector.load %arg5[%c17, %c0_2, %c0_3] : memref<18x18x16xbf16, #tpu.memory_space<vmem>>, vector<1x18x16xbf16>
    tpu.vector_store %arg5[%c17, %c0_2, %c0_3], %0 {strides = array<i32>} : memref<18x18x16xbf16, #tpu.memory_space<vmem>>, vector<1x18x16xbf16>,
    %cst_4 = arith.constant 0.000000e+00 : bf16
    %3 = vector.broadcast %cst_4 : bf16 to vector<18x1x16xbf16>
    %c0_5 = arith.constant 0 : index
    %c0_6 = arith.constant 0 : index
    %c0_7 = arith.constant 0 : index
    %4 = vector.load %arg5[%c0_5, %c0_6, %c0_7] : memref<18x18x16xbf16, #tpu.memory_space<vmem>>, vector<18x1x16xbf16>
    tpu.vector_store %arg5[%c0_5, %c0_6, %c0_7], %3 {strides = array<i32>} : memref<18x18x16xbf16, #tpu.memory_space<vmem>>, vector<18x1x16xbf16>,
    %c0_8 = arith.constant 0 : index
    %c17_9 = arith.constant 17 : index
    %c0_10 = arith.constant 0 : index
    %5 = vector.load %arg5[%c0_8, %c17_9, %c0_10] : memref<18x18x16xbf16, #tpu.memory_space<vmem>>, vector<18x1x16xbf16>
    tpu.vector_store %arg5[%c0_8, %c17_9, %c0_10], %3 {strides = array<i32>} : memref<18x18x16xbf16, #tpu.memory_space<vmem>>, vector<18x1x16xbf16>,
    %c0_11 = arith.constant 0 : index
    %c0_12 = arith.constant 0 : index
    %c0_13 = arith.constant 0 : index
    %c0_14 = arith.constant 0 : index
    %6 = vector.load %arg1[%c0_11, %c0_12, %c0_13, %c0_14] : memref<1x16x16x16xbf16, #tpu.memory_space<vmem>>, vector<1x16x16x16xbf16>
    %7 = vector.shape_cast %6 : vector<1x16x16x16xbf16> to vector<16x16x16xbf16>
    %c1 = arith.constant 1 : index
    %c1_15 = arith.constant 1 : index
    %c0_16 = arith.constant 0 : index
    %8 = vector.load %arg5[%c1, %c1_15, %c0_16] : memref<18x18x16xbf16, #tpu.memory_space<vmem>>, vector<16x16x16xbf16>
    tpu.vector_store %arg5[%c1, %c1_15, %c0_16], %7 {strides = array<i32>} : memref<18x18x16xbf16, #tpu.memory_space<vmem>>, vector<16x16x16xbf16>,
    %cst_17 = arith.constant 0.000000e+00 : f32
    %9 = vector.broadcast %cst_17 : f32 to vector<256x128xf32>
    %c0_18 = arith.constant 0 : index
    %c0_19 = arith.constant 0 : index
    %c0_20 = arith.constant 0 : index
    %10 = vector.load %arg5[%c0_18, %c0_19, %c0_20] : memref<18x18x16xbf16, #tpu.memory_space<vmem>>, vector<16x16x16xbf16>
    %11 = vector.shape_cast %10 : vector<16x16x16xbf16> to vector<256x16xbf16>
    %c0_21 = arith.constant 0 : index
    %c0_22 = arith.constant 0 : index
    %c0_23 = arith.constant 0 : index
    %12 = vector.load %arg2[%c0_21, %c0_22, %c0_23] : memref<9x16x128xbf16, #tpu.memory_space<vmem>>, vector<1x16x128xbf16>
    %13 = vector.shape_cast %12 : vector<1x16x128xbf16> to vector<16x128xbf16>
    %cst_24 = arith.constant dense<0.000000e+00> : vector<256x128xf32>
    %14 = tpu.matmul %11, %13, %cst_24 {dimension_numbers = #tpu.dot_dimension_numbers<[1], [0], [0], [1], [0, 0, 1, 1], [], []>} : vector<256x16xbf16>, vector<16x128xbf16>, vector<256x128xf32> -> vector<256x128xf32>
    %15 = arith.addf %9, %14 : vector<256x128xf32>
    %c0_25 = arith.constant 0 : index
    %c1_26 = arith.constant 1 : index
    %c0_27 = arith.constant 0 : index
    %16 = vector.load %arg5[%c0_25, %c1_26, %c0_27] : memref<18x18x16xbf16, #tpu.memory_space<vmem>>, vector<16x16x16xbf16>
    %17 = vector.shape_cast %16 : vector<16x16x16xbf16> to vector<256x16xbf16>
    %c1_28 = arith.constant 1 : index
    %c0_29 = arith.constant 0 : index
    %c0_30 = arith.constant 0 : index
    %18 = vector.load %arg2[%c1_28, %c0_29, %c0_30] : memref<9x16x128xbf16, #tpu.memory_space<vmem>>, vector<1x16x128xbf16>
    %19 = vector.shape_cast %18 : vector<1x16x128xbf16> to vector<16x128xbf16>
    %cst_31 = arith.constant dense<0.000000e+00> : vector<256x128xf32>
    %20 = tpu.matmul %17, %19, %cst_31 {dimension_numbers = #tpu.dot_dimension_numbers<[1], [0], [0], [1], [0, 0, 1, 1], [], []>} : vector<256x16xbf16>, vector<16x128xbf16>, vector<256x128xf32> -> vector<256x128xf32>
    %21 = arith.addf %15, %20 : vector<256x128xf32>
    %c0_32 = arith.constant 0 : index
    %c2 = arith.constant 2 : index
    %c0_33 = arith.constant 0 : index
    %22 = vector.load %arg5[%c0_32, %c2, %c0_33] : memref<18x18x16xbf16, #tpu.memory_space<vmem>>, vector<16x16x16xbf16>
    %23 = vector.shape_cast %22 : vector<16x16x16xbf16> to vector<256x16xbf16>
    %c2_34 = arith.constant 2 : index
    %c0_35 = arith.constant 0 : index
    %c0_36 = arith.constant 0 : index
    %24 = vector.load %arg2[%c2_34, %c0_35, %c0_36] : memref<9x16x128xbf16, #tpu.memory_space<vmem>>, vector<1x16x128xbf16>
    %25 = vector.shape_cast %24 : vector<1x16x128xbf16> to vector<16x128xbf16>
    %cst_37 = arith.constant dense<0.000000e+00> : vector<256x128xf32>
    %26 = tpu.matmul %23, %25, %cst_37 {dimension_numbers = #tpu.dot_dimension_numbers<[1], [0], [0], [1], [0, 0, 1, 1], [], []>} : vector<256x16xbf16>, vector<16x128xbf16>, vector<256x128xf32> -> vector<256x128xf32>
    %27 = arith.addf %21, %26 : vector<256x128xf32>
    %c1_38 = arith.constant 1 : index
    %c0_39 = arith.constant 0 : index
    %c0_40 = arith.constant 0 : index
    %28 = vector.load %arg5[%c1_38, %c0_39, %c0_40] : memref<18x18x16xbf16, #tpu.memory_space<vmem>>, vector<16x16x16xbf16>
    %29 = vector.shape_cast %28 : vector<16x16x16xbf16> to vector<256x16xbf16>
    %c3 = arith.constant 3 : index
    %c0_41 = arith.constant 0 : index
    %c0_42 = arith.constant 0 : index
    %30 = vector.load %arg2[%c3, %c0_41, %c0_42] : memref<9x16x128xbf16, #tpu.memory_space<vmem>>, vector<1x16x128xbf16>
    %31 = vector.shape_cast %30 : vector<1x16x128xbf16> to vector<16x128xbf16>
    %cst_43 = arith.constant dense<0.000000e+00> : vector<256x128xf32>
    %32 = tpu.matmul %29, %31, %cst_43 {dimension_numbers = #tpu.dot_dimension_numbers<[1], [0], [0], [1], [0, 0, 1, 1], [], []>} : vector<256x16xbf16>, vector<16x128xbf16>, vector<256x128xf32> -> vector<256x128xf32>
    %33 = arith.addf %27, %32 : vector<256x128xf32>
    %c1_44 = arith.constant 1 : index
    %c1_45 = arith.constant 1 : index
    %c0_46 = arith.constant 0 : index
    %34 = vector.load %arg5[%c1_44, %c1_45, %c0_46] : memref<18x18x16xbf16, #tpu.memory_space<vmem>>, vector<16x16x16xbf16>
    %35 = vector.shape_cast %34 : vector<16x16x16xbf16> to vector<256x16xbf16>
    %c4 = arith.constant 4 : index
    %c0_47 = arith.constant 0 : index
    %c0_48 = arith.constant 0 : index
    %36 = vector.load %arg2[%c4, %c0_47, %c0_48] : memref<9x16x128xbf16, #tpu.memory_space<vmem>>, vector<1x16x128xbf16>
    %37 = vector.shape_cast %36 : vector<1x16x128xbf16> to vector<16x128xbf16>
    %cst_49 = arith.constant dense<0.000000e+00> : vector<256x128xf32>
    %38 = tpu.matmul %35, %37, %cst_49 {dimension_numbers = #tpu.dot_dimension_numbers<[1], [0], [0], [1], [0, 0, 1, 1], [], []>} : vector<256x16xbf16>, vector<16x128xbf16>, vector<256x128xf32> -> vector<256x128xf32>
    %39 = arith.addf %33, %38 : vector<256x128xf32>
    %c1_50 = arith.constant 1 : index
    %c2_51 = arith.constant 2 : index
    %c0_52 = arith.constant 0 : index
    %40 = vector.load %arg5[%c1_50, %c2_51, %c0_52] : memref<18x18x16xbf16, #tpu.memory_space<vmem>>, vector<16x16x16xbf16>
    %41 = vector.shape_cast %40 : vector<16x16x16xbf16> to vector<256x16xbf16>
    %c5 = arith.constant 5 : index
    %c0_53 = arith.constant 0 : index
    %c0_54 = arith.constant 0 : index
    %42 = vector.load %arg2[%c5, %c0_53, %c0_54] : memref<9x16x128xbf16, #tpu.memory_space<vmem>>, vector<1x16x128xbf16>
    %43 = vector.shape_cast %42 : vector<1x16x128xbf16> to vector<16x128xbf16>
    %cst_55 = arith.constant dense<0.000000e+00> : vector<256x128xf32>
    %44 = tpu.matmul %41, %43, %cst_55 {dimension_numbers = #tpu.dot_dimension_numbers<[1], [0], [0], [1], [0, 0, 1, 1], [], []>} : vector<256x16xbf16>, vector<16x128xbf16>, vector<256x128xf32> -> vector<256x128xf32>
    %45 = arith.addf %39, %44 : vector<256x128xf32>
    %c2_56 = arith.constant 2 : index
    %c0_57 = arith.constant 0 : index
    %c0_58 = arith.constant 0 : index
    %46 = vector.load %arg5[%c2_56, %c0_57, %c0_58] : memref<18x18x16xbf16, #tpu.memory_space<vmem>>, vector<16x16x16xbf16>
    %47 = vector.shape_cast %46 : vector<16x16x16xbf16> to vector<256x16xbf16>
    %c6 = arith.constant 6 : index
    %c0_59 = arith.constant 0 : index
    %c0_60 = arith.constant 0 : index
    %48 = vector.load %arg2[%c6, %c0_59, %c0_60] : memref<9x16x128xbf16, #tpu.memory_space<vmem>>, vector<1x16x128xbf16>
    %49 = vector.shape_cast %48 : vector<1x16x128xbf16> to vector<16x128xbf16>
    %cst_61 = arith.constant dense<0.000000e+00> : vector<256x128xf32>
    %50 = tpu.matmul %47, %49, %cst_61 {dimension_numbers = #tpu.dot_dimension_numbers<[1], [0], [0], [1], [0, 0, 1, 1], [], []>} : vector<256x16xbf16>, vector<16x128xbf16>, vector<256x128xf32> -> vector<256x128xf32>
    %51 = arith.addf %45, %50 : vector<256x128xf32>
    %c2_62 = arith.constant 2 : index
    %c1_63 = arith.constant 1 : index
    %c0_64 = arith.constant 0 : index
    %52 = vector.load %arg5[%c2_62, %c1_63, %c0_64] : memref<18x18x16xbf16, #tpu.memory_space<vmem>>, vector<16x16x16xbf16>
    %53 = vector.shape_cast %52 : vector<16x16x16xbf16> to vector<256x16xbf16>
    %c7 = arith.constant 7 : index
    %c0_65 = arith.constant 0 : index
    %c0_66 = arith.constant 0 : index
    %54 = vector.load %arg2[%c7, %c0_65, %c0_66] : memref<9x16x128xbf16, #tpu.memory_space<vmem>>, vector<1x16x128xbf16>
    %55 = vector.shape_cast %54 : vector<1x16x128xbf16> to vector<16x128xbf16>
    %cst_67 = arith.constant dense<0.000000e+00> : vector<256x128xf32>
    %56 = tpu.matmul %53, %55, %cst_67 {dimension_numbers = #tpu.dot_dimension_numbers<[1], [0], [0], [1], [0, 0, 1, 1], [], []>} : vector<256x16xbf16>, vector<16x128xbf16>, vector<256x128xf32> -> vector<256x128xf32>
    %57 = arith.addf %51, %56 : vector<256x128xf32>
    %c2_68 = arith.constant 2 : index
    %c2_69 = arith.constant 2 : index
    %c0_70 = arith.constant 0 : index
    %58 = vector.load %arg5[%c2_68, %c2_69, %c0_70] : memref<18x18x16xbf16, #tpu.memory_space<vmem>>, vector<16x16x16xbf16>
    %59 = vector.shape_cast %58 : vector<16x16x16xbf16> to vector<256x16xbf16>
    %c8 = arith.constant 8 : index
    %c0_71 = arith.constant 0 : index
    %c0_72 = arith.constant 0 : index
    %60 = vector.load %arg2[%c8, %c0_71, %c0_72] : memref<9x16x128xbf16, #tpu.memory_space<vmem>>, vector<1x16x128xbf16>
    %61 = vector.shape_cast %60 : vector<1x16x128xbf16> to vector<16x128xbf16>
    %cst_73 = arith.constant dense<0.000000e+00> : vector<256x128xf32>
    %62 = tpu.matmul %59, %61, %cst_73 {dimension_numbers = #tpu.dot_dimension_numbers<[1], [0], [0], [1], [0, 0, 1, 1], [], []>} : vector<256x16xbf16>, vector<16x128xbf16>, vector<256x128xf32> -> vector<256x128xf32>
    %63 = arith.addf %57, %62 : vector<256x128xf32>
    %64 = arith.truncf %63 : vector<256x128xf32> to vector<256x128xbf16>
    %c0_74 = arith.constant 0 : index
    %c0_75 = arith.constant 0 : index
    %c0_76 = arith.constant 0 : index
    %65 = vector.load %arg3[%c0_74, %c0_75, %c0_76] : memref<1x256x128xbf16, #tpu.memory_space<vmem>>, vector<1x256x128xbf16>
    %66 = vector.shape_cast %65 : vector<1x256x128xbf16> to vector<256x128xbf16>
    %67 = vector.shape_cast %64 : vector<256x128xbf16> to vector<1x256x128xbf16>
    tpu.vector_store %arg3[%c0_74, %c0_75, %c0_76], %67 {strides = array<i32>} : memref<1x256x128xbf16, #tpu.memory_space<vmem>>, vector<1x256x128xbf16>,
    %cst_77 = arith.constant dense<0.000000e+00> : vector<128xf32>
    %68 = vector.multi_reduction <add>, %63, %cst_77 [0] : vector<256x128xf32> to vector<128xf32>
    %69 = vector.shape_cast %68 : vector<128xf32> to vector<1x128xf32>
    %cst_78 = arith.constant 3.906250e-03 : f32
    %70 = vector.broadcast %cst_78 : f32 to vector<1x128xf32>
    %71 = arith.mulf %69, %70 : vector<1x128xf32>
    %72 = vector.broadcast %71 : vector<1x128xf32> to vector<256x128xf32>
    %73 = arith.subf %63, %72 : vector<256x128xf32>
    %74 = arith.mulf %73, %73 : vector<256x128xf32>
    %cst_79 = arith.constant dense<0.000000e+00> : vector<128xf32>
    %75 = vector.multi_reduction <add>, %74, %cst_79 [0] : vector<256x128xf32> to vector<128xf32>
    %76 = vector.shape_cast %75 : vector<128xf32> to vector<1x128xf32>
    %c0_80 = arith.constant 0 : index
    %c0_81 = arith.constant 0 : index
    %c0_82 = arith.constant 0 : index
    %77 = vector.load %arg4[%c0_80, %c0_81, %c0_82] : memref<1x2x128xf32, #tpu.memory_space<vmem>>, vector<1x1x128xf32>
    %78 = vector.shape_cast %77 : vector<1x1x128xf32> to vector<1x128xf32>
    %79 = vector.shape_cast %69 : vector<1x128xf32> to vector<1x1x128xf32>
    tpu.vector_store %arg4[%c0_80, %c0_81, %c0_82], %79 {strides = array<i32>} : memref<1x2x128xf32, #tpu.memory_space<vmem>>, vector<1x1x128xf32>,
    %c0_83 = arith.constant 0 : index
    %c1_84 = arith.constant 1 : index
    %c0_85 = arith.constant 0 : index
    %80 = vector.load %arg4[%c0_83, %c1_84, %c0_85] : memref<1x2x128xf32, #tpu.memory_space<vmem>>, vector<1x1x128xf32>
    %81 = vector.shape_cast %80 : vector<1x1x128xf32> to vector<1x128xf32>
    %82 = vector.shape_cast %76 : vector<1x128xf32> to vector<1x1x128xf32>
    tpu.vector_store %arg4[%c0_83, %c1_84, %c0_85], %82 {strides = array<i32>} : memref<1x2x128xf32, #tpu.memory_space<vmem>>, vector<1x1x128xf32>,
    return
  }
  func.func @transform_0(%arg0: i32) -> (i32, i32, i32, i32) {
    %c0_i32 = arith.constant 0 : i32
    %c0_i32_0 = arith.constant 0 : i32
    %c0_i32_1 = arith.constant 0 : i32
    %c0_i32_2 = arith.constant 0 : i32
    return %arg0, %c0_i32, %c0_i32_0, %c0_i32_1 : i32, i32, i32, i32
  }
  func.func @transform_1(%arg0: i32) -> (i32, i32, i32) {
    %c0_i32 = arith.constant 0 : i32
    %c0_i32_0 = arith.constant 0 : i32
    %c0_i32_1 = arith.constant 0 : i32
    %c0_i32_2 = arith.constant 0 : i32
    return %c0_i32, %c0_i32_0, %c0_i32_1 : i32, i32, i32
  }
  func.func @transform_2(%arg0: i32) -> (i32, i32, i32) {
    %c0_i32 = arith.constant 0 : i32
    %c0_i32_0 = arith.constant 0 : i32
    %c0_i32_1 = arith.constant 0 : i32
    return %arg0, %c0_i32, %c0_i32_0 : i32, i32, i32
  }
  func.func @transform_3(%arg0: i32) -> (i32, i32, i32) {
    %c0_i32 = arith.constant 0 : i32
    %c0_i32_0 = arith.constant 0 : i32
    %c0_i32_1 = arith.constant 0 : i32
    return %arg0, %c0_i32, %c0_i32_0 : i32, i32, i32
  }
}

module attributes {stable_mosaic.version = 11 : i64} {
  func.func @_bn_apply_kernel(%arg0: i32, %arg1: i32, %arg2: memref<1x256x128xbf16, #tpu.memory_space<vmem>>, %arg3: memref<1x128xf32, #tpu.memory_space<vmem>>, %arg4: memref<1x128xf32, #tpu.memory_space<vmem>>, %arg5: memref<1x8x256xf32, #tpu.memory_space<vmem>>) attributes {dimension_semantics = [#tpu.dimension_semantics<parallel>, #tpu.dimension_semantics<parallel>], iteration_bounds = array<i64: 2, 1>, scalar_prefetch = 0 : i64, scratch_operands = 0 : i64, tpu.core_type = #tpu.core_type<tc>, window_params = [{transform_indices = @transform_0, window_bounds = array<i64: 1, 256, 128>}, {pipeline_mode = #tpu.pipeline_mode<synchronous>, transform_indices = @transform_1, window_bounds = array<i64: 1, 128>}, {pipeline_mode = #tpu.pipeline_mode<synchronous>, transform_indices = @transform_2, window_bounds = array<i64: 1, 128>}, {transform_indices = @transform_3, window_bounds = array<i64: 1, 8, 256>}]} {
    %c0 = arith.constant 0 : index
    %c0_0 = arith.constant 0 : index
    %c0_1 = arith.constant 0 : index
    %0 = vector.load %arg2[%c0, %c0_0, %c0_1] : memref<1x256x128xbf16, #tpu.memory_space<vmem>>, vector<1x256x128xbf16>
    %1 = vector.shape_cast %0 : vector<1x256x128xbf16> to vector<256x128xbf16>
    %2 = arith.extf %1 : vector<256x128xbf16> to vector<256x128xf32>
    %c0_2 = arith.constant 0 : index
    %c0_3 = arith.constant 0 : index
    %3 = vector.load %arg3[%c0_2, %c0_3] : memref<1x128xf32, #tpu.memory_space<vmem>>, vector<1x128xf32>
    %4 = vector.broadcast %3 : vector<1x128xf32> to vector<256x128xf32>
    %5 = arith.mulf %2, %4 : vector<256x128xf32>
    %c0_4 = arith.constant 0 : index
    %c0_5 = arith.constant 0 : index
    %6 = vector.load %arg4[%c0_4, %c0_5] : memref<1x128xf32, #tpu.memory_space<vmem>>, vector<1x128xf32>
    %7 = vector.broadcast %6 : vector<1x128xf32> to vector<256x128xf32>
    %8 = arith.addf %5, %7 : vector<256x128xf32>
    %9 = tpu.transpose %8, [1, 0] : vector<256x128xf32> -> vector<128x256xf32>
    %10 = vector.extract_strided_slice %9 {offsets = [0, 0], sizes = [8, 256], strides = [1, 1]} : vector<128x256xf32> to vector<8x256xf32>
    %c0_6 = arith.constant 0 : index
    %c0_7 = arith.constant 0 : index
    %c0_8 = arith.constant 0 : index
    %11 = vector.load %arg5[%c0_6, %c0_7, %c0_8] : memref<1x8x256xf32, #tpu.memory_space<vmem>>, vector<1x8x256xf32>
    %12 = vector.shape_cast %11 : vector<1x8x256xf32> to vector<8x256xf32>
    %13 = vector.shape_cast %10 : vector<8x256xf32> to vector<1x8x256xf32>
    tpu.vector_store %arg5[%c0_6, %c0_7, %c0_8], %13 {strides = array<i32>} : memref<1x8x256xf32, #tpu.memory_space<vmem>>, vector<1x8x256xf32>,
    return
  }
  func.func @transform_0(%arg0: i32, %arg1: i32) -> (i32, i32, i32) {
    %c0_i32 = arith.constant 0 : i32
    %c0_i32_0 = arith.constant 0 : i32
    return %arg0, %arg1, %c0_i32 : i32, i32, i32
  }
  func.func @transform_1(%arg0: i32, %arg1: i32) -> (i32, i32) {
    %c0_i32 = arith.constant 0 : i32
    %c0_i32_0 = arith.constant 0 : i32
    %c0_i32_1 = arith.constant 0 : i32
    return %c0_i32, %c0_i32_0 : i32, i32
  }
  func.func @transform_2(%arg0: i32, %arg1: i32) -> (i32, i32) {
    %c0_i32 = arith.constant 0 : i32
    %c0_i32_0 = arith.constant 0 : i32
    %c0_i32_1 = arith.constant 0 : i32
    return %c0_i32, %c0_i32_0 : i32, i32
  }
  func.func @transform_3(%arg0: i32, %arg1: i32) -> (i32, i32, i32) {
    %c0_i32 = arith.constant 0 : i32
    %c0_i32_0 = arith.constant 0 : i32
    return %arg0, %c0_i32, %arg1 : i32, i32, i32
  }
}

</mosaic_0001>

<bundles_post_ra>
// kernel: conv_bn_2d.3
= control target key start
LH: loop header
LB: loop body
LE: loop exit
PB: predicated region body
PF: predicated region fallthrough
CT: control target
= control target key end

     0   :  { %8 = vsyncpa [#allocation3], 0  ;;  %s1283_s0 = inlined_call_operand.hbm [shape: bf16[2,256,128], index: 0, kind: input, shape index: {}]   ;;  %s1284_s1 = inlined_call_operand.hbm [shape: f32[1,128], index: 1, kind: input, shape index: {}]   ;;  %s1285_s2 = inlined_call_operand.hbm [shape: f32[1,128], index: 2, kind: input, shape index: {}]   ;;  %s1286_s3 = inlined_call_operand.hbm [shape: f32[2,8,256], index: 3, kind: output, shape index: {}]  }
   0x1   :  { %10 = vsyncpa [#allocation3 + $0x1], 0 }
   0x2   :  { %11 = vsyncpa [#allocation6], 0 }
   0x3   :  { %12 = vsyncpa [#allocation4], 0 }
   0x4   :  { %14 = vsyncpa [#allocation4 + $0x1], 0  ;;  %s949_s12 = smov 0   ;;  %s951_s13 = smov 0  }
   0x5   :  { %s953_s14 = smov 0   ;;  %s955_s15 = smov 0  }
   0x6   :  { %s957_s16 = smov 0   ;;  %s959_s17 = smov 0  }
   0x7 LB: > { %s562_s18 = sadd.s32 4294967295, %s921_s17   ;;  %s563_s19 = sadd.s32 4294967294, %s921_s17   ;;  %s921_s17 = sphi %s959_s17, %s20_s17   ;;  %s917_s16 = sphi %s957_s16, %s1312_s16   ;;  %s913_s15 = sphi %s955_s15, %s1311_s15   ;;  %s909_s14 = sphi %s953_s14, %s1310_s14   ;;  %s905_s13 = sphi %s951_s13, %s1309_s13   ;;  %s901_s12 = sphi %s949_s12, %s1308_s12  }
   0x8   : > { %s41_s20 = sadd.s32 1, %s909_s14  ;;  %p48_p0 = scmp.ne.s32.totalorder %s909_s14, %s905_s13 }
   0x9   : > { %p49_p1 = scmp.eq.s32.totalorder %s921_s17, 0  ;;  %p54_p2 = scmp.ne.s32.totalorder %s905_s13, %s901_s12 }
   0xa   : > { %p987_p3 = scmp.eq.s32.totalorder %s562_s18, 0  ;;  %p122_p4 = scmp.eq.s32.totalorder %s562_s18, 1 }
   0xb   : > { %p991_p5 = por %p49_p1, %p48_p0  ;;  %p128_p6 = scmp.eq.s32.totalorder %s563_s19, 1 }
   0xc   : > { %s1293_s21 = scalar_select %p987_p3, 1, 0 }
   0xd   : > { %p997_p7 = por %p987_p3, %p54_p2  ;;  %p1001_p8 = por %p122_p4, %p48_p0 }
   0xe   : > { %p1005_p9 = por %p128_p6, %p54_p2  ;;  %p564_p10 = scmp.ge.s32.totalorder %s921_s17, 1 }
   0xf   : > { %s1295_s23 = scalar_select %p997_p7, 1, 0 }
  0x10   : > { %s1296_s24 = scalar_select %p1001_p8, 1, 0 }
  0x11   : > { %s1297_s25 = scalar_select %p1005_p9, 1, 0 }
  0x12   : > { %p135_p11 = scmp.lt.s32.totalorder %s921_s17, 3  ;;  %s923_s27 = smov [#allocation5]  }
  0x13   : > { %s148_s28 = sshll.u32 %s923_s27, 4  ;;  %p693_p1 = scmp.lt.s32.totalorder %s921_s17, 2  ;;  %s149_s28 = int_to_ptr.vmem [resolvable:$true] %s148_s28 }
  0x14   : > { %p1012_p13 = pnand %p564_p10, %p135_p11  ;;  %s924_s30 = smov [#allocation7]  }
  0x15   : > { %p1021_p4 = pnand %p693_p1, %p991_p5  ;;  %s159_s4 = sshll.u32 %s924_s30, 4  ;;  %s1031_s4 = int_to_ptr.vmem [resolvable:$true] %s159_s4 }
  0x16   : > { %s1298_s26 = scalar_select %p1012_p13, 1, 0 }
  0x17   : > { %p676_p0 = pneg %p1012_p13  ;;  %s749_s8 = scalar_lea.hbm %s1284_s1, 16 }
  0x18   : > { %s1299_s29 = scalar_select %p1021_p4, 1, 0 }
  0x19   : > { %p1027_p2 = pnand %p676_p0, %p987_p3  ;;  %p750_p5 = scmp.ne.s32.totalorder %s1284_s1, %s749_s8 }
  0x1a   : > { %p756_p1 = scmp.lt.u32.totalorder %s749_s8, %s1284_s1 }
  0x1b   : > { %p751_p6 = pneg %p1027_p2 }
  0x1d   : > { %p752_p10 = pnand %p751_p6, %p750_p5 }
  0x1f   : > { %p753_p11 = pneg %p752_p10 }
  0x21   : > { %p758_p0 = pnand %p756_p1, %p753_p11 }
  0x23   : > { %761 = shalt.err (!%p758_p0)
}
  0x24   : > { %s762_s19 = scalar_lea.vmem %s149_s28, 16  ;;  %s769_s22 = scalar_lea.vmem %s149_s28, 32 }
  0x25   : > { %p763_p12 = scmp.ne.s32.totalorder %s149_s28, %s762_s19  ;;  %p770_p3 = scmp.lt.s32.totalorder %s149_s28, %s149_s28 }
  0x26   : > { %p771_p7 = scmp.lt.s32.totalorder %s769_s22, %s762_s19 }
  0x27   : > { %p765_p9 = pnand %p763_p12, %p751_p6 }
  0x28   : > { %p772_p13 = por %p771_p7, %p770_p3 }
  0x29   : > { %p766_p8 = pneg %p765_p9 }
  0x2b   : > { %p773_p4 = pnand %p772_p13, %p766_p8 }
  0x2d   : > { %776 = shalt.err (!%p773_p4)
}
  0x2e   : > { %679 = dma.hbm_to_vmem [thread:$0]  (!%p1027_p2), %s1284_s1, 16, %s149_s28, [#allocation6]  }
  0x2f   : > { %s777_s8 = scalar_lea.hbm %s1285_s2, 16 }
  0x30   : > { %p778_p9 = scmp.ne.s32.totalorder %s1285_s2, %s777_s8  ;;  %p784_p8 = scmp.lt.u32.totalorder %s777_s8, %s1285_s2 }
  0x32   : > { %p780_p3 = pnand %p778_p9, %p751_p6 }
  0x34   : > { %p781_p7 = pneg %p780_p3 }
  0x36   : > { %p786_p12 = pnand %p784_p8, %p781_p7 }
  0x38   : > { %789 = shalt.err (!%p786_p12)
}
  0x39   : > { %s790_s28 = scalar_lea.vmem %s1031_s4, 16  ;;  %s797_s19 = scalar_lea.vmem %s1031_s4, 32 }
  0x3a   : > { %p791_p13 = scmp.ne.s32.totalorder %s1031_s4, %s790_s28  ;;  %p798_p10 = scmp.lt.s32.totalorder %s1031_s4, %s1031_s4 }
  0x3b   : > { %p799_p11 = scmp.lt.s32.totalorder %s797_s19, %s790_s28 }
  0x3c   : > { %p793_p4 = pnand %p791_p13, %p751_p6 }
  0x3d   : > { %p800_p1 = por %p799_p11, %p798_p10 }
  0x3e   : > { %p794_p5 = pneg %p793_p4 }
  0x40   : > { %p801_p0 = pnand %p800_p1, %p794_p5 }
  0x42   : > { %804 = shalt.err (!%p801_p0)
}
  0x43   : > { %682 = dma.hbm_to_vmem [thread:$0]  (!%p1027_p2), %s1285_s2, 16, %s1031_s4, [#allocation6]  }
  0x44   : > { %s32_s30 = sadd.s32 1, %s917_s16  ;;  %s170_s6 = sand.u32 1, %s909_s14  }
  0x45   : > { %p34_p6 = scmp.ge.s32.totalorder %s32_s30, 2  ;;  %s568_s7 = sshll.u32 %s170_s6, 7 }
  0x46   : > { %s583_s8 = sshll.u32 %s917_s16, 11  ;;  %s174_s4 = scalar_lea.vmem [#allocation2], %s568_s7 }
  0x47   : > { %s1314_s30 = smov (%p34_p6, %s32_s30), 0  ;;  %s1089_s10 = scalar_lea.hbm %s1283_s0, %s583_s8 }
  0x48   : > { %s36_s11 = ssub.s32 %s917_s16, %s1314_s30  ;;  %s183_s18 = sshll.u32 %s174_s4, 4  ;;  %s1093_s18 = int_to_ptr.vmem [resolvable:$true] %s183_s18 }
  0x49   : > { %p39_p2 = scmp.eq.s32.totalorder %s36_s11, 0  ;;  %s1100_s19 = scalar_lea.sflag [#allocation3], %s170_s6 }
  0x4a   : > { %s805_s22 = scalar_lea.hbm %s1089_s10, 2048  ;;  %p1301_p3 = scmp.ne.s32.totalorder %s1299_s29, 0 }
  0x4b   : > { %s1098_s28 = scalar_select %p39_p2, %s909_s14, %s41_s20  }
  0x4c   : > { %p806_p9 = scmp.ne.s32.totalorder %s1089_s10, %s805_s22  ;;  %p807_p7 = pneg %p1301_p3 }
  0x4d   : > { %s810_s7 = scalar_lea.hbm %s1283_s0, 4096  ;;  %p811_p13 = scmp.lt.u32.totalorder %s1089_s10, %s1283_s0 }
  0x4e   : > { %p808_p8 = pnand %p807_p7, %p806_p9  ;;  %p812_p4 = scmp.lt.u32.totalorder %s810_s7, %s805_s22 }
  0x4f   : > { %p814_p10 = scmp.lt.u32.totalorder %s805_s22, %s1089_s10 }
  0x50   : > { %p809_p12 = pneg %p808_p8  ;;  %p813_p5 = por %p812_p4, %p811_p13 }
  0x52   : > { %p815_p11 = por %p814_p10, %p813_p5 }
  0x54   : > { %p816_p1 = pnand %p815_p11, %p809_p12 }
  0x56   : > { %819 = shalt.err (!%p816_p1)
}
  0x57   : > { %s820_s20 = scalar_lea.vmem %s1093_s18, 2048  ;;  %s925_s6 = smov [#allocation2]  }
  0x58   : > { %p821_p0 = scmp.ne.s32.totalorder %s1093_s18, %s820_s20  ;;  %s825_s11 = sshll.u32 %s925_s6, 4  ;;  %s826_s11 = int_to_ptr.vmem [resolvable:$false] %s825_s11 }
  0x59   : > { %s827_s4 = scalar_lea.vmem %s826_s11, 4096  ;;  %p828_p9 = scmp.lt.s32.totalorder %s1093_s18, %s826_s11 }
  0x5a   : > { %p823_p6 = pnand %p821_p0, %p807_p7  ;;  %p829_p8 = scmp.lt.s32.totalorder %s827_s4, %s820_s20 }
  0x5c   : > { %p824_p2 = pneg %p823_p6  ;;  %p830_p13 = por %p829_p8, %p828_p9 }
  0x5e   : > { %p831_p4 = pnand %p830_p13, %p824_p2 }
  0x60   : > { %834 = shalt.err (!%p831_p4)
}
  0x61   : > { %s926_s22 = smov 64   ;;  %s927_s27 = smov 4  }
  0x62   : > { %686 = dma.hbm_to_vmem [thread:$0]  (!%p1301_p3), %s1089_s10, 2048, %s1093_s18, %s1100_s19, %s926_s22, %s926_s22, %s927_s27  }
  0x63   : > { %p1302_p7 = scmp.ne.s32.totalorder %s1298_s26, 0 }
  0x64   : > { %s1131_s8 = sand.u32 (!%p1302_p7), 1, %s905_s13   ;;  %p1303_p12 = scmp.ne.s32.totalorder (!%p1302_p7), %s1295_s23, 0 }
  0x65   : > { %195 = sbr.rel (%p1302_p7) target bundleno = 264 (0x108), region = 32  ;;  %s572_s7 = sshll.u32 (!%p1302_p7), %s1131_s8, 7 }
  0x66   : > { %s198_s5 = scalar_lea.sflag (!%p1302_p7), [#allocation3], %s1131_s8  ;;  %s1135_s9 = scalar_lea.vmem (!%p1302_p7), [#allocation2], %s572_s7 }
  0x6c   : > { %888 = dma.done.wait (%p1303_p12), %s198_s5, 2048  }
  0x6d   : > { %890 = vsyncadd (%p1303_p12), %s198_s5, 4294965248  ;;  %p1304_p3 = scmp.ne.s32.totalorder %s1293_s21, 0 }
  0x6f   : > { %892 = dma.done.wait (%p1304_p3), [#allocation6], 32  }
  0x70   : > { %894 = vsyncadd (%p1304_p3), [#allocation6], 4294967264  ;;  %v656_v0 = vld [vmem:[%s1135_s9 + $0x40] sm:$0xff]   ;;  %v657_v5 = vld [vmem:[%s1135_s9 + $0x48] sm:$0xff]   ;;  %s575_s21 = sshll.u32 %s1131_s8, 4  ;;  %s584_s29 = sshll.u32 %s913_s15, 8 }
  0x71   : > { %v1146_v1 = vld [vmem:[#allocation5] ss:$0 sm:$0xff]  ;;  %v619_v2 = vunpack.c.l.bf16 %v656_v0  ;;  %v620_v4 = vunpack.c.h.bf16 %v656_v0  ;;  %v649_v6 = vld [vmem:[%s1135_s9 + $0x8] sm:$0xff]   ;;  %v1151_v7 = vld [vmem:[#allocation7] ss:$0 sm:$0xff]  ;;  %v623_v12 = vunpack.c.l.bf16 %v657_v5  ;;  %v624_v20 = vunpack.c.h.bf16 %v657_v5  ;;  %s231_s23 = scalar_lea.vmem [#allocation8], %s575_s21  ;;  %s1236_s19 = scalar_lea.hbm %s1286_s3, %s584_s29 }
  0x72   : > { %v586_v3 = vld [vmem:[%s1135_s9] sm:$0xff]   ;;  %v591_v15 = vunpack.c.l.bf16 %v649_v6  ;;  %v592_v23 = vunpack.c.h.bf16 %v649_v6  ;;  %v658_v24 = vld [vmem:[%s1135_s9 + $0x50] sm:$0xff]   ;;  %v659_v38 = vld [vmem:[%s1135_s9 + $0x58] sm:$0xff]   ;;  %s459_s26 = sshll.u32 %s231_s23, 4  ;;  %s443_s20 = scalar_lea.sflag [#allocation4], %s1131_s8  ;;  %s1231_s26 = int_to_ptr.vmem [resolvable:$true] %s459_s26 }
  0x73   : > { %v587_v8 = vunpack.c.l.bf16 %v586_v3  ;;  %v588_v9 = vunpack.c.h.bf16 %v586_v3  ;;  %v321_v10 = vmul.f32 %v619_v2, %v1146_v1  ;;  %v322_v11 = vmul.f32 %v620_v4, %v1146_v1  ;;  %v650_v25 = vld [vmem:[%s1135_s9 + $0x10] sm:$0xff]   ;;  %v651_v39 = vld [vmem:[%s1135_s9 + $0x18] sm:$0xff]   ;;  %v660_v52 = vld [vmem:[%s1135_s9 + $0x60] sm:$0xff]   ;;  %s835_s6 = scalar_lea.vmem %s1231_s26, 256  ;;  %p1305_p10 = scmp.ne.s32.totalorder %s1296_s24, 0 }
  0x74   : > { %v323_v19 = vmul.f32 %v623_v12, %v1146_v1  ;;  %v307_v22 = vmul.f32 %v591_v15, %v1146_v1  ;;  %v324_v27 = vmul.f32 %v624_v20, %v1146_v1  ;;  %v627_v28 = vunpack.c.l.bf16 %v658_v24  ;;  %v652_v53 = vld [vmem:[%s1135_s9 + $0x20] sm:$0xff]   ;;  %v661_v3 = vld [vmem:[%s1135_s9 + $0x68] sm:$0xff]   ;;  %p836_p5 = scmp.ne.s32.totalorder %s1231_s26, %s835_s6  ;;  %s928_s15 = smov [#allocation8]  }
  0x75   : > { %v305_v13 = vmul.f32 %v587_v8, %v1146_v1  ;;  %v306_v14 = vmul.f32 %v588_v9, %v1146_v1  ;;  %v360_v16 = vadd.f32 %v1151_v7, %v321_v10  ;;  %v361_v18 = vadd.f32 %v1151_v7, %v322_v11  ;;  %v653_v4 = vld [vmem:[%s1135_s9 + $0x28] sm:$0xff]   ;;  %s839_s11 = sshll.u32 %s928_s15, 4  ;;  %s840_s11 = int_to_ptr.vmem [resolvable:$false] %s839_s11 }
  0x76   : > { %v362_v26 = vadd.f32 %v1151_v7, %v323_v19  ;;  %v346_v29 = vadd.f32 %v1151_v7, %v307_v22  ;;  %v308_v30 = vmul.f32 %v592_v23, %v1146_v1  ;;  %v595_v31 = vunpack.c.l.bf16 %v650_v25  ;;  %v654_v19 = vld [vmem:[%s1135_s9 + $0x30] sm:$0xff]   ;;  %p837_p11 = pnand %p836_p5, %p1305_p10  ;;  %s841_s4 = scalar_lea.vmem %s840_s11, 512 }
  0x77   : > { %v344_v17 = vadd.f32 %v1151_v7, %v305_v13  ;;  %408 = vxpose.xlu1.b32.start [1/16] (narrow) %v360_v16, 8  ;;  %v345_v21 = vadd.f32 %v1151_v7, %v306_v14  ;;  %v363_v32 = vadd.f32 %v1151_v7, %v324_v27  ;;  %v325_v33 = vmul.f32 %v627_v28, %v1146_v1  ;;  %p842_p0 = scmp.lt.s32.totalorder %s1231_s26, %s840_s11  ;;  %p843_p6 = scmp.lt.s32.totalorder %s841_s4, %s835_s6 }
  0x78   : > { %v628_v34 = vunpack.c.h.bf16 %v658_v24  ;;  %v347_v35 = vadd.f32 %v1151_v7, %v308_v30  ;;  %v309_v36 = vmul.f32 %v595_v31, %v1146_v1  ;;  %v596_v37 = vunpack.c.h.bf16 %v650_v25  ;;  %p838_p1 = pneg %p837_p11 }
  0x79   : > { %376 = vxpose.xlu0.b32.start [1/16] (narrow) %v344_v17, 8  ;;  %v364_v40 = vadd.f32 %v1151_v7, %v325_v33  ;;  %v631_v42 = vunpack.c.l.bf16 %v659_v38  ;;  %v599_v45 = vunpack.c.l.bf16 %v651_v39  ;;  %v632_v48 = vunpack.c.h.bf16 %v659_v38  ;;  %v655_v33 = vld [vmem:[%s1135_s9 + $0x38] sm:$0xff]   ;;  %p844_p2 = por %p843_p6, %p842_p0 }
  0x7a   : > { %v326_v41 = vmul.f32 %v628_v34, %v1146_v1  ;;  %v348_v43 = vadd.f32 %v1151_v7, %v309_v36  ;;  %v310_v44 = vmul.f32 %v596_v37, %v1146_v1  ;;  %v600_v51 = vunpack.c.h.bf16 %v651_v39 }
  0x7b   : > { %409 = vxpose.xlu1.b32.cont [2/16] (narrow) %v361_v18, 8  ;;  %v327_v47 = vmul.f32 %v631_v42, %v1146_v1  ;;  %v311_v50 = vmul.f32 %v599_v45, %v1146_v1  ;;  %v328_v55 = vmul.f32 %v632_v48, %v1146_v1  ;;  %v635_v56 = vunpack.c.l.bf16 %v660_v52  ;;  %v662_v18 = vld [vmem:[%s1135_s9 + $0x70] sm:$0xff]   ;;  %p845_p9 = pnand %p844_p2, %p838_p1 }
  0x7c   : > { %v365_v46 = vadd.f32 %v1151_v7, %v326_v41  ;;  %v349_v49 = vadd.f32 %v1151_v7, %v310_v44  ;;  %v312_v58 = vmul.f32 %v600_v51, %v1146_v1  ;;  %v603_v59 = vunpack.c.l.bf16 %v652_v53 }
  0x7d   : > { %377 = vxpose.xlu0.b32.cont [2/16] (narrow) %v345_v21, 8  ;;  %v366_v54 = vadd.f32 %v1151_v7, %v327_v47  ;;  %v350_v57 = vadd.f32 %v1151_v7, %v311_v50  ;;  %v367_v60 = vadd.f32 %v1151_v7, %v328_v55  ;;  %v329_v61 = vmul.f32 %v635_v56, %v1146_v1 }
  0x7e   : > { %v636_v62 = vunpack.c.h.bf16 %v660_v52  ;;  %v351_v63 = vadd.f32 %v1151_v7, %v312_v58  ;;  %v313_v0 = vmul.f32 %v603_v59, %v1146_v1  ;;  %v604_v2 = vunpack.c.h.bf16 %v652_v53 }
  0x7f   : > { %410 = vxpose.xlu1.b32.cont [3/16] (narrow) %v362_v26, 8  ;;  %v368_v5 = vadd.f32 %v1151_v7, %v329_v61  ;;  %v639_v8 = vunpack.c.l.bf16 %v661_v3  ;;  %v607_v11 = vunpack.c.l.bf16 %v653_v4  ;;  %v640_v14 = vunpack.c.h.bf16 %v661_v3 }
  0x80   : > { %v330_v6 = vmul.f32 %v636_v62, %v1146_v1  ;;  %v352_v9 = vadd.f32 %v1151_v7, %v313_v0  ;;  %v314_v10 = vmul.f32 %v604_v2, %v1146_v1  ;;  %v608_v17 = vunpack.c.h.bf16 %v653_v4 }
  0x81   : > { %378 = vxpose.xlu0.b32.cont [3/16] (narrow) %v346_v29, 8  ;;  %v331_v13 = vmul.f32 %v639_v8, %v1146_v1  ;;  %v315_v16 = vmul.f32 %v607_v11, %v1146_v1  ;;  %v332_v21 = vmul.f32 %v640_v14, %v1146_v1  ;;  %v643_v22 = vunpack.c.l.bf16 %v662_v18 }
  0x82   : > { %v369_v12 = vadd.f32 %v1151_v7, %v330_v6  ;;  %v353_v15 = vadd.f32 %v1151_v7, %v314_v10  ;;  %v316_v24 = vmul.f32 %v608_v17, %v1146_v1  ;;  %v611_v25 = vunpack.c.l.bf16 %v654_v19 }
  0x83   : > { %411 = vxpose.xlu1.b32.cont [4/16] (narrow) %v363_v32, 8  ;;  %v370_v20 = vadd.f32 %v1151_v7, %v331_v13  ;;  %v354_v23 = vadd.f32 %v1151_v7, %v315_v16  ;;  %v371_v26 = vadd.f32 %v1151_v7, %v332_v21  ;;  %v333_v27 = vmul.f32 %v643_v22, %v1146_v1  ;;  %v663_v32 = vld [vmem:[%s1135_s9 + $0x78] sm:$0xff]  }
  0x84   : > { %v644_v28 = vunpack.c.h.bf16 %v662_v18  ;;  %v355_v29 = vadd.f32 %v1151_v7, %v316_v24  ;;  %v317_v30 = vmul.f32 %v611_v25, %v1146_v1  ;;  %v612_v31 = vunpack.c.h.bf16 %v654_v19 }
  0x85   : > { %379 = vxpose.xlu0.b32.cont [4/16] (narrow) %v347_v35, 8  ;;  %v372_v34 = vadd.f32 %v1151_v7, %v333_v27  ;;  %v647_v36 = vunpack.c.l.bf16 %v663_v32  ;;  %v615_v39 = vunpack.c.l.bf16 %v655_v33  ;;  %v648_v42 = vunpack.c.h.bf16 %v663_v32 }
  0x86   : > { %v334_v35 = vmul.f32 %v644_v28, %v1146_v1  ;;  %v356_v37 = vadd.f32 %v1151_v7, %v317_v30  ;;  %v318_v38 = vmul.f32 %v612_v31, %v1146_v1  ;;  %v616_v45 = vunpack.c.h.bf16 %v655_v33 }
  0x87   : > { %412 = vxpose.xlu1.b32.cont [5/16] (narrow) %v364_v40, 8  ;;  %v335_v41 = vmul.f32 %v647_v36, %v1146_v1  ;;  %v319_v44 = vmul.f32 %v615_v39, %v1146_v1  ;;  %v336_v47 = vmul.f32 %v648_v42, %v1146_v1 }
  0x88   : > { %v373_v40 = vadd.f32 %v1151_v7, %v334_v35 }
  0x89   : > { %380 = vxpose.xlu0.b32.cont [5/16] (narrow) %v348_v43, 8  ;;  %v357_v43 = vadd.f32 %v1151_v7, %v318_v38  ;;  %v358_v48 = vadd.f32 %v1151_v7, %v319_v44  ;;  %v375_v50 = vadd.f32 %v1151_v7, %v336_v47 }
  0x8b   : > { %413 = vxpose.xlu1.b32.cont [6/16] (narrow) %v365_v46, 8  ;;  %v374_v46 = vadd.f32 %v1151_v7, %v335_v41 }
  0x8d   : > { %381 = vxpose.xlu0.b32.cont [6/16] (narrow) %v349_v49, 8  ;;  %v320_v49 = vmul.f32 %v616_v45, %v1146_v1 }
  0x8f   : > { %414 = vxpose.xlu1.b32.cont [7/16] (narrow) %v366_v54, 8  ;;  %v359_v51 = vadd.f32 %v1151_v7, %v320_v49 }
  0x91   : > { %382 = vxpose.xlu0.b32.cont [7/16] (narrow) %v350_v57, 8 }
  0x93   : > { %415 = vxpose.xlu1.b32.cont [8/16] (narrow) %v367_v60, 8 }
  0x95   : > { %383 = vxpose.xlu0.b32.cont [8/16] (narrow) %v351_v63, 8 }
  0x97   : > { %416 = vxpose.xlu1.b32.cont [9/16] (narrow) %v368_v5, 8 }
  0x99   : > { %384 = vxpose.xlu0.b32.cont [9/16] (narrow) %v352_v9, 8 }
  0x9b   : > { %417 = vxpose.xlu1.b32.cont [10/16] (narrow) %v369_v12, 8 }
  0x9d   : > { %385 = vxpose.xlu0.b32.cont [10/16] (narrow) %v353_v15, 8 }
  0x9f   : > { %418 = vxpose.xlu1.b32.cont [11/16] (narrow) %v370_v20, 8 }
  0xa1   : > { %386 = vxpose.xlu0.b32.cont [11/16] (narrow) %v354_v23, 8 }
  0xa3   : > { %419 = vxpose.xlu1.b32.cont [12/16] (narrow) %v371_v26, 8 }
  0xa5   : > { %387 = vxpose.xlu0.b32.cont [12/16] (narrow) %v355_v29, 8 }
  0xa7   : > { %420 = vxpose.xlu1.b32.cont [13/16] (narrow) %v372_v34, 8 }
  0xa9   : > { %388 = vxpose.xlu0.b32.cont [13/16] (narrow) %v356_v37, 8 }
  0xab   : > { %421 = vxpose.xlu1.b32.cont [14/16] (narrow) %v373_v40, 8 }
  0xad   : > { %389 = vxpose.xlu0.b32.cont [14/16] (narrow) %v357_v43, 8 }
  0xaf   : > { %422 = vxpose.xlu1.b32.cont [15/16] (narrow) %v374_v46, 8 }
  0xb1   : > { %390 = vxpose.xlu0.b32.cont [15/16] (narrow) %v358_v48, 8 }
  0xb3   : > { %423 = vxpose.xlu1.b32.end [16/16] (narrow) %v375_v50, 8 }
  0xb5   : > { %391 = vxpose.xlu0.b32.end [16/16] (narrow) %v359_v51, 8 }
  0xf7   : > { %v424_v1 = vpop.trf.xlu1 }
  0xf8   : > { %441 = vst [vmem:[%s231_s23 + $0x8] sm:$0xff] %v424_v1 }
  0xf9   : > { %v392_v7 = vpop.trf.xlu0 }
  0xfa   : > { %440 = vst [vmem:[%s231_s23] sm:$0xff] %v392_v7 }
  0xfb   : > { %848 = shalt.err (!%p845_p9)
}
  0xfc   : > { %s849_s22 = scalar_lea.hbm %s1236_s19, 256  ;;  %s853_s7 = scalar_lea.hbm %s1286_s3, 512 }
  0xfd   : > { %p850_p8 = scmp.ne.s32.totalorder %s1236_s19, %s849_s22  ;;  %p854_p7 = scmp.lt.u32.totalorder %s1236_s19, %s1286_s3 }
  0xfe   : > { %p855_p12 = scmp.lt.u32.totalorder %s853_s7, %s849_s22  ;;  %p857_p5 = scmp.lt.u32.totalorder %s849_s22, %s1236_s19 }
  0xff   : > { %p851_p13 = pnand %p850_p8, %p1305_p10 }
 0x100   : > { %p856_p3 = por %p855_p12, %p854_p7 }
 0x101   : > { %p852_p4 = pneg %p851_p13 }
 0x102   : > { %p858_p11 = por %p857_p5, %p856_p3 }
 0x104   : > { %p859_p1 = pnand %p858_p11, %p852_p4 }
 0x106   : > { %862 = shalt.err (!%p859_p1)
}
 0x107   : > { %674 = dma.vmem_to_hbm [thread:$0]  (%p1305_p10), %s1231_s26, 256, %s1236_s19, %s443_s20  }
 0x108 PF: > { %s471_s21 = sand.u32 1, %s901_s12   ;;  %p1306_p0 = scmp.ne.s32.totalorder %s1297_s25, 0 }
 0x109   : > { %p1307_p6 = scmp.ge.s32.totalorder %s921_s17, 2  ;;  %s472_s23 = scalar_lea.sflag [#allocation4], %s471_s21 }
 0x10b   : > { %p688_p2 = pnand %p1307_p6, %p1306_p0 }
 0x10d   : > { %896 = dma.done.wait (!%p688_p2), %s472_s23, 256  }
 0x10e   : > { %898 = vsyncadd (!%p688_p2), %s472_s23, 4294967040  ;;  %s20_s17 = sadd.s32 1, %s921_s17   ;;  %s1308_s12 = smov %s905_s13 }
 0x10f   : > { %p17_p9 = scmp.ge.s32.totalorder %s20_s17, 4   ;;  %s1309_s13 = smov %s909_s14 }
 0x110   : > { %s1310_s14 = smov %s1098_s28  ;;  %s1311_s15 = smov %s917_s16 }
 0x111   : > { %s1312_s16 = smov %s1314_s30  ;;  %19 = sbr.rel (!%p17_p9) target bundleno = 7 (0x7), region = 85 }
 0x118   :  { %477 = vsyncpa [#allocation3], 1 }
 0x119   :  { %479 = vsyncpa [#allocation3 + $0x1], 1 }
 0x11a   :  { %480 = vsyncpa [#allocation6], 1 }
 0x11b   :  { %481 = vsyncpa [#allocation4], 1 }
 0x11c   :  { %483 = vsyncpa [#allocation4 + $0x1], 1 }

// kernel: conv_bn_2d.2
= control target key start
LH: loop header
LB: loop body
LE: loop exit
PB: predicated region body
PF: predicated region fallthrough
CT: control target
= control target key end

     0   :  { %9 = vsyncpa [#allocation4], 0  ;;  %s9605_s0 = inlined_call_operand.hbm [shape: bf16[2,16,16,16], index: 0, kind: input, shape index: {}]   ;;  %s9606_s1 = inlined_call_operand.hbm [shape: bf16[9,16,128], index: 1, kind: input, shape index: {}]   ;;  %s9607_s2 = inlined_call_operand.hbm [shape: bf16[2,256,128], index: 2, kind: output, shape index: {0}]   ;;  %s9608_s3 = inlined_call_operand.hbm [shape: f32[2,2,128], index: 3, kind: output, shape index: {1}]  }
   0x1   :  { %11 = vsyncpa [#allocation4 + $0x1], 0 }
   0x2   :  { %12 = vsyncpa [#allocation7], 0 }
   0x3   :  { %13 = vsyncpa [#allocation5], 0 }
   0x4   :  { %15 = vsyncpa [#allocation5 + $0x1], 0 }
   0x5   :  { %16 = vsyncpa [#allocation10], 0 }
   0x6   :  { %18 = vsyncpa [#allocation10 + $0x1], 0  ;;  %s7449_s12 = smov 0   ;;  %s7451_s13 = smov 0  }
   0x7   :  { %s7453_s14 = smov 0   ;;  %s7455_s15 = smov 0  }
   0x8 LB: > { %s7470_s16 = sadd.s32 4294967295, %s7418_s15   ;;  %s5848_s17 = sadd.s32 4294967294, %s7418_s15   ;;  %s7418_s15 = sphi %s7455_s15, %s9717_s15   ;;  %s7414_s14 = sphi %s7453_s14, %s9716_s14   ;;  %s7410_s13 = sphi %s7451_s13, %s9715_s13   ;;  %s7406_s12 = sphi %s7449_s12, %s9714_s12  }
   0x9   : > { %p44_p0 = scmp.ne.s32.totalorder %s7410_s13, %s7406_s12  ;;  %p9609_p1 = scmp.eq.s32.totalorder %s7470_s16, 0 }
   0xa   : > { %p95_p3 = scmp.eq.s32.totalorder %s5848_s17, 1  ;;  %p5849_p5 = scmp.ge.s32.totalorder %s7418_s15, 1 }
   0xb   : > { %p7479_p4 = por %p9609_p1, %p44_p0  ;;  %p128_p7 = scmp.lt.s32.totalorder %s7418_s15, 3 }
   0xc   : > { %p7484_p6 = por %p95_p3, %p44_p0  ;;  %s7420_s21 = smov [#allocation6]  }
   0xd   : > { %s9629_s18 = scalar_select %p7479_p4, 1, 0 }
   0xe   : > { %s9630_s19 = scalar_select %p7484_p6, 1, 0 }
   0xf   : > { %p7489_p8 = pnand %p5849_p5, %p128_p7  ;;  %s140_s22 = sshll.u32 %s7420_s21, 4  ;;  %s7493_s22 = int_to_ptr.vmem [resolvable:$true] %s140_s22 }
  0x10   : > { %s7505_s24 = sadd.s32 1, %s7418_s15   ;;  %s31_s25 = sadd.s32 1, %s7414_s14 }
  0x11   : > { %s9631_s20 = scalar_select %p7489_p8, 1, 0 }
  0x12   : > { %p7100_p9 = pneg %p7489_p8  ;;  %s28_s26 = ssub.s32 %s7418_s15, %s7505_s24 }
  0x13   : > { %s7258_s29 = scalar_lea.hbm %s9606_s1, 1152 }
  0x14   : > { %p7500_p11 = pnand %p7100_p9, %p9609_p1  ;;  %p7259_p12 = scmp.ne.s32.totalorder %s9606_s1, %s7258_s29 }
  0x15   : > { %p7265_p5 = scmp.lt.u32.totalorder %s7258_s29, %s9606_s1 }
  0x16   : > { %p7260_p13 = pneg %p7500_p11 }
  0x18   : > { %p7261_p0 = pnand %p7260_p13, %p7259_p12 }
  0x1a   : > { %p7262_p3 = pneg %p7261_p0 }
  0x1c   : > { %p7267_p7 = pnand %p7265_p5, %p7262_p3 }
  0x1e   : > { %7270 = shalt.err (!%p7267_p7)
}
  0x1f   : > { %s7271_s7 = scalar_lea.vmem %s7493_s22, 1152  ;;  %p7279_p2 = scmp.lt.s32.totalorder %s7493_s22, %s7493_s22 }
  0x20   : > { %p7272_p9 = scmp.ne.s32.totalorder %s7493_s22, %s7271_s7  ;;  %p7280_p6 = scmp.lt.s32.totalorder %s7271_s7, %s7271_s7 }
  0x22   : > { %p7274_p10 = pnand %p7272_p9, %p7260_p13  ;;  %p7281_p4 = por %p7280_p6, %p7279_p2 }
  0x24   : > { %p7275_p1 = pneg %p7274_p10 }
  0x26   : > { %p7282_p8 = pnand %p7281_p4, %p7275_p1 }
  0x28   : > { %7285 = shalt.err (!%p7282_p8)
}
  0x29   : > { %s7421_s8 = smov 64   ;;  %s7422_s9 = smov 4  }
  0x2a   : > { %7103 = dma.hbm_to_vmem [thread:$0]  (!%p7500_p11), %s9606_s1, 1152, %s7493_s22, [#allocation7], %s7421_s8, %s7421_s8, %s7422_s9  }
  0x2b   : > { %p29_p1 = scmp.eq.s32.totalorder %s28_s26, 0  ;;  %p38_p2 = scmp.ne.s32.totalorder %s7414_s14, %s7410_s13 }
  0x2c   : > { %p39_p4 = scmp.eq.s32.totalorder %s7418_s15, 0  ;;  %p7116_p6 = scmp.lt.s32.totalorder %s7418_s15, 2 }
  0x2d   : > { %s7539_s17 = scalar_select %p29_p1, %s7414_s14, %s31_s25  }
  0x2e   : > { %p40_p8 = por %p39_p4, %p38_p2  ;;  %p9633_p10 = scmp.eq.s32.totalorder %s7470_s16, 1 }
  0x2f   : > { %s154_s23 = sand.u32 1, %s7414_s14   ;;  %s6244_s27 = sshll.u32 %s7418_s15, 11 }
  0x30   : > { %p7543_p12 = por %p9633_p10, %p38_p2  ;;  %s5852_s28 = sshll.u32 %s154_s23, 7 }
  0x31   : > { %s7552_s4 = scalar_lea.hbm %s9605_s0, %s6244_s27  ;;  %s158_s22 = scalar_lea.vmem [#allocation3], %s5852_s28 }
  0x32   : > { %s165_s25 = sshll.u32 %s158_s22, 4  ;;  %p7554_p11 = pnand %p7116_p6, %p40_p8  ;;  %s7558_s25 = int_to_ptr.vmem [resolvable:$true] %s165_s25 }
  0x33   : > { %s7560_s5 = scalar_lea.sflag [#allocation4], %s154_s23  ;;  %s7286_s6 = scalar_lea.hbm %s7552_s4, 2048 }
  0x34   : > { %p7287_p13 = scmp.ne.s32.totalorder %s7552_s4, %s7286_s6  ;;  %p7288_p0 = pneg %p7554_p11 }
  0x35   : > { %s7291_s11 = scalar_lea.hbm %s9605_s0, 4096  ;;  %p7292_p7 = scmp.lt.u32.totalorder %s7552_s4, %s9605_s0 }
  0x36   : > { %p7289_p3 = pnand %p7288_p0, %p7287_p13  ;;  %p7293_p9 = scmp.lt.u32.totalorder %s7291_s11, %s7286_s6 }
  0x37   : > { %p7295_p2 = scmp.lt.u32.totalorder %s7286_s6, %s7552_s4 }
  0x38   : > { %p7290_p5 = pneg %p7289_p3  ;;  %p7294_p1 = por %p7293_p9, %p7292_p7 }
  0x3a   : > { %p7296_p4 = por %p7295_p2, %p7294_p1 }
  0x3c   : > { %p7297_p6 = pnand %p7296_p4, %p7290_p5 }
  0x3e   : > { %7300 = shalt.err (!%p7297_p6)
}
  0x3f   : > { %s7301_s23 = scalar_lea.vmem %s7558_s25, 2048  ;;  %s7423_s29 = smov [#allocation3]  }
  0x40   : > { %p7302_p8 = scmp.ne.s32.totalorder %s7558_s25, %s7301_s23  ;;  %s7306_s30 = sshll.u32 %s7423_s29, 4  ;;  %s7307_s30 = int_to_ptr.vmem [resolvable:$false] %s7306_s30 }
  0x41   : > { %s7308_s22 = scalar_lea.vmem %s7307_s30, 4096  ;;  %p7309_p3 = scmp.lt.s32.totalorder %s7558_s25, %s7307_s30 }
  0x42   : > { %p7304_p10 = pnand %p7302_p8, %p7288_p0  ;;  %p7310_p7 = scmp.lt.s32.totalorder %s7308_s22, %s7301_s23 }
  0x44   : > { %p7305_p13 = pneg %p7304_p10  ;;  %p7311_p9 = por %p7310_p7, %p7309_p3 }
  0x46   : > { %p7312_p1 = pnand %p7311_p9, %p7305_p13 }
  0x48   : > { %7315 = shalt.err (!%p7312_p1)
}
  0x49   : > { %7107 = dma.hbm_to_vmem [thread:$0]  (!%p7554_p11), %s7552_s4, 2048, %s7558_s25, %s7560_s5, %s7421_s8, %s7421_s8, %s7422_s9  }
  0x4a   : > { %p9636_p0 = scmp.ne.s32.totalorder %s9631_s20, 0 }
  0x4c   : > { %177 = sbr.rel (%p9636_p0) target bundleno = 864 (0x360), region = 28 }
  0x53   : > { %s7594_s6 = sand.u32 1, %s7410_s13   ;;  %p9637_p5 = scmp.ne.s32.totalorder %s9629_s18, 0 }
  0x54   : > { %s5856_s7 = sshll.u32 %s7594_s6, 7  ;;  %s180_s10 = scalar_lea.sflag [#allocation4], %s7594_s6 }
  0x55   : > { %s7600_s26 = scalar_lea.vmem [#allocation3], %s5856_s7 }
  0x56   : > { %7389 = dma.done.wait (%p9637_p5), %s180_s10, 2048  }
  0x57   : > { %7391 = vsyncadd (%p9637_p5), %s180_s10, 4294965248  ;;  %p9638_p11 = scmp.eq.s32.totalorder %s7470_s16, 0 }
  0x59   : > { %7393 = dma.done.wait (%p9638_p11), [#allocation7], 1152   ;;  %p9639_p2 = pmov %p9638_p11 }
  0x5a   : > { %vm216_vm0 = vcmask 125952   ;;  %vm219_vm1 = vcmask 122880   ;;  %v7424_v0 = vmov 0   ;;  %vm226_vm2 = vsmask.f32 256  ;;  %v7157_v3 = vld [vmem:[#allocation6 + $0x8] sm:$0xff]  }
  0x5b   : > { %7395 = vsyncadd (%p9639_p2), [#allocation7], 4294966144  ;;  %217 = vst.msk [vmem:[#allocation2] sm:$0xf] %vm216_vm0, %v7424_v0  ;;  %vm282_vm3 = vsmask.f32 7938  ;;  %6526 = vmatprep.subr.bf16.mxu1 %v7157_v3 }
  0x5c   : > { %218 = vst.msk [vmem:[#allocation2 + $0x4] sm:$0xf] %vm216_vm0, %v7424_v0  ;;  %222 = vst.msk [vmem:[#allocation2 + $0xcc] sm:$0xf] %vm216_vm0, %v7424_v0  ;;  %v9642_v2 = vmov 0  ;;  %v7158_v4 = vld [vmem:[#allocation6 + $0x20] sm:$0xff]   ;;  %6527 = vmatpush3.bf16.msra.mxu1 %v7157_v3 }
  0x5d   : > { %220 = vst.msk [vmem:[#allocation2 + $0x8] sm:$0x1] %vm219_vm1, %v7424_v0  ;;  %224 = vst.msk [vmem:[#allocation2 + $0xd4] sm:$0x1] %vm219_vm1, %v7424_v0  ;;  %vm370_vm6 = vsmask.f32 4368  ;;  %6662 = vmatprep.subr.bf16.mxu0 %v7158_v4 }
  0x5e   : > { %223 = vst.msk [vmem:[#allocation2 + $0xd0] sm:$0xf] %vm216_vm0, %v7424_v0  ;;  %vm7615_vm4 = vmand %vm219_vm1, %vm226_vm2  ;;  %vm857_vm7 = vsmask.f32 3328  ;;  %v231_v12 = vld [vmem:[#allocation2 + $0xc] sm:$0x1]  ;;  %6663 = vmatpush3.bf16.msra.mxu0 %v7158_v4 }
  0x5f   : > { %vm7620_vm5 = vmand %vm219_vm1, %vm282_vm3  ;;  %v232_v13 = vsel %vm7615_vm4, 0, %v231_v12  ;;  %v287_v14 = vld [vmem:[#allocation2 + $0x14] sm:$0x1]  ;;  %v338_v15 = vld [vmem:[%s7600_s26] sm:$0xf]  ;;  %vm1301_vm11 = vcmask 130048  }
  0x60   : > { %v9643_v2 = vsel %vm7620_vm5, 4294967295, %v9642_v2  ;;  %v7631_v16 = vld [vmem:[#allocation6] sm:$0xff]   ;;  %233 = vst [vmem:[#allocation2 + $0xc] sm:$0x1] %v232_v13  ;;  %v288_v19 = vsel %vm7620_vm5, 0, %v287_v14  ;;  %v373_v21 = vshrl.u32 %v338_v15, 16  ;;  %vm7645_vm8 = vmand %vm216_vm0, %vm282_vm3 }
  0x61   : > { %9644 = vst [vmem:[#allocation15_spill] sm:$0xff] %v9643_v2  ;;  %v339_v20 = vld [vmem:[%s7600_s26 + $0x4] sm:$0xf]  ;;  %289 = vst [vmem:[#allocation2 + $0x14] sm:$0x1] %v288_v19  ;;  %v376_v22 = vshll.u32 %v338_v15, 16  ;;  %6560 = vmatprep.subr.bf16.mxu1 %v7631_v16 }
  0x62   : > { %v228_v5 = vld [vmem:[#allocation2] sm:$0x1]  ;;  %v381_v23 = vshrl.u32 %v339_v20, 16  ;;  %v384_v24 = vshll.u32 %v339_v20, 16  ;;  %v375_v26 = vrot.slane %v373_v21, 7  ;;  %vm7653_vm10 = vmor %vm226_vm2, %vm370_vm6  ;;  %vm1854_vm13 = vcmask 1042432  }
  0x63   : > { %v808_v7 = vld [vmem:[#allocation2 + $0x4] sm:$0xf]  ;;  %v229_v8 = vsel %vm7615_vm4, 0, %v228_v5  ;;  %v234_v29 = vld [vmem:[#allocation2 + $0x18] sm:$0x1]  ;;  %vm1855_vm14 = vcmask 1046532  }
  0x64   : > { %v284_v6 = vld [vmem:[#allocation2 + $0x8] sm:$0x1]  ;;  %v870_v10 = vshll.u32 %v808_v7, 16  ;;  %v874_v11 = vshrl.u32 %v808_v7, 16  ;;  %230 = vst [vmem:[#allocation2] sm:$0x1] %v229_v8  ;;  %v378_v31 = vor.u32 %v376_v22, %v375_v26  ;;  %vm7789_vm15 = vmor %vm1854_vm13, %vm1855_vm14 }
  0x65   : > { %v285_v9 = vsel %vm7620_vm5, 0, %v284_v6  ;;  %v7639_v25 = vld [vmem:[#allocation6 + $0x28] sm:$0xff]   ;;  %v383_v28 = vrot.slane %v381_v23, 7  ;;  %vm858_vm9 = vsmask.f32 7440  ;;  %v379_v32 = vrot.slane %v375_v26, 4 }
  0x66   : > { %286 = vst [vmem:[#allocation2 + $0x8] sm:$0x1] %v285_v9  ;;  %v7633_v17 = vrot.slane %v870_v10, 5  ;;  %v876_v18 = vrot.slane %v874_v11, 4  ;;  %6696 = vmatprep.subr.bf16.mxu0 %v7639_v25  ;;  %v235_v33 = vsel %vm7615_vm4, 0, %v234_v29  ;;  %vm7667_vm12 = vmor %vm857_vm7, %vm858_vm9  ;;  %s9310_s18 = scalar_lea.vmem [#allocation8], %s5856_s7 }
  0x67   : > { %v290_v34 = vld [vmem:[#allocation2 + $0x20] sm:$0x1]  ;;  %v386_v36 = vor.u32 %v384_v24, %v383_v28  ;;  %v388_v37 = vrot.slane %v383_v28, 4  ;;  %236 = vst [vmem:[#allocation2 + $0x18] sm:$0x1] %v235_v33  ;;  %s6277_s20 = sshll.u32 %s7470_s16, 11 }
  0x68   : > { %v877_v27 = vor.u32 %v876_v18, %v7633_v17  ;;  %v291_v38 = vsel %vm7620_vm5, 0, %v290_v34  ;;  %v340_v39 = vld [vmem:[%s7600_s26 + $0x8] sm:$0xf]  ;;  %v341_v40 = vld [vmem:[%s7600_s26 + $0xc] sm:$0xf]  ;;  %s5720_s8 = sshll.u32 %s9310_s18, 4  ;;  %s9440_s25 = scalar_lea.hbm %s9607_s2, %s6277_s20  ;;  %s9442_s8 = int_to_ptr.vmem [resolvable:$true] %s5720_s8 }
  0x69   : > { %292 = vst [vmem:[#allocation2 + $0x20] sm:$0x1] %v291_v38  ;;  %v390_v43 = vshrl.u32 %v340_v39, 16  ;;  %v393_v44 = vshll.u32 %v340_v39, 16  ;;  %v695_v49 = vld [vmem:[#allocation2 + $0xc] sm:$0xf]  ;;  %v387_v50 = vsel %vm7653_vm10, %v379_v32, %v386_v36 }
  0x6a   : > { %v878_v47 = vrot.slane %v877_v27, 4  ;;  %v696_v51 = vsel %vm7645_vm8, %v378_v31, %v695_v49  ;;  %v699_v52 = vld [vmem:[#allocation2 + $0x14] sm:$0x1]  ;;  %v398_v54 = vshrl.u32 %v341_v40, 16  ;;  %v237_v55 = vld [vmem:[#allocation2 + $0x24] sm:$0x1] }
  0x6b   : > { %v807_v41 = vld [vmem:[#allocation2] sm:$0xf]  ;;  %v392_v53 = vrot.slane %v390_v43, 7  ;;  %697 = vst [vmem:[#allocation2 + $0xc] sm:$0xf] %v696_v51  ;;  %v700_v60 = vsel %vm7615_vm4, %v388_v37, %v699_v52  ;;  %v401_v3 = vshll.u32 %v341_v40, 16 }
  0x6c   : > { %v861_v45 = vshrl.u32 %v807_v41, 16  ;;  %v864_v46 = vshll.u32 %v807_v41, 16  ;;  %698 = vst.msk [vmem:[#allocation2 + $0x10] sm:$0xf] %vm216_vm0, %v387_v50  ;;  %v293_v61 = vld [vmem:[#allocation2 + $0x2c] sm:$0x1] }
  0x6d   : > { %v841_v42 = vld [vmem:[#allocation2 + $0x8] sm:$0x1]  ;;  %701 = vst [vmem:[#allocation2 + $0x14] sm:$0x1] %v700_v60  ;;  %v395_v62 = vor.u32 %v393_v44, %v392_v53  ;;  %v396_v63 = vrot.slane %v392_v53, 4  ;;  %v400_v0 = vrot.slane %v398_v54, 7 }
  0x6e   : > { %v880_v48 = vshll.u32 %v841_v42, 16  ;;  %v863_v57 = vrot.slane %v861_v45, 4  ;;  %v866_v58 = vrot.slane %v864_v46, 5  ;;  %v342_v4 = vld [vmem:[%s7600_s26 + $0x10] sm:$0xf]  ;;  %v238_v6 = vsel %vm7615_vm4, 0, %v237_v55 }
  0x6f   : > { %v294_v7 = vsel %vm7620_vm5, 0, %v293_v61  ;;  %v7680_v8 = vld [vmem:[%s7600_s26 + $0x14] sm:$0xf]  ;;  %v240_v9 = vld [vmem:[#allocation2 + $0x30] sm:$0x1]  ;;  %v403_v11 = vor.u32 %v401_v3, %v400_v0  ;;  %v405_v12 = vrot.slane %v400_v0, 4 }
  0x70   : > { %v882_v59 = vrot.slane %v880_v48, 5  ;;  %v867_v5 = vor.u32 %v866_v58, %v863_v57  ;;  %v702_v13 = vld [vmem:[#allocation2 + $0x18] sm:$0xf]  ;;  %239 = vst [vmem:[#allocation2 + $0x24] sm:$0x1] %v238_v6  ;;  %v407_v14 = vshrl.u32 %v342_v4, 16 }
  0x71   : > { %295 = vst [vmem:[#allocation2 + $0x2c] sm:$0x1] %v294_v7  ;;  %v703_v18 = vsel %vm7645_vm8, %v395_v62, %v702_v13  ;;  %v706_v19 = vld [vmem:[#allocation2 + $0x20] sm:$0x1]  ;;  %v410_v20 = vshll.u32 %v342_v4, 16  ;;  %v415_v21 = vshrl.u32 %v7680_v8, 16  ;;  %v404_v22 = vsel %vm7653_vm10, %v396_v63, %v403_v11 }
  0x72   : > { %v883_v10 = vsel %vm7667_vm12, %v878_v47, %v882_v59  ;;  %v868_v15 = vrot.slane %v867_v5, 4  ;;  %704 = vst [vmem:[#allocation2 + $0x18] sm:$0xf] %v703_v18  ;;  %v707_v23 = vsel %vm7615_vm4, %v405_v12, %v706_v19  ;;  %v7691_v24 = vrot.slane %v407_v14, 7  ;;  %v296_v27 = vld [vmem:[#allocation2 + $0x38] sm:$0x1] }
  0x73   : > { %v241_v26 = vsel %vm7615_vm4, 0, %v240_v9  ;;  %705 = vst.msk [vmem:[#allocation2 + $0x1c] sm:$0xf] %vm216_vm0, %v404_v22  ;;  %708 = vst [vmem:[#allocation2 + $0x20] sm:$0x1] %v707_v23  ;;  %v7699_v29 = vrot.slane %v415_v21, 7 }
  0x74   : > { %v873_v28 = vsel %vm7667_vm12, %v868_v15, %v7633_v17  ;;  %v418_v31 = vshll.u32 %v7680_v8, 16  ;;  %242 = vst [vmem:[#allocation2 + $0x30] sm:$0x1] %v241_v26  ;;  %v297_v32 = vsel %vm7620_vm5, 0, %v296_v27  ;;  %v7705_v33 = vld [vmem:[%s7600_s26 + $0x18] sm:$0xf]  ;;  %v7711_v46 = vor.u32 %v410_v20, %v7691_v24 }
  0x75   : > { %v5860_v34 = vcombine.low %v873_v28, %v883_v10  ;;  %v809_v36 = vld [vmem:[#allocation2 + $0xc] sm:$0xf]  ;;  %v810_v37 = vld [vmem:[#allocation2 + $0x10] sm:$0xf]  ;;  %298 = vst [vmem:[#allocation2 + $0x38] sm:$0x1] %v297_v32 }
  0x76   : > { %v2629_v38 = vld [vmem:[#allocation2 + $0xc] sm:$0xf]  ;;  %v842_v39 = vld [vmem:[#allocation2 + $0x14] sm:$0x1]  ;;  %v885_v17 = vshrl.u32 %v809_v36, 16  ;;  %v888_v40 = vshll.u32 %v809_v36, 16 }
  0x77   : > { %v894_v41 = vshll.u32 %v810_v37, 16  ;;  %v898_v42 = vshrl.u32 %v810_v37, 16  ;;  %6528 = vmatprep.mubr.msk.bf16.mxu1 %vm1301_vm11, %v5860_v34  ;;  %v904_v43 = vshll.u32 %v842_v39, 16  ;;  %v7708_v44 = vld [vmem:[#allocation2 + $0x10] sm:$0xf]  ;;  %v2678_v45 = vshrl.u32 %v2629_v38, 16 }
  0x78   : > { %v424_v47 = vshrl.u32 %v7705_v33, 16  ;;  %v887_v48 = vrot.slane %v885_v17, 4  ;;  %v890_v49 = vrot.slane %v888_v40, 5  ;;  %v7714_v52 = vld [vmem:[#allocation2 + $0x14] sm:$0x1]  ;;  %v2681_v55 = vshll.u32 %v2629_v38, 16 }
  0x79   : > { %v896_v50 = vrot.slane %v894_v41, 5  ;;  %v900_v51 = vrot.slane %v898_v42, 4  ;;  %v906_v53 = vrot.slane %v904_v43, 5  ;;  %v2680_v54 = vrot.slane %v2678_v45, 4  ;;  %v2632_v62 = vld [vmem:[#allocation2 + $0x18] sm:$0xf] }
  0x7a   : > { %v2687_v57 = vshll.u32 %v7708_v44, 16  ;;  %v891_v58 = vor.u32 %v890_v49, %v887_v48  ;;  %v2691_v60 = vshrl.u32 %v7708_v44, 16  ;;  %v2697_v61 = vshll.u32 %v7714_v52, 16  ;;  %v7721_v5 = vld [vmem:[#allocation2 + $0x1c] sm:$0xf]  ;;  %s5702_s5 = scalar_lea.sflag [#allocation5], %s7594_s6 }
  0x7b   : > { %v901_v59 = vor.u32 %v900_v51, %v896_v50  ;;  %v2683_v63 = vrot.slane %v2681_v55, 5  ;;  %v3425_v3 = vrot.slane %v7708_v44, 5  ;;  %v3428_v4 = vrot.slane %v7714_v52, 5  ;;  %v7723_v12 = vld [vmem:[#allocation2 + $0x20] sm:$0x1]  ;;  %s7316_s11 = scalar_lea.vmem %s9442_s8, 2048 }
  0x7c   : > { %v2689_v0 = vrot.slane %v2687_v57, 5  ;;  %v892_v6 = vrot.slane %v891_v58, 4  ;;  %v2693_v9 = vrot.slane %v2691_v60, 4  ;;  %v2699_v10 = vrot.slane %v2697_v61, 5  ;;  %v811_v28 = vld [vmem:[#allocation2 + $0x18] sm:$0xf]  ;;  %p7317_p4 = scmp.ne.s32.totalorder %s9442_s8, %s7316_s11 }
  0x7d   : > { %v902_v7 = vrot.slane %v901_v59, 4  ;;  %v2684_v11 = vor.u32 %v2683_v63, %v2680_v54  ;;  %v2702_v13 = vshrl.u32 %v2632_v62, 16  ;;  %v2705_v14 = vshll.u32 %v2632_v62, 16  ;;  %v812_v41 = vld [vmem:[#allocation2 + $0x1c] sm:$0xf]  ;;  %s7425_s27 = smov [#allocation8]  }
  0x7e   : > { %v2711_v15 = vshll.u32 %v7721_v5, 16  ;;  %v897_v18 = vsel %vm7667_vm12, %v892_v6, %v896_v50  ;;  %v2694_v20 = vor.u32 %v2693_v9, %v2689_v0  ;;  %v2715_v21 = vshrl.u32 %v7721_v5, 16  ;;  %v843_v48 = vld [vmem:[#allocation2 + $0x20] sm:$0x1]  ;;  %v709_v63 = vld [vmem:[#allocation2 + $0x24] sm:$0xf]  ;;  %p7318_p6 = pnand %p7317_p4, %p7543_p12 }
  0x7f   : > { %v907_v19 = vsel %vm7667_vm12, %v902_v7, %v906_v53  ;;  %v2685_v23 = vrot.slane %v2684_v11, 4  ;;  %v2704_v26 = vrot.slane %v2702_v13, 4  ;;  %v2707_v27 = vrot.slane %v2705_v14, 5  ;;  %v345_v11 = vld [vmem:[%s7600_s26 + $0x1c] sm:$0xf]  ;;  %s7320_s28 = sshll.u32 %s7425_s27, 4  ;;  %s7321_s28 = int_to_ptr.vmem [resolvable:$false] %s7320_s28 }
  0x80   : > { %v5861_v22 = vcombine.low %v897_v18, %v907_v19  ;;  %v2695_v32 = vrot.slane %v2694_v20, 4  ;;  %v2713_v34 = vrot.slane %v2711_v15, 5  ;;  %v2717_v36 = vrot.slane %v2715_v21, 4  ;;  %v243_v19 = vld [vmem:[#allocation2 + $0x3c] sm:$0x1]  ;;  %p7319_p8 = pneg %p7318_p6  ;;  %s7322_s23 = scalar_lea.vmem %s7321_s28, 4096 }
  0x81   : > { %v2721_v37 = vshll.u32 %v7723_v12, 16  ;;  %v2690_v38 = vsel %vm7667_vm12, %v2685_v23, %v2689_v0  ;;  %v2708_v39 = vor.u32 %v2707_v27, %v2704_v26  ;;  %v3432_v17 = vrot.slane %v7721_v5, 5  ;;  %v299_v23 = vld [vmem:[#allocation2 + $0x44] sm:$0x1]  ;;  %v7763_v26 = vld [vmem:[%s7600_s26 + $0x20] sm:$0xf]  ;;  %p7323_p10 = scmp.lt.s32.totalorder %s9442_s8, %s7321_s28  ;;  %p7324_p13 = scmp.lt.s32.totalorder %s7322_s23, %s7316_s11 }
  0x82   : > { %6529 = vmatmul.mubr.msk.bf16.vlgmr.msra.gmra.mrb[0].mxu1 %vm1301_vm11, %v5861_v22  ;;  %v3435_v40 = vrot.slane %v7723_v12, 5  ;;  %v2700_v42 = vsel %vm7667_vm12, %v2695_v32, %v2699_v10  ;;  %v2718_v43 = vor.u32 %v2717_v36, %v2713_v34  ;;  %v909_v49 = vshrl.u32 %v811_v28, 16  ;;  %v713_v10 = vld [vmem:[#allocation2 + $0x2c] sm:$0x1]  ;;  %v716_v22 = vld [vmem:[#allocation2 + $0x30] sm:$0xf] }
  0x83   : > { %6561 = vmatpush3.bf16.msra.mxu1 %v7631_v16  ;;  %v2723_v45 = vrot.slane %v2721_v37, 5  ;;  %v6008_v50 = vcombine.low %v2690_v38, %v2700_v42  ;;  %v2709_v51 = vrot.slane %v2708_v39, 4  ;;  %v7742_v53 = vrot.slane %v3432_v17, 4  ;;  %v720_v37 = vld [vmem:[#allocation2 + $0x38] sm:$0x1]  ;;  %p7325_p3 = por %p7324_p13, %p7323_p10 }
  0x84   : > { %v912_v54 = vshll.u32 %v811_v28, 16  ;;  %v2719_v55 = vrot.slane %v2718_v43, 4  ;;  %v911_v57 = vrot.slane %v909_v49, 4  ;;  %v918_v58 = vshll.u32 %v812_v41, 16  ;;  %v246_v43 = vld [vmem:[#allocation2 + $0x48] sm:$0x1] }
  0x85   : > { %v922_v59 = vshrl.u32 %v812_v41, 16  ;;  %6664 = vmatprep.mubr.msk.bf16.mxu0 %vm1301_vm11, %v6008_v50  ;;  %v2714_v16 = vsel %vm7667_vm12, %v2709_v51, %v2713_v34  ;;  %v928_v61 = vshll.u32 %v843_v48, 16  ;;  %v413_v62 = vrot.slane %v7691_v24, 4  ;;  %v7161_v24 = vld [vmem:[#allocation6 + $0x30] sm:$0xff]   ;;  %v7783_v51 = vld [vmem:[%s7600_s26 + $0x28] sm:$0xf]  ;;  %p7326_p7 = pnand %p7325_p3, %p7319_p8 }
  0x86   : > { %v914_v60 = vrot.slane %v912_v54, 5  ;;  %v2724_v0 = vsel %vm7667_vm12, %v2719_v55, %v2723_v45  ;;  %v920_v6 = vrot.slane %v918_v58, 5  ;;  %v420_v9 = vor.u32 %v418_v31, %v7699_v29 }
  0x87   : > { %v924_v7 = vrot.slane %v922_v59, 4  ;;  %v6009_v13 = vcombine.low %v2714_v16, %v2724_v0  ;;  %v930_v15 = vrot.slane %v928_v61, 5  ;;  %v422_v18 = vrot.slane %v7699_v29, 4 }
  0x88   : > { %v915_v14 = vor.u32 %v914_v60, %v911_v57  ;;  %v421_v21 = vsel %vm7653_vm10, %v413_v62, %v420_v9  ;;  %v710_v8 = vsel %vm7645_vm8, %v7711_v46, %v709_v63  ;;  %v426_v31 = vrot.slane %v424_v47, 7  ;;  %v347_v46 = vld [vmem:[%s7600_s26 + $0x24] sm:$0xf] }
  0x89   : > { %v925_v20 = vor.u32 %v924_v7, %v920_v6  ;;  %6665 = vmatmul.mubr.msk.bf16.vlgmr.msra.gmra.mrb[0].mxu0 %vm1301_vm11, %v6009_v13  ;;  %711 = vst [vmem:[#allocation2 + $0x24] sm:$0xf] %v710_v8  ;;  %712 = vst.msk [vmem:[#allocation2 + $0x28] sm:$0xf] %vm216_vm0, %v421_v21  ;;  %v714_v27 = vsel %vm7615_vm4, %v422_v18, %v713_v10  ;;  %v427_v28 = vshll.u32 %v7705_v33, 16  ;;  %v432_v32 = vshrl.u32 %v345_v11, 16 }
  0x8a   : > { %v916_v29 = vrot.slane %v915_v14, 4  ;;  %6697 = vmatpush3.bf16.msra.mxu0 %v7639_v25  ;;  %715 = vst [vmem:[#allocation2 + $0x2c] sm:$0x1] %v714_v27  ;;  %v430_v34 = vrot.slane %v426_v31, 4  ;;  %v435_v36 = vshll.u32 %v345_v11, 16  ;;  %v244_v38 = vsel %vm7615_vm4, 0, %v243_v19 }
  0x8b   : > { %v926_v47 = vrot.slane %v925_v20, 4  ;;  %v429_v41 = vor.u32 %v427_v28, %v426_v31  ;;  %v434_v42 = vrot.slane %v432_v32, 7  ;;  %245 = vst [vmem:[#allocation2 + $0x3c] sm:$0x1] %v244_v38  ;;  %v300_v33 = vsel %vm7620_vm5, 0, %v299_v23  ;;  %6730 = vmatprep.subr.bf16.mxu0 %v7161_v24 }
  0x8c   : > { %v921_v39 = vsel %vm7667_vm12, %v916_v29, %v920_v6  ;;  %v302_v25 = vld [vmem:[#allocation2 + $0x50] sm:$0x1]  ;;  %301 = vst [vmem:[#allocation2 + $0x44] sm:$0x1] %v300_v33  ;;  %v441_v48 = vshrl.u32 %v7763_v26, 16  ;;  %v444_v49 = vshll.u32 %v7763_v26, 16  ;;  %v7813_v13 = vsel %vm7789_vm15, %v7742_v53, %v3435_v40 }
  0x8d   : > { %v931_v45 = vsel %vm7667_vm12, %v926_v47, %v930_v15  ;;  %v449_v50 = vshrl.u32 %v347_v46, 16  ;;  %v437_v55 = vor.u32 %v435_v36, %v434_v42  ;;  %v439_v57 = vrot.slane %v434_v42, 4 }
  0x8e   : > { %v5862_v54 = vcombine.low %v921_v39, %v931_v45  ;;  %v717_v58 = vsel %vm7645_vm8, %v429_v41, %v716_v22  ;;  %v7793_v16 = vrot.slane %v441_v48, 7  ;;  %v452_v61 = vshll.u32 %v347_v46, 16 }
  0x8f   : > { %718 = vst [vmem:[#allocation2 + $0x30] sm:$0xf] %v717_v58  ;;  %v7795_v60 = vrot.slane %v449_v50, 7  ;;  %v247_v62 = vsel %vm7615_vm4, 0, %v246_v43  ;;  %v438_v63 = vsel %vm7653_vm10, %v430_v34, %v437_v55  ;;  %v721_v0 = vsel %vm7615_vm4, %v439_v57, %v720_v37 }
  0x90   : > { %6532 = vmatprep.mubr.msk.bf16.mxu1 %vm1301_vm11, %v5862_v54  ;;  %248 = vst [vmem:[#allocation2 + $0x48] sm:$0x1] %v247_v62  ;;  %v303_v6 = vsel %vm7620_vm5, 0, %v302_v25  ;;  %v458_v7 = vshrl.u32 %v7783_v51, 16  ;;  %v813_v9 = vld [vmem:[#allocation2 + $0x24] sm:$0xf]  ;;  %v7820_v22 = vor.u32 %v444_v49, %v7793_v16 }
  0x91   : > { %v814_v10 = vld [vmem:[#allocation2 + $0x28] sm:$0xf]  ;;  %v2635_v11 = vld [vmem:[#allocation2 + $0x24] sm:$0xf]  ;;  %719 = vst.msk [vmem:[#allocation2 + $0x34] sm:$0xf] %vm216_vm0, %v438_v63  ;;  %v7823_v12 = vor.u32 %v452_v61, %v7795_v60 }
  0x92   : > { %722 = vst [vmem:[#allocation2 + $0x38] sm:$0x1] %v721_v0  ;;  %304 = vst [vmem:[#allocation2 + $0x50] sm:$0x1] %v303_v6  ;;  %v844_v14 = vld [vmem:[#allocation2 + $0x2c] sm:$0x1] }
  0x93   : > { %v933_v15 = vshrl.u32 %v813_v9, 16  ;;  %v936_v18 = vshll.u32 %v813_v9, 16  ;;  %v942_v19 = vshll.u32 %v814_v10, 16  ;;  %v946_v24 = vshrl.u32 %v814_v10, 16  ;;  %v7815_v21 = vld [vmem:[#allocation2 + $0x28] sm:$0xf] }
  0x94   : > { %v952_v20 = vshll.u32 %v844_v14, 16  ;;  %v7817_v8 = vld [vmem:[#allocation2 + $0x2c] sm:$0x1]  ;;  %v2726_v31 = vshrl.u32 %v2635_v11, 16  ;;  %v2729_v28 = vshll.u32 %v2635_v11, 16  ;;  %v2735_v32 = vshll.u32 %v7815_v21, 16 }
  0x95   : > { %v935_v23 = vrot.slane %v933_v15, 4  ;;  %v938_v40 = vrot.slane %v936_v18, 5  ;;  %v944_v53 = vrot.slane %v942_v19, 5  ;;  %v948_v26 = vrot.slane %v946_v24, 4 }
  0x96   : > { %v954_v29 = vrot.slane %v952_v20, 5  ;;  %v2728_v27 = vrot.slane %v2726_v31, 4  ;;  %v2739_v34 = vshrl.u32 %v7815_v21, 16  ;;  %v2745_v36 = vshll.u32 %v7817_v8, 16  ;;  %v2638_v37 = vld [vmem:[#allocation2 + $0x30] sm:$0xf] }
  0x97   : > { %v939_v46 = vor.u32 %v938_v40, %v935_v23  ;;  %v949_v47 = vor.u32 %v948_v26, %v944_v53  ;;  %v2731_v38 = vrot.slane %v2729_v28, 5  ;;  %v2737_v39 = vrot.slane %v2735_v32, 5  ;;  %v815_v33 = vld [vmem:[#allocation2 + $0x30] sm:$0xf]  ;;  %v723_v32 = vld [vmem:[#allocation2 + $0x3c] sm:$0xf] }
  0x98   : > { %v2750_v41 = vshrl.u32 %v2638_v37, 16  ;;  %v2753_v42 = vshll.u32 %v2638_v37, 16  ;;  %v2741_v45 = vrot.slane %v2739_v34, 4  ;;  %v2747_v48 = vrot.slane %v2745_v36, 5  ;;  %v7828_v49 = vld [vmem:[#allocation2 + $0x34] sm:$0xf] }
  0x99   : > { %v940_v43 = vrot.slane %v939_v46, 4  ;;  %v950_v25 = vrot.slane %v949_v47, 4  ;;  %v2732_v50 = vor.u32 %v2731_v38, %v2728_v27  ;;  %v7830_v54 = vld [vmem:[#allocation2 + $0x38] sm:$0x1]  ;;  %v2759_v58 = vshll.u32 %v7828_v49, 16 }
  0x9a   : > { %v2752_v55 = vrot.slane %v2750_v41, 4  ;;  %v2755_v57 = vrot.slane %v2753_v42, 5  ;;  %v2742_v63 = vor.u32 %v2741_v45, %v2737_v39  ;;  %v2763_v0 = vshrl.u32 %v7828_v49, 16  ;;  %v816_v6 = vld [vmem:[#allocation2 + $0x34] sm:$0xf] }
  0x9b   : > { %v945_v61 = vsel %vm7667_vm12, %v940_v43, %v944_v53  ;;  %v955_v62 = vsel %vm7667_vm12, %v950_v25, %v954_v29  ;;  %v2733_v10 = vrot.slane %v2732_v50, 4  ;;  %v2761_v14 = vrot.slane %v2759_v58, 5  ;;  %v845_v23 = vld [vmem:[#allocation2 + $0x38] sm:$0x1]  ;;  %v727_v42 = vld [vmem:[#allocation2 + $0x44] sm:$0x1] }
  0x9c   : > { %v5863_v9 = vcombine.low %v945_v61, %v955_v62  ;;  %v2756_v11 = vor.u32 %v2755_v57, %v2752_v55  ;;  %v2743_v15 = vrot.slane %v2742_v63, 4  ;;  %v2765_v18 = vrot.slane %v2763_v0, 4  ;;  %v349_v45 = vld [vmem:[%s7600_s26 + $0x2c] sm:$0xf]  ;;  %v249_v50 = vld [vmem:[#allocation2 + $0x54] sm:$0x1] }
  0x9d   : > { %v2769_v19 = vshll.u32 %v7830_v54, 16  ;;  %v957_v24 = vshrl.u32 %v815_v33, 16  ;;  %v2738_v20 = vsel %vm7667_vm12, %v2733_v10, %v2737_v39  ;;  %v960_v40 = vshll.u32 %v815_v33, 16  ;;  %v350_v61 = vld [vmem:[%s7600_s26 + $0x30] sm:$0xf] }
  0x9e   : > { %6533 = vmatmul.mubr.msk.bf16.gmra.mrb[4].mxu1 %vm1301_vm11, %v5863_v9  ;;  %v2757_v31 = vrot.slane %v2756_v11, 4  ;;  %v966_v53 = vshll.u32 %v816_v6, 16  ;;  %v2748_v26 = vsel %vm7667_vm12, %v2743_v15, %v2747_v48  ;;  %v2766_v29 = vor.u32 %v2765_v18, %v2761_v14  ;;  %v351_v0 = vld [vmem:[%s7600_s26 + $0x34] sm:$0xf] }
  0x9f   : > { %v2771_v27 = vrot.slane %v2769_v19, 5  ;;  %v959_v28 = vrot.slane %v957_v24, 4  ;;  %v6010_v46 = vcombine.low %v2738_v20, %v2748_v26  ;;  %v962_v34 = vrot.slane %v960_v40, 5  ;;  %v308_v40 = vld [vmem:[#allocation2 + $0x68] sm:$0x1] }
  0xa0   : > { %v2762_v47 = vsel %vm7667_vm12, %v2757_v31, %v2761_v14  ;;  %v968_v36 = vrot.slane %v966_v53, 5  ;;  %v2767_v37 = vrot.slane %v2766_v29, 4  ;;  %v970_v38 = vshrl.u32 %v816_v6, 16  ;;  %v252_v6 = vld [vmem:[#allocation2 + $0x60] sm:$0x1] }
  0xa1   : > { %v976_v39 = vshll.u32 %v845_v23, 16  ;;  %v447_v41 = vrot.slane %v7793_v16, 4  ;;  %6668 = vmatprep.mubr.msk.bf16.mxu0 %vm1301_vm11, %v6010_v46  ;;  %v963_v33 = vor.u32 %v962_v34, %v959_v28  ;;  %v456_v43 = vrot.slane %v7795_v60, 4  ;;  %v305_v60 = vld [vmem:[#allocation2 + $0x5c] sm:$0x1] }
  0xa2   : > { %v724_v25 = vsel %vm7645_vm8, %v7820_v22, %v723_v32  ;;  %v460_v48 = vrot.slane %v458_v7, 7  ;;  %v2772_v55 = vsel %vm7667_vm12, %v2767_v37, %v2771_v27  ;;  %v972_v16 = vrot.slane %v970_v38, 4  ;;  %v734_v26 = vld [vmem:[#allocation2 + $0x50] sm:$0x1] }
  0xa3   : > { %v978_v57 = vrot.slane %v976_v39, 5  ;;  %v455_v58 = vsel %vm7653_vm10, %v447_v41, %v7823_v12  ;;  %725 = vst [vmem:[#allocation2 + $0x3c] sm:$0xf] %v724_v25  ;;  %v6011_v62 = vcombine.low %v2762_v47, %v2772_v55  ;;  %v964_v22 = vrot.slane %v963_v33, 4  ;;  %v730_v12 = vld [vmem:[#allocation2 + $0x48] sm:$0xf] }
  0xa4   : > { %726 = vst.msk [vmem:[#allocation2 + $0x40] sm:$0xf] %vm216_vm0, %v455_v58  ;;  %v728_v7 = vsel %vm7615_vm4, %v456_v43, %v727_v42  ;;  %v461_v63 = vshll.u32 %v7783_v51, 16  ;;  %v973_v9 = vor.u32 %v972_v16, %v968_v36  ;;  %v464_v10 = vrot.slane %v460_v48, 4 }
  0xa5   : > { %729 = vst [vmem:[#allocation2 + $0x44] sm:$0x1] %v728_v7  ;;  %v466_v11 = vshrl.u32 %v349_v45, 16  ;;  %v469_v14 = vshll.u32 %v349_v45, 16  ;;  %6669 = vmatmul.mubr.msk.bf16.gmra.mrb[4].mxu0 %vm1301_vm11, %v6011_v62  ;;  %v969_v15 = vsel %vm7667_vm12, %v964_v22, %v968_v36  ;;  %v250_v19 = vsel %vm7615_vm4, 0, %v249_v50 }
  0xa6   : > { %v463_v18 = vor.u32 %v461_v63, %v460_v48  ;;  %v306_v51 = vsel %vm7620_vm5, 0, %v305_v60  ;;  %v974_v24 = vrot.slane %v973_v9, 4  ;;  %251 = vst [vmem:[#allocation2 + $0x54] sm:$0x1] %v250_v19  ;;  %v475_v31 = vshrl.u32 %v350_v61, 16 }
  0xa7   : > { %v468_v20 = vrot.slane %v466_v11, 7  ;;  %307 = vst [vmem:[#allocation2 + $0x5c] sm:$0x1] %v306_v51  ;;  %v478_v23 = vshll.u32 %v350_v61, 16  ;;  %v483_v29 = vshrl.u32 %v351_v0, 16  ;;  %v486_v27 = vshll.u32 %v351_v0, 16 }
  0xa8   : > { %v731_v53 = vsel %vm7645_vm8, %v463_v18, %v730_v12  ;;  %v253_v28 = vsel %vm7615_vm4, 0, %v252_v6  ;;  %v979_v32 = vsel %vm7667_vm12, %v974_v24, %v978_v57  ;;  %v7879_v34 = vrot.slane %v475_v31, 7 }
  0xa9   : > { %v471_v46 = vor.u32 %v469_v14, %v468_v20  ;;  %v473_v47 = vrot.slane %v468_v20, 4  ;;  %732 = vst [vmem:[#allocation2 + $0x48] sm:$0xf] %v731_v53  ;;  %254 = vst [vmem:[#allocation2 + $0x60] sm:$0x1] %v253_v28  ;;  %v5864_v36 = vcombine.low %v969_v15, %v979_v32  ;;  %v7881_v39 = vrot.slane %v483_v29, 7 }
  0xaa   : > { %v817_v37 = vld [vmem:[#allocation2 + $0x3c] sm:$0xf]  ;;  %v309_v41 = vsel %vm7620_vm5, 0, %v308_v40  ;;  %v7894_v57 = vor.u32 %v478_v23, %v7879_v34  ;;  %v7162_v15 = vld [vmem:[#allocation6 + $0x10] sm:$0xff]  }
  0xab   : > { %v2641_v38 = vld [vmem:[#allocation2 + $0x3c] sm:$0xf]  ;;  %v818_v42 = vld [vmem:[#allocation2 + $0x40] sm:$0xf]  ;;  %v981_v33 = vshrl.u32 %v817_v37, 16  ;;  %v984_v43 = vshll.u32 %v817_v37, 16  ;;  %v472_v45 = vsel %vm7653_vm10, %v464_v10, %v471_v46  ;;  %v735_v48 = vsel %vm7615_vm4, %v473_v47, %v734_v26  ;;  %6536 = vmatprep.mubr.msk.bf16.mxu1 %vm1301_vm11, %v5864_v36  ;;  %6594 = vmatprep.subr.bf16.mxu1 %v7162_v15 }
  0xac   : > { %v7885_v25 = vld [vmem:[#allocation2 + $0x40] sm:$0xf]  ;;  %310 = vst [vmem:[#allocation2 + $0x68] sm:$0x1] %v309_v41  ;;  %v846_v50 = vld [vmem:[#allocation2 + $0x44] sm:$0x1]  ;;  %v7897_v58 = vor.u32 %v486_v27, %v7881_v39 }
  0xad   : > { %v990_v55 = vshll.u32 %v818_v42, 16  ;;  %v994_v16 = vshrl.u32 %v818_v42, 16  ;;  %733 = vst.msk [vmem:[#allocation2 + $0x4c] sm:$0xf] %vm216_vm0, %v472_v45  ;;  %736 = vst [vmem:[#allocation2 + $0x50] sm:$0x1] %v735_v48 }
  0xae   : > { %v983_v60 = vrot.slane %v981_v33, 4  ;;  %v986_v61 = vrot.slane %v984_v43, 5  ;;  %v1000_v62 = vshll.u32 %v846_v50, 16  ;;  %v7899_v22 = vld [vmem:[#allocation2 + $0x44] sm:$0x1]  ;;  %v2774_v7 = vshrl.u32 %v2641_v38, 16 }
  0xaf   : > { %v992_v63 = vrot.slane %v990_v55, 5  ;;  %v996_v0 = vrot.slane %v994_v16, 4  ;;  %v2777_v6 = vshll.u32 %v2641_v38, 16  ;;  %v2783_v9 = vshll.u32 %v7885_v25, 16 }
  0xb0   : > { %v987_v10 = vor.u32 %v986_v61, %v983_v60  ;;  %v1002_v11 = vrot.slane %v1000_v62, 5  ;;  %v2776_v14 = vrot.slane %v2774_v7, 4  ;;  %v2787_v12 = vshrl.u32 %v7885_v25, 16  ;;  %v2644_v20 = vld [vmem:[#allocation2 + $0x48] sm:$0xf] }
  0xb1   : > { %v997_v18 = vor.u32 %v996_v0, %v992_v63  ;;  %v2779_v19 = vrot.slane %v2777_v6, 5  ;;  %v2785_v51 = vrot.slane %v2783_v9, 5  ;;  %v2793_v24 = vshll.u32 %v7899_v22, 16  ;;  %v819_v26 = vld [vmem:[#allocation2 + $0x48] sm:$0xf] }
  0xb2   : > { %v988_v31 = vrot.slane %v987_v10, 4  ;;  %v2789_v23 = vrot.slane %v2787_v12, 4  ;;  %v2798_v40 = vshrl.u32 %v2644_v20, 16  ;;  %v2801_v53 = vshll.u32 %v2644_v20, 16 }
  0xb3   : > { %v998_v29 = vrot.slane %v997_v18, 4  ;;  %v2780_v27 = vor.u32 %v2779_v19, %v2776_v14  ;;  %v2795_v28 = vrot.slane %v2793_v24, 5  ;;  %v1005_v32 = vshrl.u32 %v819_v26, 16  ;;  %v352_v14 = vld [vmem:[%s7600_s26 + $0x38] sm:$0xf] }
  0xb4   : > { %v993_v46 = vsel %vm7667_vm12, %v988_v31, %v992_v63  ;;  %v2790_v47 = vor.u32 %v2789_v23, %v2785_v51  ;;  %v7906_v36 = vld [vmem:[#allocation2 + $0x4c] sm:$0xf]  ;;  %v7908_v37 = vld [vmem:[#allocation2 + $0x50] sm:$0x1]  ;;  %v2800_v38 = vrot.slane %v2798_v40, 4  ;;  %v2803_v41 = vrot.slane %v2801_v53, 5 }
  0xb5   : > { %v1003_v42 = vsel %vm7667_vm12, %v998_v29, %v1002_v11  ;;  %v2781_v33 = vrot.slane %v2780_v27, 4  ;;  %v2807_v43 = vshll.u32 %v7906_v36, 16  ;;  %v2811_v45 = vshrl.u32 %v7906_v36, 16  ;;  %v820_v60 = vld [vmem:[#allocation2 + $0x4c] sm:$0xf] }
  0xb6   : > { %v5865_v48 = vcombine.low %v993_v46, %v1003_v42  ;;  %v2791_v50 = vrot.slane %v2790_v47, 4  ;;  %v2804_v55 = vor.u32 %v2803_v41, %v2800_v38  ;;  %v2817_v16 = vshll.u32 %v7908_v37, 16  ;;  %v847_v63 = vld [vmem:[#allocation2 + $0x50] sm:$0x1]  ;;  %v737_v24 = vld [vmem:[#allocation2 + $0x54] sm:$0xf] }
  0xb7   : > { %v2786_v61 = vsel %vm7667_vm12, %v2781_v33, %v2785_v51  ;;  %v2809_v62 = vrot.slane %v2807_v43, 5  ;;  %v2813_v7 = vrot.slane %v2811_v45, 4  ;;  %v1007_v0 = vrot.slane %v1005_v32, 4  ;;  %v353_v51 = vld [vmem:[%s7600_s26 + $0x3c] sm:$0xf] }
  0xb8   : > { %6537 = vmatmul.mubr.msk.bf16.gmra.mrb[8].mxu1 %vm1301_vm11, %v5865_v48  ;;  %v2796_v6 = vsel %vm7667_vm12, %v2791_v50, %v2795_v28  ;;  %v2805_v9 = vrot.slane %v2804_v55, 4  ;;  %v2819_v10 = vrot.slane %v2817_v16, 5  ;;  %v1008_v11 = vshll.u32 %v819_v26, 16  ;;  %v741_v53 = vld [vmem:[#allocation2 + $0x5c] sm:$0x1] }
  0xb9   : > { %v6012_v12 = vcombine.low %v2786_v61, %v2796_v6  ;;  %v2814_v15 = vor.u32 %v2813_v7, %v2809_v62  ;;  %v1014_v18 = vshll.u32 %v820_v60, 16  ;;  %v1018_v19 = vshrl.u32 %v820_v60, 16  ;;  %v255_v32 = vld [vmem:[#allocation2 + $0x6c] sm:$0x1]  ;;  %v311_v41 = vld [vmem:[#allocation2 + $0x74] sm:$0x1] }
  0xba   : > { %v2810_v20 = vsel %vm7667_vm12, %v2805_v9, %v2809_v62  ;;  %v1010_v31 = vrot.slane %v1008_v11, 5  ;;  %v1024_v23 = vshll.u32 %v847_v63, 16  ;;  %v481_v40 = vrot.slane %v7879_v34, 4  ;;  %v354_v45 = vld [vmem:[%s7600_s26 + $0x40] sm:$0xf] }
  0xbb   : > { %6672 = vmatprep.mubr.msk.bf16.mxu0 %vm1301_vm11, %v6012_v12  ;;  %v2815_v29 = vrot.slane %v2814_v15, 4  ;;  %v1016_v26 = vrot.slane %v1014_v18, 5  ;;  %v1020_v27 = vrot.slane %v1018_v19, 4  ;;  %v490_v28 = vrot.slane %v7881_v39, 4  ;;  %v7940_v16 = vld [vmem:[%s7600_s26 + $0x44] sm:$0xf] }
  0xbc   : > { %v1011_v46 = vor.u32 %v1010_v31, %v1007_v0  ;;  %v1026_v47 = vrot.slane %v1024_v23, 5  ;;  %v489_v38 = vsel %vm7653_vm10, %v481_v40, %v7897_v58  ;;  %v738_v34 = vsel %vm7645_vm8, %v7894_v57, %v737_v24  ;;  %v3359_v57 = vld [vmem:[#allocation2 + $0xc] sm:$0xe]  ;;  %v744_v7 = vld [vmem:[#allocation2 + $0x60] sm:$0xf] }
  0xbd   : > { %v2820_v42 = vsel %vm7667_vm12, %v2815_v29, %v2819_v10  ;;  %v1021_v33 = vor.u32 %v1020_v27, %v1016_v26  ;;  %739 = vst [vmem:[#allocation2 + $0x54] sm:$0xf] %v738_v34  ;;  %740 = vst.msk [vmem:[#allocation2 + $0x58] sm:$0xf] %vm216_vm0, %v489_v38  ;;  %v742_v39 = vsel %vm7615_vm4, %v490_v28, %v741_v53  ;;  %v492_v43 = vshrl.u32 %v352_v14, 16 }
  0xbe   : > { %v6013_v48 = vcombine.low %v2810_v20, %v2820_v42  ;;  %v1012_v50 = vrot.slane %v1011_v46, 4  ;;  %743 = vst [vmem:[#allocation2 + $0x5c] sm:$0x1] %v742_v39  ;;  %v495_v58 = vshll.u32 %v352_v14, 16  ;;  %v500_v55 = vshrl.u32 %v353_v51, 16 }
  0xbf   : > { %v1022_v60 = vrot.slane %v1021_v33, 4  ;;  %v494_v61 = vrot.slane %v492_v43, 7  ;;  %v503_v62 = vshll.u32 %v353_v51, 16  ;;  %v256_v63 = vsel %vm7615_vm4, 0, %v255_v32  ;;  %v748_v9 = vld [vmem:[#allocation2 + $0x68] sm:$0x1] }
  0xc0   : > { %6673 = vmatmul.mubr.msk.bf16.gmra.mrb[8].mxu0 %vm1301_vm11, %v6013_v48  ;;  %v1017_v0 = vsel %vm7667_vm12, %v1012_v50, %v1016_v26  ;;  %v502_v6 = vrot.slane %v500_v55, 7  ;;  %257 = vst [vmem:[#allocation2 + $0x6c] sm:$0x1] %v256_v63  ;;  %v312_v10 = vsel %vm7620_vm5, 0, %v311_v41  ;;  %v509_v11 = vshrl.u32 %v354_v45, 16 }
  0xc1   : > { %v1027_v14 = vsel %vm7667_vm12, %v1022_v60, %v1026_v47  ;;  %v497_v12 = vor.u32 %v495_v58, %v494_v61  ;;  %v498_v15 = vrot.slane %v494_v61, 4  ;;  %313 = vst [vmem:[#allocation2 + $0x74] sm:$0x1] %v312_v10  ;;  %v512_v18 = vshll.u32 %v354_v45, 16 }
  0xc2   : > { %v5866_v19 = vcombine.low %v1017_v0, %v1027_v14  ;;  %v505_v24 = vor.u32 %v503_v62, %v502_v6  ;;  %v507_v51 = vrot.slane %v502_v6, 4  ;;  %v7951_v20 = vrot.slane %v509_v11, 7 }
  0xc3   : > { %v745_v31 = vsel %vm7645_vm8, %v497_v12, %v744_v7  ;;  %v517_v23 = vshrl.u32 %v7940_v16, 16  ;;  %v520_v40 = vshll.u32 %v7940_v16, 16  ;;  %v6041_v53 = vrot.slane %v3359_v57, 9 }
  0xc4   : > { %6540 = vmatprep.mubr.msk.bf16.mxu1 %vm1301_vm11, %v5866_v19  ;;  %v821_v29 = vld [vmem:[#allocation2 + $0x54] sm:$0xf]  ;;  %v822_v26 = vld [vmem:[#allocation2 + $0x58] sm:$0xf]  ;;  %v506_v28 = vsel %vm7653_vm10, %v498_v15, %v505_v24  ;;  %746 = vst [vmem:[#allocation2 + $0x60] sm:$0xf] %v745_v31  ;;  %v749_v32 = vsel %vm7615_vm4, %v507_v51, %v748_v9  ;;  %v7968_v45 = vor.u32 %v512_v18, %v7951_v20 }
  0xc5   : > { %v2647_v27 = vld [vmem:[#allocation2 + $0x54] sm:$0xf]  ;;  %v848_v46 = vld [vmem:[#allocation2 + $0x5c] sm:$0x1]  ;;  %v1029_v47 = vshrl.u32 %v821_v29, 16  ;;  %v1032_v38 = vshll.u32 %v821_v29, 16  ;;  %v7974_v48 = vsel %vm7789_vm15, %v6041_v53, %v3425_v3 }
  0xc6   : > { %v1038_v34 = vshll.u32 %v822_v26, 16  ;;  %v1042_v41 = vshrl.u32 %v822_v26, 16  ;;  %747 = vst.msk [vmem:[#allocation2 + $0x64] sm:$0xf] %vm216_vm0, %v506_v28  ;;  %750 = vst [vmem:[#allocation2 + $0x68] sm:$0x1] %v749_v32 }
  0xc7   : > { %v1048_v42 = vshll.u32 %v848_v46, 16  ;;  %v7963_v33 = vld [vmem:[#allocation2 + $0x58] sm:$0xf]  ;;  %v7965_v39 = vld [vmem:[#allocation2 + $0x5c] sm:$0x1]  ;;  %v2822_v43 = vshrl.u32 %v2647_v27, 16 }
  0xc8   : > { %v1031_v50 = vrot.slane %v1029_v47, 4  ;;  %v1034_v58 = vrot.slane %v1032_v38, 5  ;;  %v1040_v55 = vrot.slane %v1038_v34, 5  ;;  %v1044_v16 = vrot.slane %v1042_v41, 4 }
  0xc9   : > { %v1050_v57 = vrot.slane %v1048_v42, 5  ;;  %v2824_v60 = vrot.slane %v2822_v43, 4  ;;  %v2825_v61 = vshll.u32 %v2647_v27, 16  ;;  %v2831_v62 = vshll.u32 %v7963_v33, 16 }
  0xca   : > { %v1035_v7 = vor.u32 %v1034_v58, %v1031_v50  ;;  %v1045_v63 = vor.u32 %v1044_v16, %v1040_v55  ;;  %v2835_v0 = vshrl.u32 %v7963_v33, 16  ;;  %v2841_v6 = vshll.u32 %v7965_v39, 16 }
  0xcb   : > { %v2827_v9 = vrot.slane %v2825_v61, 5  ;;  %v2833_v10 = vrot.slane %v2831_v62, 5  ;;  %v515_v11 = vrot.slane %v7951_v20, 4  ;;  %v7980_v14 = vrot.slane %v517_v23, 7  ;;  %v2650_v24 = vld [vmem:[#allocation2 + $0x60] sm:$0xf] }
  0xcc   : > { %v1036_v12 = vrot.slane %v1035_v7, 4  ;;  %v1046_v15 = vrot.slane %v1045_v63, 4  ;;  %v2837_v18 = vrot.slane %v2835_v0, 4  ;;  %v2843_v19 = vrot.slane %v2841_v6, 5  ;;  %v823_v46 = vld [vmem:[#allocation2 + $0x60] sm:$0xf] }
  0xcd   : > { %v2828_v51 = vor.u32 %v2827_v9, %v2824_v60  ;;  %v7982_v31 = vld [vmem:[#allocation2 + $0x64] sm:$0xf]  ;;  %v7984_v53 = vld [vmem:[#allocation2 + $0x68] sm:$0x1]  ;;  %v2846_v29 = vshrl.u32 %v2650_v24, 16  ;;  %v2849_v26 = vshll.u32 %v2650_v24, 16  ;;  %v522_v27 = vor.u32 %v520_v40, %v7980_v14 }
  0xce   : > { %v1041_v28 = vsel %vm7667_vm12, %v1036_v12, %v1040_v55  ;;  %v1051_v20 = vsel %vm7667_vm12, %v1046_v15, %v1050_v57  ;;  %v2838_v23 = vor.u32 %v2837_v18, %v2833_v10  ;;  %v2855_v32 = vshll.u32 %v7982_v31, 16  ;;  %v824_v42 = vld [vmem:[#allocation2 + $0x64] sm:$0xf]  ;;  %v849_v16 = vld [vmem:[#allocation2 + $0x68] sm:$0x1] }
  0xcf   : > { %v5867_v47 = vcombine.low %v1041_v28, %v1051_v20  ;;  %v2829_v38 = vrot.slane %v2828_v51, 4  ;;  %v2848_v34 = vrot.slane %v2846_v29, 4  ;;  %v2851_v41 = vrot.slane %v2849_v26, 5  ;;  %v751_v62 = vld [vmem:[#allocation2 + $0x6c] sm:$0xf] }
  0xd0   : > { %v2839_v43 = vrot.slane %v2838_v23, 4  ;;  %v2857_v50 = vrot.slane %v2855_v32, 5  ;;  %v2859_v58 = vshrl.u32 %v7982_v31, 16  ;;  %v2865_v40 = vshll.u32 %v7984_v53, 16  ;;  %v755_v9 = vld [vmem:[#allocation2 + $0x74] sm:$0x1] }
  0xd1   : > { %6541 = vmatmul.mubr.msk.bf16.gmra.mrb[12].mxu1 %vm1301_vm11, %v5867_v47  ;;  %v2834_v55 = vsel %vm7667_vm12, %v2829_v38, %v2833_v10  ;;  %v2852_v57 = vor.u32 %v2851_v41, %v2848_v34  ;;  %v1053_v60 = vshrl.u32 %v823_v46, 16  ;;  %v1056_v61 = vshll.u32 %v823_v46, 16  ;;  %v3360_v12 = vld [vmem:[#allocation2 + $0x18] sm:$0xe]  ;;  %v258_v29 = vld [vmem:[#allocation2 + $0x78] sm:$0x1] }
  0xd2   : > { %v2844_v7 = vsel %vm7667_vm12, %v2839_v43, %v2843_v19  ;;  %v2861_v63 = vrot.slane %v2859_v58, 4  ;;  %v2867_v0 = vrot.slane %v2865_v40, 5  ;;  %v1062_v6 = vshll.u32 %v824_v42, 16  ;;  %v314_v26 = vld [vmem:[#allocation2 + $0x80] sm:$0x1] }
  0xd3   : > { %v6014_v15 = vcombine.low %v2834_v55, %v2844_v7  ;;  %v2853_v18 = vrot.slane %v2852_v57, 4  ;;  %v1055_v24 = vrot.slane %v1053_v60, 4  ;;  %v1058_v51 = vrot.slane %v1056_v61, 5  ;;  %v356_v38 = vld [vmem:[%s7600_s26 + $0x48] sm:$0xf] }
  0xd4   : > { %v2862_v10 = vor.u32 %v2861_v63, %v2857_v50  ;;  %v1064_v28 = vrot.slane %v1062_v6, 5  ;;  %v1066_v20 = vshrl.u32 %v824_v42, 16  ;;  %v1072_v23 = vshll.u32 %v849_v16, 16  ;;  %v357_v58 = vld [vmem:[%s7600_s26 + $0x4c] sm:$0xf] }
  0xd5   : > { %6676 = vmatprep.mubr.msk.bf16.mxu0 %vm1301_vm11, %v6014_v15  ;;  %v2858_v19 = vsel %vm7667_vm12, %v2853_v18, %v2857_v50  ;;  %v1059_v32 = vor.u32 %v1058_v51, %v1055_v24  ;;  %v523_v46 = vsel %vm7653_vm10, %v515_v11, %v522_v27  ;;  %v524_v47 = vrot.slane %v7980_v14, 4  ;;  %v261_v40 = vld [vmem:[#allocation2 + $0x84] sm:$0x1]  ;;  %v317_v16 = vld [vmem:[#allocation2 + $0x8c] sm:$0x1] }
  0xd6   : > { %v2863_v34 = vrot.slane %v2862_v10, 4  ;;  %v1068_v41 = vrot.slane %v1066_v20, 4  ;;  %v1074_v43 = vrot.slane %v1072_v23, 5  ;;  %v752_v42 = vsel %vm7645_vm8, %v7968_v45, %v751_v62  ;;  %754 = vst.msk [vmem:[#allocation2 + $0x70] sm:$0xf] %vm216_vm0, %v523_v46 }
  0xd7   : > { %v1060_v50 = vrot.slane %v1059_v32, 4  ;;  %753 = vst [vmem:[#allocation2 + $0x6c] sm:$0xf] %v752_v42  ;;  %v756_v11 = vsel %vm7615_vm4, %v524_v47, %v755_v9  ;;  %v3427_v14 = vrot.slane %v3425_v3, 4  ;;  %v6042_v27 = vrot.slane %v3360_v12, 9 }
  0xd8   : > { %v8016_v55 = vld [vmem:[%s7600_s26 + $0x50] sm:$0xf]  ;;  %v2868_v45 = vsel %vm7667_vm12, %v2863_v34, %v2867_v0  ;;  %v1069_v57 = vor.u32 %v1068_v41, %v1064_v28  ;;  %757 = vst [vmem:[#allocation2 + $0x74] sm:$0x1] %v756_v11  ;;  %v259_v60 = vsel %vm7615_vm4, 0, %v258_v29  ;;  %v315_v61 = vsel %vm7620_vm5, 0, %v314_v26 }
  0xd9   : > { %v6015_v62 = vcombine.low %v2858_v19, %v2868_v45  ;;  %v1065_v44 = vsel %vm7667_vm12, %v1060_v50, %v1064_v28  ;;  %v3429_v3 = vsel %vm7789_vm15, %v3427_v14, %v3428_v4  ;;  %v3433_v7 = vsel %vm7789_vm15, %v6042_v27, %v3432_v17  ;;  %260 = vst [vmem:[#allocation2 + $0x78] sm:$0x1] %v259_v60  ;;  %v8037_v12 = vld [vmem:[%s7600_s26 + $0x54] sm:$0xf] }
  0xda   : > { %316 = vst [vmem:[#allocation2 + $0x80] sm:$0x1] %v315_v61  ;;  %v1070_v63 = vrot.slane %v1069_v57, 4  ;;  %v6057_v0 = vcombine.low %v7974_v48, %v3429_v3  ;;  %v6058_v6 = vcombine.low %v3433_v7, %v7813_v13  ;;  %v526_v9 = vshrl.u32 %v356_v38, 16  ;;  %v7164_v57 = vld [vmem:[#allocation6 + $0x38] sm:$0xff]  }
  0xdb   : > { %6677 = vmatmul.mubr.msk.bf16.gmra.mrb[12].mxu0 %vm1301_vm11, %v6015_v62  ;;  %v529_v52 = vshll.u32 %v356_v38, 16  ;;  %v534_v15 = vshrl.u32 %v357_v58, 16  ;;  %v537_v4 = vshll.u32 %v357_v58, 16  ;;  %v262_v5 = vsel %vm7615_vm4, 0, %v261_v40  ;;  %v3362_v3 = vld [vmem:[#allocation2 + $0x30] sm:$0xe] }
  0xdc   : > { %v1075_v17 = vsel %vm7667_vm12, %v1070_v63, %v1074_v43  ;;  %6698 = vmatprep.mubr.msk.bf16.mxu0 %vm1301_vm11, %v6057_v0  ;;  %v528_v18 = vrot.slane %v526_v9, 7  ;;  %263 = vst [vmem:[#allocation2 + $0x84] sm:$0x1] %v262_v5  ;;  %v318_v13 = vsel %vm7620_vm5, 0, %v317_v16  ;;  %v543_v48 = vshrl.u32 %v8016_v55, 16  ;;  %v7198_v5 = vld [vmem:[#allocation6 + $0x30] sm:$0xff]  }
  0xdd   : > { %v5868_v24 = vcombine.low %v1065_v44, %v1075_v17  ;;  %v826_v51 = vld [vmem:[#allocation2 + $0x70] sm:$0xf]  ;;  %v536_v29 = vrot.slane %v534_v15, 7  ;;  %319 = vst [vmem:[#allocation2 + $0x8c] sm:$0x1] %v318_v13  ;;  %v546_v26 = vshll.u32 %v8016_v55, 16 }
  0xde   : > { %v551_v10 = vshrl.u32 %v8037_v12, 16  ;;  %v825_v28 = vld [vmem:[#allocation2 + $0x6c] sm:$0xf]  ;;  %v1086_v20 = vshll.u32 %v826_v51, 16  ;;  %v1090_v23 = vshrl.u32 %v826_v51, 16  ;;  %v531_v19 = vor.u32 %v529_v52, %v528_v18 }
  0xdf   : > { %v532_v32 = vrot.slane %v528_v18, 4  ;;  %6544 = vmatprep.mubr.msk.bf16.mxu1 %vm1301_vm11, %v5868_v24  ;;  %v850_v46 = vld [vmem:[#allocation2 + $0x74] sm:$0x1]  ;;  %v1077_v47 = vshrl.u32 %v825_v28, 16  ;;  %v1080_v38 = vshll.u32 %v825_v28, 16  ;;  %v539_v34 = vor.u32 %v537_v4, %v536_v29 }
  0xe0   : > { %v541_v41 = vrot.slane %v536_v29, 4  ;;  %v3361_v43 = vld [vmem:[#allocation2 + $0x24] sm:$0xe]  ;;  %v1088_v42 = vrot.slane %v1086_v20, 5  ;;  %v1092_v58 = vrot.slane %v1090_v23, 4  ;;  %v1096_v40 = vshll.u32 %v850_v46, 16 }
  0xe1   : > { %v758_v50 = vld [vmem:[#allocation2 + $0x78] sm:$0xf]  ;;  %v545_v11 = vrot.slane %v543_v48, 7  ;;  %v1079_v14 = vrot.slane %v1077_v47, 4  ;;  %v1082_v27 = vrot.slane %v1080_v38, 5  ;;  %v540_v16 = vsel %vm7653_vm10, %v532_v32, %v539_v34 }
  0xe2   : > { %v759_v55 = vsel %vm7645_vm8, %v531_v19, %v758_v50  ;;  %v762_v45 = vld [vmem:[#allocation2 + $0x80] sm:$0x1]  ;;  %v1093_v60 = vor.u32 %v1092_v58, %v1088_v42  ;;  %v1098_v61 = vrot.slane %v1096_v40, 5  ;;  %761 = vst.msk [vmem:[#allocation2 + $0x7c] sm:$0xf] %vm216_vm0, %v540_v16  ;;  %v553_v0 = vrot.slane %v551_v10, 7 }
  0xe3   : > { %760 = vst [vmem:[#allocation2 + $0x78] sm:$0xf] %v759_v55  ;;  %v763_v62 = vsel %vm7615_vm4, %v541_v41, %v762_v45  ;;  %v548_v44 = vor.u32 %v546_v26, %v545_v11  ;;  %v1083_v7 = vor.u32 %v1082_v27, %v1079_v14  ;;  %6699 = vmatmul.mubr.msk.bf16.vlgmr.msra.gmra.mrb[0].mxu0 %vm1301_vm11, %v6058_v6  ;;  %v549_v63 = vrot.slane %v545_v11, 4  ;;  %v765_v52 = vld [vmem:[#allocation2 + $0x84] sm:$0xf] }
  0xe4   : > { %764 = vst [vmem:[#allocation2 + $0x80] sm:$0x1] %v763_v62  ;;  %v554_v9 = vshll.u32 %v8037_v12, 16  ;;  %v264_v15 = vld [vmem:[#allocation2 + $0x90] sm:$0x1]  ;;  %v1094_v4 = vrot.slane %v1093_v60, 4  ;;  %6731 = vmatpush3.bf16.msra.mxu0 %v7198_v5 }
  0xe5   : > { %v766_v17 = vsel %vm7645_vm8, %v548_v44, %v765_v52  ;;  %v769_v18 = vld [vmem:[#allocation2 + $0x8c] sm:$0x1]  ;;  %v6043_v13 = vrot.slane %v3361_v43, 9  ;;  %v3439_v48 = vrot.slane %v7815_v21, 5  ;;  %v1084_v24 = vrot.slane %v1083_v7, 4  ;;  %6764 = vmatprep.subr.bf16.mxu0 %v7164_v57 }
  0xe6   : > { %v556_v6 = vor.u32 %v554_v9, %v553_v0  ;;  %v558_v51 = vrot.slane %v553_v0, 4  ;;  %767 = vst [vmem:[#allocation2 + $0x84] sm:$0xf] %v766_v17  ;;  %v3442_v29 = vrot.slane %v7817_v8, 5  ;;  %v1099_v12 = vsel %vm7667_vm12, %v1094_v4, %v1098_v61  ;;  %v320_v20 = vld [vmem:[#allocation2 + $0x98] sm:$0x1] }
  0xe7   : > { %v3440_v26 = vsel %vm7789_vm15, %v6043_v13, %v3439_v48  ;;  %v3441_v10 = vrot.slane %v3439_v48, 4  ;;  %v6044_v28 = vrot.slane %v3362_v3, 9  ;;  %v1089_v21 = vsel %vm7667_vm12, %v1084_v24, %v1088_v42  ;;  %v360_v32 = vld [vmem:[%s7600_s26 + $0x58] sm:$0xf]  ;;  %v361_v45 = vld [vmem:[%s7600_s26 + $0x5c] sm:$0xf] }
  0xe8   : > { %v557_v23 = vsel %vm7653_vm10, %v549_v63, %v556_v6  ;;  %v770_v19 = vsel %vm7615_vm4, %v558_v51, %v769_v18  ;;  %v3446_v8 = vrot.slane %v7828_v49, 5  ;;  %v5869_v46 = vcombine.low %v1089_v21, %v1099_v12  ;;  %v267_v6 = vld [vmem:[#allocation2 + $0x9c] sm:$0x1] }
  0xe9   : > { %768 = vst.msk [vmem:[#allocation2 + $0x88] sm:$0xf] %vm216_vm0, %v557_v23  ;;  %771 = vst [vmem:[#allocation2 + $0x8c] sm:$0x1] %v770_v19  ;;  %v3443_v47 = vsel %vm7789_vm15, %v3441_v10, %v3442_v29  ;;  %v3449_v38 = vrot.slane %v7830_v54, 5  ;;  %v265_v34 = vsel %vm7615_vm4, 0, %v264_v15 }
  0xea   : > { %v8082_v41 = vld [vmem:[#allocation2 + $0x78] sm:$0xf]  ;;  %v8084_v43 = vld [vmem:[#allocation2 + $0x7c] sm:$0xf]  ;;  %v6059_v42 = vcombine.low %v3440_v26, %v3443_v47  ;;  %v3447_v49 = vsel %vm7789_vm15, %v6044_v28, %v3446_v8  ;;  %v3448_v58 = vrot.slane %v3446_v8, 4  ;;  %v321_v40 = vsel %vm7620_vm5, 0, %v320_v20  ;;  %6545 = vmatmul.mubr.msk.bf16.gmra.mrb[16].mxu1 %vm1301_vm11, %v5869_v46 }
  0xeb   : > { %266 = vst [vmem:[#allocation2 + $0x90] sm:$0x1] %v265_v34  ;;  %v851_v54 = vld [vmem:[#allocation2 + $0x80] sm:$0x1]  ;;  %v1101_v50 = vshrl.u32 %v8082_v41, 16  ;;  %v1104_v11 = vshll.u32 %v8082_v41, 16 }
  0xec   : > { %v1110_v14 = vshll.u32 %v8084_v43, 16  ;;  %v1114_v27 = vshrl.u32 %v8084_v43, 16  ;;  %322 = vst [vmem:[#allocation2 + $0x98] sm:$0x1] %v321_v40  ;;  %v1120_v16 = vshll.u32 %v851_v54, 16  ;;  %6702 = vmatprep.mubr.msk.bf16.mxu0 %vm1301_vm11, %v6059_v42  ;;  %v3450_v55 = vsel %vm7789_vm15, %v3448_v58, %v3449_v38 }
  0xed   : > { %v560_v57 = vshrl.u32 %v360_v32, 16  ;;  %v563_v60 = vshll.u32 %v360_v32, 16  ;;  %v1103_v61 = vrot.slane %v1101_v50, 4  ;;  %v1106_v62 = vrot.slane %v1104_v11, 5  ;;  %v8099_v7 = vld [vmem:[#allocation2 + $0x84] sm:$0xf] }
  0xee   : > { %v1112_v44 = vrot.slane %v1110_v14, 5  ;;  %v1116_v3 = vrot.slane %v1114_v27, 4  ;;  %v1122_v63 = vrot.slane %v1120_v16, 5  ;;  %v1125_v0 = vshrl.u32 %v8099_v7, 16  ;;  %v323_v10 = vld [vmem:[#allocation2 + $0xa4] sm:$0x1] }
  0xef   : > { %v1128_v9 = vshll.u32 %v8099_v7, 16  ;;  %v6060_v52 = vcombine.low %v3447_v49, %v3450_v55  ;;  %v1107_v15 = vor.u32 %v1106_v62, %v1103_v61  ;;  %v562_v5 = vrot.slane %v560_v57, 7  ;;  %v362_v28 = vld [vmem:[%s7600_s26 + $0x60] sm:$0xf]  ;;  %v363_v32 = vld [vmem:[%s7600_s26 + $0x64] sm:$0xf] }
  0xf0   : > { %v1117_v4 = vor.u32 %v1116_v3, %v1112_v44  ;;  %v568_v17 = vshrl.u32 %v361_v45, 16  ;;  %v8103_v18 = vld [vmem:[#allocation2 + $0x88] sm:$0xf]  ;;  %v852_v13 = vld [vmem:[#allocation2 + $0x8c] sm:$0x1]  ;;  %v1127_v48 = vrot.slane %v1125_v0, 4 }
  0xf1   : > { %v1130_v24 = vrot.slane %v1128_v9, 5  ;;  %6703 = vmatmul.mubr.msk.bf16.gmra.mrb[4].mxu0 %vm1301_vm11, %v6060_v52  ;;  %v1108_v51 = vrot.slane %v1107_v15, 4  ;;  %v1134_v12 = vshll.u32 %v8103_v18, 16  ;;  %v1138_v26 = vshrl.u32 %v8103_v18, 16  ;;  %v3363_v49 = vld [vmem:[#allocation2 + $0x3c] sm:$0xe] }
  0xf2   : > { %v1118_v29 = vrot.slane %v1117_v4, 4  ;;  %v1144_v21 = vshll.u32 %v852_v13, 16  ;;  %v565_v23 = vor.u32 %v563_v60, %v562_v5  ;;  %v566_v19 = vrot.slane %v562_v5, 4  ;;  %v772_v8 = vld [vmem:[#allocation2 + $0x90] sm:$0xf] }
  0xf3   : > { %v1131_v20 = vor.u32 %v1130_v24, %v1127_v48  ;;  %v1113_v46 = vsel %vm7667_vm12, %v1108_v51, %v1112_v44  ;;  %v1136_v38 = vrot.slane %v1134_v12, 5  ;;  %v1140_v34 = vrot.slane %v1138_v26, 4  ;;  %v776_v42 = vld [vmem:[#allocation2 + $0x98] sm:$0x1]  ;;  %v3364_v4 = vld [vmem:[#allocation2 + $0x48] sm:$0xe] }
  0xf4   : > { %v1123_v47 = vsel %vm7667_vm12, %v1118_v29, %v1122_v63  ;;  %v1146_v54 = vrot.slane %v1144_v21, 5  ;;  %v570_v50 = vrot.slane %v568_v17, 7  ;;  %v571_v14 = vshll.u32 %v361_v45, 16  ;;  %v270_v63 = vld [vmem:[#allocation2 + $0xa8] sm:$0x1] }
  0xf5   : > { %v5870_v58 = vcombine.low %v1113_v46, %v1123_v47  ;;  %v1132_v40 = vrot.slane %v1131_v20, 4  ;;  %v1141_v11 = vor.u32 %v1140_v34, %v1136_v38  ;;  %v773_v27 = vsel %vm7645_vm8, %v565_v23, %v772_v8  ;;  %v326_v5 = vld [vmem:[#allocation2 + $0xb0] sm:$0x1]  ;;  %v365_v23 = vld [vmem:[%s7600_s26 + $0x6c] sm:$0xf] }
  0xf6   : > { %v268_v16 = vsel %vm7615_vm4, 0, %v267_v6  ;;  %v575_v57 = vrot.slane %v570_v50, 4  ;;  %774 = vst [vmem:[#allocation2 + $0x90] sm:$0xf] %v773_v27  ;;  %v324_v60 = vsel %vm7620_vm5, 0, %v323_v10  ;;  %v577_v61 = vshrl.u32 %v362_v28, 16 }
  0xf7   : > { %6548 = vmatprep.mubr.msk.bf16.mxu1 %vm1301_vm11, %v5870_v58  ;;  %v1137_v55 = vsel %vm7667_vm12, %v1132_v40, %v1136_v38  ;;  %269 = vst [vmem:[#allocation2 + $0x9c] sm:$0x1] %v268_v16  ;;  %v1142_v62 = vrot.slane %v1141_v11, 4  ;;  %v573_v45 = vor.u32 %v571_v14, %v570_v50  ;;  %325 = vst [vmem:[#allocation2 + $0xa4] sm:$0x1] %v324_v60  ;;  %v580_v44 = vshll.u32 %v362_v28, 16 }
  0xf8   : > { %v585_v3 = vshrl.u32 %v363_v32, 16  ;;  %v777_v0 = vsel %vm7615_vm4, %v575_v57, %v776_v42  ;;  %v579_v9 = vrot.slane %v577_v61, 7  ;;  %v588_v52 = vshll.u32 %v363_v32, 16  ;;  %v364_v6 = vld [vmem:[%s7600_s26 + $0x68] sm:$0xf] }
  0xf9   : > { %v6045_v15 = vrot.slane %v3363_v49, 9  ;;  %v1147_v17 = vsel %vm7667_vm12, %v1142_v62, %v1146_v54  ;;  %v574_v13 = vsel %vm7653_vm10, %v566_v19, %v573_v45  ;;  %778 = vst [vmem:[#allocation2 + $0x98] sm:$0x1] %v777_v0  ;;  %v3453_v24 = vrot.slane %v7885_v25, 5  ;;  %v273_v54 = vld [vmem:[#allocation2 + $0xb4] sm:$0x1] }
  0xfa   : > { %v587_v48 = vrot.slane %v585_v3, 7  ;;  %v5871_v51 = vcombine.low %v1137_v55, %v1147_v17  ;;  %775 = vst.msk [vmem:[#allocation2 + $0x94] sm:$0xf] %vm216_vm0, %v574_v13  ;;  %v582_v29 = vor.u32 %v580_v44, %v579_v9  ;;  %v583_v12 = vrot.slane %v579_v9, 4  ;;  %v329_v16 = vld [vmem:[#allocation2 + $0xbc] sm:$0x1] }
  0xfb   : > { %v3456_v26 = vrot.slane %v7899_v22, 5  ;;  %v3454_v20 = vsel %vm7789_vm15, %v6045_v15, %v3453_v24  ;;  %v3455_v21 = vrot.slane %v3453_v24, 4  ;;  %v6046_v19 = vrot.slane %v3364_v4, 9 }
  0xfc   : > { %v590_v10 = vor.u32 %v588_v52, %v587_v48  ;;  %v592_v28 = vrot.slane %v587_v48, 4  ;;  %6549 = vmatmul.mubr.msk.bf16.gmra.mrb[20].mxu1 %vm1301_vm11, %v5871_v51  ;;  %v3460_v25 = vrot.slane %v7906_v36, 5  ;;  %v3463_v8 = vrot.slane %v7908_v37, 5 }
  0xfd   : > { %v271_v32 = vsel %vm7615_vm4, 0, %v270_v63  ;;  %v8141_v46 = vld [vmem:[#allocation2 + $0x90] sm:$0xf]  ;;  %v3457_v38 = vsel %vm7789_vm15, %v3455_v21, %v3456_v26  ;;  %v327_v34 = vsel %vm7620_vm5, 0, %v326_v5  ;;  %v594_v42 = vshrl.u32 %v364_v6, 16 }
  0xfe   : > { %v591_v22 = vsel %vm7653_vm10, %v583_v12, %v590_v10  ;;  %v779_v47 = vld [vmem:[#allocation2 + $0x9c] sm:$0xf]  ;;  %272 = vst [vmem:[#allocation2 + $0xa8] sm:$0x1] %v271_v32  ;;  %v1149_v36 = vshrl.u32 %v8141_v46, 16  ;;  %v1152_v37 = vshll.u32 %v8141_v46, 16  ;;  %v6061_v40 = vcombine.low %v3454_v20, %v3457_v38 }
  0xff   : > { %v780_v49 = vsel %vm7645_vm8, %v582_v29, %v779_v47  ;;  %782 = vst.msk [vmem:[#allocation2 + $0xa0] sm:$0xf] %vm216_vm0, %v591_v22  ;;  %v783_v58 = vld [vmem:[#allocation2 + $0xa4] sm:$0x1]  ;;  %328 = vst [vmem:[#allocation2 + $0xb0] sm:$0x1] %v327_v34  ;;  %v3461_v11 = vsel %vm7789_vm15, %v6046_v19, %v3460_v25 }
 0x100   : > { %781 = vst [vmem:[#allocation2 + $0x9c] sm:$0xf] %v780_v49  ;;  %v784_v50 = vsel %vm7615_vm4, %v592_v28, %v783_v58  ;;  %v3462_v14 = vrot.slane %v3460_v25, 4  ;;  %v596_v27 = vrot.slane %v594_v42, 7  ;;  %v853_v55 = vld [vmem:[#allocation2 + $0x98] sm:$0x1]  ;;  %6706 = vmatprep.mubr.msk.bf16.mxu0 %vm1301_vm11, %v6061_v40 }
 0x101   : > { %v1151_v57 = vrot.slane %v1149_v36, 4  ;;  %v1154_v60 = vrot.slane %v1152_v37, 5  ;;  %785 = vst [vmem:[#allocation2 + $0xa4] sm:$0x1] %v784_v50  ;;  %v597_v61 = vshll.u32 %v364_v6, 16  ;;  %v602_v62 = vshrl.u32 %v365_v23, 16 }
 0x102   : > { %v8159_v45 = vld [vmem:[#allocation2 + $0x94] sm:$0xf]  ;;  %v1168_v44 = vshll.u32 %v853_v55, 16  ;;  %v3464_v3 = vsel %vm7789_vm15, %v3462_v14, %v3463_v8  ;;  %v600_v63 = vrot.slane %v596_v27, 4  ;;  %v605_v0 = vshll.u32 %v365_v23, 16 }
 0x103   : > { %v1155_v9 = vor.u32 %v1154_v60, %v1151_v57  ;;  %v1158_v52 = vshll.u32 %v8159_v45, 16  ;;  %v1162_v15 = vshrl.u32 %v8159_v45, 16  ;;  %v6062_v4 = vcombine.low %v3461_v11, %v3464_v3  ;;  %v366_v5 = vld [vmem:[%s7600_s26 + $0x70] sm:$0xf]  ;;  %v367_v49 = vld [vmem:[%s7600_s26 + $0x74] sm:$0xf] }
 0x104   : > { %v1170_v17 = vrot.slane %v1168_v44, 5  ;;  %v599_v13 = vor.u32 %v597_v61, %v596_v27  ;;  %v604_v48 = vrot.slane %v602_v62, 7  ;;  %v274_v24 = vsel %vm7615_vm4, 0, %v273_v54  ;;  %v3365_v11 = vld [vmem:[#allocation2 + $0x54] sm:$0xe] }
 0x105   : > { %v1156_v6 = vrot.slane %v1155_v9, 4  ;;  %v1160_v51 = vrot.slane %v1158_v52, 5  ;;  %v1164_v29 = vrot.slane %v1162_v15, 4  ;;  %6707 = vmatmul.mubr.msk.bf16.gmra.mrb[8].mxu0 %vm1301_vm11, %v6062_v4  ;;  %v786_v12 = vld [vmem:[#allocation2 + $0xa8] sm:$0xf]  ;;  %v330_v26 = vsel %vm7620_vm5, 0, %v329_v16 }
 0x106   : > { %275 = vst [vmem:[#allocation2 + $0xb4] sm:$0x1] %v274_v24  ;;  %v8171_v10 = vld [vmem:[#allocation2 + $0xa0] sm:$0xf]  ;;  %v607_v28 = vor.u32 %v605_v0, %v604_v48  ;;  %v609_v20 = vrot.slane %v604_v48, 4  ;;  %v787_v21 = vsel %vm7645_vm8, %v599_v13, %v786_v12  ;;  %v611_v19 = vshrl.u32 %v366_v5, 16 }
 0x107   : > { %v790_v23 = vld [vmem:[#allocation2 + $0xb0] sm:$0x1]  ;;  %331 = vst [vmem:[#allocation2 + $0xbc] sm:$0x1] %v330_v26  ;;  %v1161_v25 = vsel %vm7667_vm12, %v1156_v6, %v1160_v51  ;;  %v1165_v8 = vor.u32 %v1164_v29, %v1160_v51  ;;  %v8177_v32 = vld [vmem:[#allocation2 + $0x9c] sm:$0xf] }
 0x108   : > { %v1182_v22 = vshll.u32 %v8171_v10, 16  ;;  %v1186_v47 = vshrl.u32 %v8171_v10, 16  ;;  %788 = vst [vmem:[#allocation2 + $0xa8] sm:$0xf] %v787_v21  ;;  %v854_v38 = vld [vmem:[#allocation2 + $0xa4] sm:$0x1]  ;;  %v608_v36 = vsel %vm7653_vm10, %v600_v63, %v607_v28  ;;  %v791_v37 = vsel %vm7615_vm4, %v609_v20, %v790_v23 }
 0x109   : > { %v1173_v34 = vshrl.u32 %v8177_v32, 16  ;;  %v1176_v42 = vshll.u32 %v8177_v32, 16  ;;  %v1166_v58 = vrot.slane %v1165_v8, 4  ;;  %v1192_v50 = vshll.u32 %v854_v38, 16  ;;  %789 = vst.msk [vmem:[#allocation2 + $0xac] sm:$0xf] %vm216_vm0, %v608_v36 }
 0x10a   : > { %v1184_v40 = vrot.slane %v1182_v22, 5  ;;  %v1188_v54 = vrot.slane %v1186_v47, 4  ;;  %792 = vst [vmem:[#allocation2 + $0xb0] sm:$0x1] %v791_v37  ;;  %v613_v16 = vrot.slane %v611_v19, 7  ;;  %v614_v55 = vshll.u32 %v366_v5, 16 }
 0x10b   : > { %v1175_v14 = vrot.slane %v1173_v34, 4  ;;  %v1178_v27 = vrot.slane %v1176_v42, 5  ;;  %v1171_v57 = vsel %vm7667_vm12, %v1166_v58, %v1170_v17  ;;  %v1194_v61 = vrot.slane %v1192_v50, 5  ;;  %v3366_v51 = vld [vmem:[#allocation2 + $0x60] sm:$0xe] }
 0x10c   : > { %v1189_v60 = vor.u32 %v1188_v54, %v1184_v40  ;;  %v619_v62 = vshrl.u32 %v367_v49, 16  ;;  %v5872_v44 = vcombine.low %v1161_v25, %v1171_v57  ;;  %v616_v63 = vor.u32 %v614_v55, %v613_v16  ;;  %v2654_v34 = vld [vmem:[#allocation2 + $0x70] sm:$0xf]  ;;  %v3367_v58 = vld [vmem:[#allocation2 + $0x6c] sm:$0xe] }
 0x10d   : > { %v1179_v3 = vor.u32 %v1178_v27, %v1175_v14  ;;  %v617_v0 = vrot.slane %v613_v16, 4  ;;  %v793_v9 = vld [vmem:[#allocation2 + $0xb4] sm:$0xf]  ;;  %v622_v4 = vshll.u32 %v367_v49, 16  ;;  %v6047_v13 = vrot.slane %v3365_v11, 9 }
 0x10e   : > { %v1190_v52 = vrot.slane %v1189_v60, 4  ;;  %v621_v15 = vrot.slane %v619_v62, 7  ;;  %6552 = vmatprep.mubr.msk.bf16.mxu1 %vm1301_vm11, %v5872_v44  ;;  %v794_v5 = vsel %vm7645_vm8, %v616_v63, %v793_v9  ;;  %v3467_v17 = vrot.slane %v7963_v33, 5  ;;  %v797_v20 = vld [vmem:[#allocation2 + $0xbc] sm:$0x1] }
 0x10f   : > { %v1180_v48 = vrot.slane %v1179_v3, 4  ;;  %v8192_v24 = vld [vmem:[#allocation2 + $0xa8] sm:$0xf]  ;;  %v3470_v6 = vrot.slane %v7965_v39, 5  ;;  %795 = vst [vmem:[#allocation2 + $0xb4] sm:$0xf] %v794_v5 }
 0x110   : > { %v1195_v29 = vsel %vm7667_vm12, %v1190_v52, %v1194_v61  ;;  %v1197_v12 = vshrl.u32 %v8192_v24, 16  ;;  %v1200_v26 = vshll.u32 %v8192_v24, 16  ;;  %v624_v28 = vor.u32 %v622_v4, %v621_v15  ;;  %v8204_v23 = vld [vmem:[#allocation2 + $0xac] sm:$0xf]  ;;  %v2655_v14 = vld [vmem:[#allocation2 + $0x74] sm:$0x1] }
 0x111   : > { %v1185_v21 = vsel %vm7667_vm12, %v1180_v48, %v1184_v40  ;;  %v8206_v19 = vld [vmem:[#allocation2 + $0xb0] sm:$0x1]  ;;  %v626_v33 = vrot.slane %v621_v15, 4  ;;  %v3468_v39 = vsel %vm7789_vm15, %v6047_v13, %v3467_v17  ;;  %v3469_v25 = vrot.slane %v3467_v17, 4 }
 0x112   : > { %v5873_v8 = vcombine.low %v1185_v21, %v1195_v29  ;;  %v1199_v22 = vrot.slane %v1197_v12, 4  ;;  %v1202_v47 = vrot.slane %v1200_v26, 5  ;;  %v1206_v38 = vshll.u32 %v8204_v23, 16  ;;  %v8236_v29 = vld [vmem:[#allocation2 + $0x7c] sm:$0xf] }
 0x113   : > { %v1210_v42 = vshrl.u32 %v8204_v23, 16  ;;  %v1216_v36 = vshll.u32 %v8206_v19, 16  ;;  %v625_v37 = vsel %vm7653_vm10, %v617_v0, %v624_v28  ;;  %v798_v49 = vsel %vm7615_vm4, %v626_v33, %v797_v20  ;;  %v3368_v21 = vld [vmem:[#allocation2 + $0x78] sm:$0xe] }
 0x114   : > { %6553 = vmatmul.mubr.msk.bf16.gmra.mrb[24].mxu1 %vm1301_vm11, %v5873_v8  ;;  %v1203_v40 = vor.u32 %v1202_v47, %v1199_v22  ;;  %v1208_v54 = vrot.slane %v1206_v38, 5  ;;  %796 = vst.msk [vmem:[#allocation2 + $0xb8] sm:$0xf] %vm216_vm0, %v625_v37  ;;  %799 = vst [vmem:[#allocation2 + $0xbc] sm:$0x1] %v798_v49  ;;  %v3471_v50 = vsel %vm7789_vm15, %v3469_v25, %v3470_v6  ;;  %v6048_v11 = vrot.slane %v3366_v51, 9 }
 0x115   : > { %v1212_v27 = vrot.slane %v1210_v42, 4  ;;  %v1218_v16 = vrot.slane %v1216_v36, 5  ;;  %v6063_v55 = vcombine.low %v3468_v39, %v3471_v50  ;;  %v3474_v57 = vrot.slane %v7982_v31, 5  ;;  %v8249_v22 = vld [vmem:[#allocation2 + $0x80] sm:$0x1] }
 0x116   : > { %v1204_v60 = vrot.slane %v1203_v40, 4  ;;  %v3477_v61 = vrot.slane %v7984_v53, 5  ;;  %v6049_v62 = vrot.slane %v3367_v58, 9  ;;  %v3481_v44 = vrot.slane %v2654_v34, 5  ;;  %v8223_v63 = vld [vmem:[#allocation2 + $0xb4] sm:$0xf] }
 0x117   : > { %v1213_v3 = vor.u32 %v1212_v27, %v1208_v54  ;;  %6710 = vmatprep.mubr.msk.bf16.mxu0 %vm1301_vm11, %v6063_v55  ;;  %v3475_v0 = vsel %vm7789_vm15, %v6048_v11, %v3474_v57  ;;  %v3476_v9 = vrot.slane %v3474_v57, 4  ;;  %v3484_v52 = vrot.slane %v2655_v14, 5  ;;  %v3369_v47 = vld [vmem:[#allocation2 + $0x84] sm:$0xe]  ;;  %v2660_v42 = vld [vmem:[#allocation2 + $0x88] sm:$0xf] }
 0x118   : > { %v1221_v15 = vshrl.u32 %v8223_v63, 16  ;;  %v1224_v4 = vshll.u32 %v8223_v63, 16  ;;  %v1209_v31 = vsel %vm7667_vm12, %v1204_v60, %v1208_v54  ;;  %v3483_v48 = vrot.slane %v3481_v44, 4  ;;  %v2661_v40 = vld [vmem:[#allocation2 + $0x8c] sm:$0x1] }
 0x119   : > { %v1214_v53 = vrot.slane %v1213_v3, 4  ;;  %v3478_v13 = vsel %vm7789_vm15, %v3476_v9, %v3477_v61  ;;  %v3482_v51 = vsel %vm7789_vm15, %v6049_v62, %v3481_v44  ;;  %v6050_v58 = vrot.slane %v3368_v21, 9  ;;  %v2663_v11 = vld [vmem:[#allocation2 + $0x94] sm:$0xf]  ;;  %v3370_v14 = vld [vmem:[#allocation2 + $0x90] sm:$0xe] }
 0x11a   : > { %v1223_v5 = vrot.slane %v1221_v15, 4  ;;  %v1226_v17 = vrot.slane %v1224_v4, 5  ;;  %v6064_v6 = vcombine.low %v3475_v0, %v3478_v13  ;;  %v3485_v20 = vsel %vm7789_vm15, %v3483_v48, %v3484_v52  ;;  %v2664_v60 = vld [vmem:[#allocation2 + $0x98] sm:$0x1]  ;;  %v3371_v0 = vld [vmem:[#allocation2 + $0x9c] sm:$0xe] }
 0x11b   : > { %v1219_v12 = vsel %vm7667_vm12, %v1214_v53, %v1218_v16  ;;  %v8240_v26 = vld [vmem:[#allocation2 + $0xb8] sm:$0xf]  ;;  %v8242_v28 = vld [vmem:[#allocation2 + $0xbc] sm:$0x1]  ;;  %v6065_v34 = vcombine.low %v3482_v51, %v3485_v20  ;;  %v3488_v54 = vrot.slane %v8236_v29, 5  ;;  %v3491_v50 = vrot.slane %v8249_v22, 5 }
 0x11c   : > { %v5874_v33 = vcombine.low %v1209_v31, %v1219_v12  ;;  %v1227_v39 = vor.u32 %v1226_v17, %v1223_v5  ;;  %v1230_v25 = vshll.u32 %v8240_v26, 16  ;;  %v1234_v8 = vshrl.u32 %v8240_v26, 16  ;;  %6711 = vmatmul.mubr.msk.bf16.gmra.mrb[12].mxu0 %vm1301_vm11, %v6064_v6  ;;  %v8262_v31 = vld [vmem:[#allocation2 + $0x4] sm:$0xf]  ;;  %v7200_v53 = vld [vmem:[#allocation2] sm:$0xf] }
 0x11d   : > { %v1240_v38 = vshll.u32 %v8242_v28, 16  ;;  %6714 = vmatprep.mubr.msk.bf16.mxu0 %vm1301_vm11, %v6065_v34  ;;  %v6051_v55 = vrot.slane %v3369_v47, 9  ;;  %v3495_v57 = vrot.slane %v2660_v42, 5  ;;  %v3489_v62 = vsel %vm7789_vm15, %v6050_v58, %v3488_v54  ;;  %v2666_v6 = vld [vmem:[#allocation2 + $0xa0] sm:$0xf] }
 0x11e   : > { %6556 = vmatprep.mubr.msk.bf16.mxu1 %vm1301_vm11, %v5874_v33  ;;  %v1228_v36 = vrot.slane %v1227_v39, 4  ;;  %v1232_v37 = vrot.slane %v1230_v25, 5  ;;  %v1236_v49 = vrot.slane %v1234_v8, 4  ;;  %v3490_v44 = vrot.slane %v3488_v54, 4  ;;  %v2667_v51 = vld [vmem:[#allocation2 + $0xa4] sm:$0x1] }
 0x11f   : > { %v1242_v16 = vrot.slane %v1240_v38, 5  ;;  %v3498_v3 = vrot.slane %v2661_v40, 5  ;;  %v3496_v52 = vsel %vm7789_vm15, %v6051_v55, %v3495_v57  ;;  %v3497_v15 = vrot.slane %v3495_v57, 4  ;;  %v2669_v39 = vld [vmem:[#allocation2 + $0xac] sm:$0xf] }
 0x120   : > { %v1237_v27 = vor.u32 %v1236_v49, %v1232_v37  ;;  %v1233_v61 = vsel %vm7667_vm12, %v1228_v36, %v1232_v37  ;;  %v6052_v4 = vrot.slane %v3370_v14, 9  ;;  %v5893_v13 = vcombine.low %v7200_v53, %v8262_v31  ;;  %v3372_v38 = vld [vmem:[#allocation2 + $0xa8] sm:$0xe]  ;;  %v276_v34 = vld [vmem:[#allocation2 + $0xc0] sm:$0x1] }
 0x121   : > { %v3492_v48 = vsel %vm7789_vm15, %v3490_v44, %v3491_v50  ;;  %v3502_v5 = vrot.slane %v2663_v11, 5  ;;  %v3505_v17 = vrot.slane %v2664_v60, 5  ;;  %v3499_v21 = vsel %vm7789_vm15, %v3497_v15, %v3498_v3  ;;  %v2670_v49 = vld [vmem:[#allocation2 + $0xb0] sm:$0x1]  ;;  %v2672_v58 = vld [vmem:[#allocation2 + $0xb8] sm:$0xf] }
 0x122   : > { %v1238_v9 = vrot.slane %v1237_v27, 4  ;;  %v6066_v20 = vcombine.low %v3489_v62, %v3492_v48  ;;  %v6053_v33 = vrot.slane %v3371_v0, 9  ;;  %v6067_v8 = vcombine.low %v3496_v52, %v3499_v21  ;;  %v332_v50 = vld [vmem:[#allocation2 + $0xc8] sm:$0x1]  ;;  %v368_v11 = vld [vmem:[%s7600_s26 + $0x78] sm:$0xf] }
 0x123   : > { %v3504_v47 = vrot.slane %v3502_v5, 4  ;;  %v3503_v42 = vsel %vm7789_vm15, %v6052_v4, %v3502_v5  ;;  %v3509_v36 = vrot.slane %v2666_v6, 5  ;;  %v3512_v37 = vrot.slane %v2667_v51, 5  ;;  %v7201_v14 = vld [vmem:[#allocation2 + $0xc] sm:$0xf] }
 0x124   : > { %v1243_v12 = vsel %vm7667_vm12, %v1238_v9, %v1242_v16  ;;  %6715 = vmatmul.mubr.msk.bf16.gmra.mrb[16].mxu0 %vm1301_vm11, %v6066_v20  ;;  %v3516_v54 = vrot.slane %v2669_v39, 5  ;;  %v8280_v27 = vld [vmem:[#allocation2 + $0x10] sm:$0xf]  ;;  %v7203_v55 = vld [vmem:[#allocation2 + $0x18] sm:$0xf]  ;;  %v6054_v9 = vrot.slane %v3372_v38, 9 }
 0x125   : > { %v5875_v25 = vcombine.low %v1233_v61, %v1243_v12  ;;  %6718 = vmatprep.mubr.msk.bf16.mxu0 %vm1301_vm11, %v6067_v8  ;;  %v3506_v40 = vsel %vm7789_vm15, %v3504_v47, %v3505_v17  ;;  %v5894_v16 = vcombine.low %v7201_v14, %v8280_v27  ;;  %v8283_v57 = vld [vmem:[#allocation2 + $0x1c] sm:$0xf]  ;;  %v3510_v61 = vsel %vm7789_vm15, %v6053_v33, %v3509_v36  ;;  %v3373_v3 = vld [vmem:[#allocation2 + $0xb4] sm:$0xe] }
 0x126   : > { %v5895_v60 = vcombine.low %v7203_v55, %v8283_v57  ;;  %v3511_v62 = vrot.slane %v3509_v36, 4  ;;  %v2673_v44 = vld [vmem:[#allocation2 + $0xbc] sm:$0x1]  ;;  %v6068_v0 = vcombine.low %v3503_v42, %v3506_v40  ;;  %v3519_v52 = vrot.slane %v2670_v49, 5  ;;  %v369_v4 = vld [vmem:[%s7600_s26 + $0x7c] sm:$0xf] }
 0x127   : > { %6557 = vmatmul.mubr.msk.bf16.gmra.mrb[28].mxu1 %vm1301_vm11, %v5875_v25  ;;  %v3523_v15 = vrot.slane %v2672_v58, 5  ;;  %v333_v48 = vsel %vm7620_vm5, 0, %v332_v50  ;;  %v628_v5 = vshrl.u32 %v368_v11, 16  ;;  %v3518_v6 = vrot.slane %v3516_v54, 4  ;;  %v8295_v8 = vld [vmem:[#allocation6 + $0x18] sm:$0xff]  }
 0x128   : > { %6562 = vmatprep.mubr.msk.bf16.mxu1 %vm1301_vm11, %v5893_v13  ;;  %v3513_v53 = vsel %vm7789_vm15, %v3511_v62, %v3512_v37  ;;  %v277_v13 = vsel %vm7615_vm4, 0, %v276_v34  ;;  %v6055_v51 = vrot.slane %v3373_v3, 9  ;;  %v3526_v12 = vrot.slane %v2673_v44, 5  ;;  %334 = vst [vmem:[#allocation2 + $0xc8] sm:$0x1] %v333_v48  ;;  %v7205_v37 = vld [vmem:[#allocation6 + $0x10] sm:$0xff]  }
 0x129   : > { %v6069_v17 = vcombine.low %v3510_v61, %v3513_v53  ;;  %278 = vst [vmem:[#allocation2 + $0xc0] sm:$0x1] %v277_v13  ;;  %v3525_v20 = vrot.slane %v3523_v15, 4  ;;  %v630_v21 = vrot.slane %v628_v5, 7  ;;  %v631_v33 = vshll.u32 %v368_v11, 16 }
 0x12a   : > { %v636_v39 = vshrl.u32 %v369_v4, 16  ;;  %v639_v25 = vshll.u32 %v369_v4, 16  ;;  %v3517_v34 = vsel %vm7789_vm15, %v6054_v9, %v3516_v54  ;;  %v3520_v42 = vsel %vm7789_vm15, %v3518_v6, %v3519_v52  ;;  %v7206_v55 = vld [vmem:[#allocation2 + $0x24] sm:$0xf]  ;;  %v8312_v61 = vld [vmem:[#allocation2 + $0x28] sm:$0xf] }
 0x12b   : > { %v634_v47 = vrot.slane %v630_v21, 4  ;;  %v633_v36 = vor.u32 %v631_v33, %v630_v21  ;;  %v3524_v49 = vsel %vm7789_vm15, %v6055_v51, %v3523_v15  ;;  %v3527_v58 = vsel %vm7789_vm15, %v3525_v20, %v3526_v12  ;;  %v8320_v9 = vld [vmem:[#allocation2 + $0x34] sm:$0xf]  ;;  %v279_v52 = vld [vmem:[#allocation2 + $0xcc] sm:$0x1] }
 0x12c   : > { %6719 = vmatmul.mubr.msk.bf16.gmra.mrb[20].mxu0 %vm1301_vm11, %v6068_v0  ;;  %v638_v38 = vrot.slane %v636_v39, 7  ;;  %v6070_v11 = vcombine.low %v3517_v34, %v3520_v42  ;;  %v6071_v62 = vcombine.low %v3524_v49, %v3527_v58  ;;  %v7208_v0 = vld [vmem:[#allocation2 + $0x30] sm:$0xf]  ;;  %v2903_v15 = vshll.u32 %v8236_v29, 16  ;;  %v7210_v4 = vld [vmem:[#allocation2 + $0x3c] sm:$0xf] }
 0x12d   : > { %6722 = vmatprep.mubr.msk.bf16.mxu0 %vm1301_vm11, %v6069_v17  ;;  %v5897_v35 = vcombine.low %v7208_v0, %v8320_v9  ;;  %v8328_v53 = vld [vmem:[#allocation2 + $0x40] sm:$0xf]  ;;  %v2907_v6 = vshrl.u32 %v8236_v29, 16  ;;  %v7212_v51 = vld [vmem:[#allocation2 + $0x48] sm:$0xf]  ;;  %v280_v29 = vsel %vm7615_vm4, 0, %v279_v52 }
 0x12e   : > { %v641_v40 = vor.u32 %v639_v25, %v638_v38  ;;  %v643_v50 = vrot.slane %v638_v38, 4  ;;  %v5898_v13 = vcombine.low %v7210_v4, %v8328_v53  ;;  %v8332_v12 = vld [vmem:[#allocation2 + $0x4c] sm:$0xf]  ;;  %v7163_v38 = vld [vmem:[#allocation2 + $0x18] sm:$0xff]   ;;  %v8342_v34 = vrot.slane %v2903_v15, 5  ;;  %v7165_v0 = vld [vmem:[#allocation2 + $0x24] sm:$0xff]  }
 0x12f   : > { %6563 = vmatmul.mubr.msk.bf16.vlgmr.msra.gmra.mrb[0].mxu1 %vm1301_vm11, %v5894_v16  ;;  %v804_v16 = vld [vmem:[#allocation2 + $0xc8] sm:$0x1]  ;;  %v5899_v20 = vcombine.low %v7212_v51, %v8332_v12  ;;  %v2909_v42 = vrot.slane %v2907_v6, 4  ;;  %281 = vst [vmem:[#allocation2 + $0xcc] sm:$0x1] %v280_v29  ;;  %v1859_v58 = vrot.slane %v8262_v31, 5  ;;  %v5903_v29 = vcombine.low %v8082_v41, %v8084_v43 }
 0x130   : > { %6595 = vmatpush3.bf16.msra.mxu1 %v7205_v37  ;;  %6566 = vmatprep.mubr.msk.bf16.mxu1 %vm1301_vm11, %v5895_v60  ;;  %v642_v54 = vsel %vm7653_vm10, %v634_v47, %v641_v40  ;;  %v800_v14 = vld [vmem:[#allocation2 + $0xc0] sm:$0xf]  ;;  %v5896_v60 = vcombine.low %v7206_v55, %v8312_v61  ;;  %v805_v3 = vsel %vm7615_vm4, %v643_v50, %v804_v16  ;;  %v1866_v37 = vrot.slane %v8280_v27, 5  ;;  %v7214_v50 = vld [vmem:[#allocation2 + $0x54] sm:$0xf] }
 0x131   : > { %6628 = vmatprep.subr.bf16.mxu1 %v8295_v8  ;;  %v801_v44 = vsel %vm7645_vm8, %v633_v36, %v800_v14  ;;  %803 = vst.msk [vmem:[#allocation2 + $0xc4] sm:$0xf] %vm216_vm0, %v642_v54  ;;  %806 = vst [vmem:[#allocation2 + $0xc8] sm:$0x1] %v805_v3  ;;  %v1806_v49 = vld [vmem:[#allocation2] sm:$0xe]  ;;  %v2910_v27 = vor.u32 %v2909_v42, %v8342_v34 }
 0x132   : > { %802 = vst [vmem:[#allocation2 + $0xc0] sm:$0xf] %v801_v44  ;;  %9653 = vst [vmem:[#allocation16_spill] sm:$0xff] %v8342_v34  ;;  %v2913_v40 = vshll.u32 %v8249_v22, 16  ;;  %v1807_v54 = vld [vmem:[#allocation2 + $0xc] sm:$0xe] }
 0x133   : > { %v1808_v14 = vld [vmem:[#allocation2 + $0x18] sm:$0xe]  ;;  %v1873_v16 = vrot.slane %v8283_v57, 5  ;;  %v7216_v55 = vld [vmem:[#allocation2 + $0x60] sm:$0xf]  ;;  %v5927_v52 = vrot.slane %v1807_v54, 9 }
 0x134   : > { %6723 = vmatmul.mubr.msk.bf16.gmra.mrb[24].mxu0 %vm1301_vm11, %v6070_v11  ;;  %v8349_v11 = vld [vmem:[#allocation2 + $0x58] sm:$0xf]  ;;  %v7219_v44 = vld [vmem:[#allocation2 + $0x14] sm:$0x1]  ;;  %v1868_v15 = vrot.slane %v1866_v37, 4  ;;  %v5928_v4 = vrot.slane %v1808_v14, 9 }
 0x135   : > { %6726 = vmatprep.mubr.msk.bf16.mxu0 %vm1301_vm11, %v6071_v62  ;;  %v5900_v1 = vcombine.low %v7214_v50, %v8349_v11  ;;  %v7218_v62 = vld [vmem:[#allocation2 + $0x8] sm:$0x1]  ;;  %v1869_v3 = vrot.slane %v7219_v44, 5  ;;  %v7166_v57 = vld [vmem:[#allocation2 + $0x30] sm:$0xff]   ;;  %v8361_v51 = vrot.slane %v2910_v27, 4  ;;  %v7167_v14 = vld [vmem:[#allocation2 + $0x3c] sm:$0xff]  }
 0x136   : > { %v1862_v22 = vrot.slane %v7218_v62, 5  ;;  %v8395_v43 = vsel %vm7789_vm15, %v5928_v4, %v1873_v16  ;;  %v7228_v4 = vld [vmem:[#allocation2 + $0x5c] sm:$0x1] }
 0x137   : > { %6567 = vmatmul.mubr.msk.bf16.gmra.mrb[4].mxu1 %vm1301_vm11, %v5896_v60  ;;  %v8355_v60 = vld [vmem:[#allocation2 + $0x64] sm:$0xf]  ;;  %9655 = vst [vmem:[#allocation18_spill] sm:$0xff] %v8361_v51  ;;  %v8391_v41 = vsel %vm7789_vm15, %v1868_v15, %v1869_v3  ;;  %v7168_v3 = vld [vmem:[#allocation2 + $0x48] sm:$0xff]  }
 0x138   : > { %6570 = vmatprep.mubr.msk.bf16.mxu1 %vm1301_vm11, %v5897_v35  ;;  %v2675_v30 = vld [vmem:[#allocation2 + $0xc4] sm:$0xf]  ;;  %v2676_v48 = vld [vmem:[#allocation2 + $0xc8] sm:$0x1]  ;;  %v5901_v31 = vcombine.low %v7216_v55, %v8355_v60  ;;  %v5926_v35 = vrot.slane %v1806_v49, 9 }
 0x139   : > { %v3374_v5 = vld [vmem:[#allocation2 + $0xc0] sm:$0xe]  ;;  %v3530_v17 = vrot.slane %v2675_v30, 5  ;;  %v3533_v33 = vrot.slane %v2676_v48, 5  ;;  %v1861_v30 = vrot.slane %v1859_v58, 4  ;;  %v8358_v48 = vrot.slane %v2913_v40, 5 }
 0x13a   : > { %v6056_v21 = vrot.slane %v3374_v5, 9  ;;  %v1875_v5 = vrot.slane %v1873_v16, 4  ;;  %v1811_v49 = vld [vmem:[#allocation2 + $0x3c] sm:$0xe]  ;;  %v1894_v40 = vrot.slane %v8328_v53, 5 }
 0x13b   : > { %v3532_v39 = vrot.slane %v3530_v17, 4  ;;  %9654 = vst [vmem:[#allocation17_spill] sm:$0xff] %v8358_v48  ;;  %v1812_v16 = vld [vmem:[#allocation2 + $0x48] sm:$0xe] }
 0x13c   : > { %v3531_v25 = vsel %vm7789_vm15, %v6056_v21, %v3530_v17  ;;  %v7220_v17 = vld [vmem:[#allocation2 + $0x20] sm:$0x1]  ;;  %v7222_v21 = vld [vmem:[#allocation2 + $0x6c] sm:$0xf] }
 0x13d   : > { %v3534_v47 = vsel %vm7789_vm15, %v3532_v39, %v3533_v33  ;;  %v1876_v6 = vrot.slane %v7220_v17, 5  ;;  %v1880_v39 = vrot.slane %v8312_v61, 5  ;;  %v8383_v61 = vsel %vm7789_vm15, %v1861_v30, %v1862_v22  ;;  %v7170_v17 = vld [vmem:[#allocation2 + $0x60] sm:$0xff]  }
 0x13e   : > { %v6072_v36 = vcombine.low %v3531_v25, %v3534_v47  ;;  %v1810_v25 = vld [vmem:[#allocation2 + $0x30] sm:$0xe]  ;;  %v1887_v47 = vrot.slane %v8320_v9, 5  ;;  %v8387_v9 = vsel %vm7789_vm15, %v5927_v52, %v1866_v37  ;;  %v5931_v22 = vrot.slane %v1811_v49, 9  ;;  %v4199_v49 = vld [vmem:[#allocation2 + $0x24] sm:$0xf] }
 0x13f   : > { %6571 = vmatmul.mubr.msk.bf16.gmra.mrb[8].mxu1 %vm1301_vm11, %v5898_v13  ;;  %v1809_v13 = vld [vmem:[#allocation2 + $0x24] sm:$0xe]  ;;  %v8400_v53 = vsel %vm7789_vm15, %v1875_v5, %v1876_v6  ;;  %v5930_v54 = vrot.slane %v1810_v25, 9  ;;  %v1882_v27 = vrot.slane %v1880_v39, 4  ;;  %v1901_v52 = vrot.slane %v8332_v12, 5 }
 0x140   : > { %6574 = vmatprep.mubr.msk.bf16.mxu1 %vm1301_vm11, %v5899_v20  ;;  %6727 = vmatmul.mubr.msk.bf16.gmra.mrb[28].mxu0 %vm1301_vm11, %v6072_v36  ;;  %v8364_v20 = vld [vmem:[#allocation2 + $0x70] sm:$0xf]  ;;  %v8377_v36 = vsel %vm7789_vm15, %v5926_v35, %v1859_v58  ;;  %v5929_v50 = vrot.slane %v1809_v13, 9  ;;  %v1889_v55 = vrot.slane %v1887_v47, 4  ;;  %v7226_v35 = vld [vmem:[#allocation2 + $0x44] sm:$0x1] }
 0x141   : > { %6732 = vmatprep.mubr.msk.bf16.mxu0 %vm1301_vm11, %v7163_v38  ;;  %v5902_v33 = vcombine.low %v7222_v21, %v8364_v20  ;;  %v8369_v38 = vld [vmem:[#allocation6 + $0x40] sm:$0xff]   ;;  %v7223_v58 = vld [vmem:[#allocation6 + $0x38] sm:$0xff]   ;;  %v1897_v30 = vrot.slane %v7226_v35, 5  ;;  %v8425_v21 = vsel %vm7789_vm15, %v5930_v54, %v1887_v47  ;;  %v4200_v47 = vld [vmem:[#allocation2 + $0x28] sm:$0xf] }
 0x142   : > { %v4196_v5 = vld [vmem:[#allocation2 + $0x18] sm:$0xf]  ;;  %v8421_v6 = vsel %vm7789_vm15, %v5929_v50, %v1880_v39  ;;  %v4197_v25 = vld [vmem:[#allocation2 + $0x1c] sm:$0xf]  ;;  %v8438_v39 = vsel %vm7789_vm15, %v5931_v22, %v1894_v40  ;;  %v5932_v50 = vrot.slane %v1812_v16, 9 }
 0x143   : > { %v4254_v12 = vshll.u32 %v4197_v25, 16 }
 0x145   : > { %v8461_v42 = vrot.slane %v4254_v12, 5  ;;  %v1922_v12 = vrot.slane %v8364_v20, 5 }
 0x147   : > { %6575 = vmatmul.mubr.msk.bf16.gmra.mrb[12].mxu1 %vm1301_vm11, %v5900_v1  ;;  %v7224_v1 = vld [vmem:[#allocation2 + $0x2c] sm:$0x1] }
 0x148   : > { %6578 = vmatprep.mubr.msk.bf16.mxu1 %vm1301_vm11, %v5901_v31  ;;  %6733 = vmatmul.mubr.msk.bf16.vlgmr.msra.gmra.mrb[0].mxu0 %vm1301_vm11, %v7165_v0  ;;  %v1883_v37 = vrot.slane %v7224_v1, 5  ;;  %v7225_v31 = vld [vmem:[#allocation2 + $0x38] sm:$0x1]  ;;  %v1896_v0 = vrot.slane %v1894_v40, 4  ;;  %v1813_v1 = vld [vmem:[#allocation2 + $0x54] sm:$0xe] }
 0x149   : > { %6765 = vmatpush3.bf16.msra.mxu0 %v7223_v58  ;;  %6736 = vmatprep.mubr.msk.bf16.mxu0 %vm1301_vm11, %v7166_v57  ;;  %v1890_v62 = vrot.slane %v7225_v31, 5  ;;  %v7227_v31 = vld [vmem:[#allocation2 + $0x50] sm:$0x1]  ;;  %v4258_v40 = vshrl.u32 %v4197_v25, 16  ;;  %v7169_v57 = vld [vmem:[#allocation2 + $0x54] sm:$0xff]   ;;  %v4278_v25 = vshll.u32 %v4200_v47, 16 }
 0x14a   : > { %6798 = vmatprep.subr.bf16.mxu0 %v8369_v38  ;;  %v8442_v54 = vsel %vm7789_vm15, %v1896_v0, %v1897_v30  ;;  %v1904_v35 = vrot.slane %v7227_v31, 5  ;;  %v1815_v0 = vld [vmem:[#allocation2 + $0x6c] sm:$0xe]  ;;  %v4269_v30 = vshrl.u32 %v4199_v49, 16  ;;  %v4272_v31 = vshll.u32 %v4199_v49, 16 }
 0x14b   : > { %v8434_v58 = vsel %vm7789_vm15, %v1889_v55, %v1890_v62  ;;  %v4245_v55 = vshrl.u32 %v4196_v5, 16  ;;  %v4248_v62 = vshll.u32 %v4196_v5, 16  ;;  %v4198_v5 = vld [vmem:[#allocation2 + $0x20] sm:$0x1]  ;;  %v5933_v16 = vrot.slane %v1813_v1, 9 }
 0x14c   : > { %v1911_v49 = vrot.slane %v7228_v4, 5  ;;  %v4271_v34 = vrot.slane %v4269_v30, 4  ;;  %v9657_v1 = vcombine.low %v8141_v46, %v8159_v45  ;;  %v5935_v4 = vrot.slane %v1815_v0, 9  ;;  %v7230_v0 = vld [vmem:[#allocation2 + $0x7c] sm:$0xf] }
 0x14d   : > { %v4247_v15 = vrot.slane %v4245_v55, 4  ;;  %v4250_v44 = vrot.slane %v4248_v62, 5  ;;  %v4264_v62 = vshll.u32 %v4198_v5, 16  ;;  %v1929_v30 = vrot.slane %v7230_v0, 5  ;;  %v7231_v5 = vld [vmem:[#allocation2 + $0x74] sm:$0x1] }
 0x14e   : > { %v7171_v0 = vld [vmem:[#allocation2 + $0x6c] sm:$0xff]  }
 0x14f   : > { %6579 = vmatmul.mubr.msk.bf16.gmra.mrb[16].mxu1 %vm1301_vm11, %v5902_v33  ;;  %v8430_v33 = vsel %vm7789_vm15, %v1882_v27, %v1883_v37  ;;  %v1908_v37 = vrot.slane %v8349_v11, 5  ;;  %v1814_v27 = vld [vmem:[#allocation2 + $0x60] sm:$0xe]  ;;  %v4260_v11 = vrot.slane %v4258_v40, 4  ;;  %v4201_v40 = vld [vmem:[#allocation2 + $0x2c] sm:$0x1]  ;;  %v4251_v45 = vor.u32 %v4250_v44, %v4247_v15 }
 0x150   : > { %6582 = vmatprep.mubr.msk.bf16.mxu1 %vm1301_vm11, %v5903_v29  ;;  %v1903_v29 = vrot.slane %v1901_v52, 4  ;;  %6737 = vmatmul.mubr.msk.bf16.gmra.mrb[4].mxu0 %vm1301_vm11, %v7167_v14  ;;  %v8455_v14 = vsel %vm7789_vm15, %v5932_v50, %v1901_v52  ;;  %v9656_v52 = vcombine.low %v8099_v7, %v8103_v18  ;;  %v5934_v50 = vrot.slane %v1814_v27, 9 }
 0x151   : > { %6740 = vmatprep.mubr.msk.bf16.mxu0 %vm1301_vm11, %v7168_v3  ;;  %v4282_v3 = vshrl.u32 %v4200_v47, 16  ;;  %v1910_v13 = vrot.slane %v1908_v37, 4  ;;  %v1915_v47 = vrot.slane %v8355_v60, 5  ;;  %v8479_v18 = vsel %vm7789_vm15, %v5933_v16, %v1908_v37  ;;  %v7229_v60 = vld [vmem:[#allocation2 + $0x68] sm:$0x1] }
 0x152   : > { %v8459_v22 = vsel %vm7789_vm15, %v1903_v29, %v1904_v35  ;;  %v4274_v29 = vrot.slane %v4272_v31, 5  ;;  %v8473_v35 = vrot.slane %v4278_v25, 5  ;;  %v1918_v27 = vrot.slane %v7229_v60, 5  ;;  %v4202_v31 = vld [vmem:[#allocation2 + $0x30] sm:$0xf] }
 0x153   : > { %v4284_v55 = vrot.slane %v4282_v3, 4  ;;  %v8484_v46 = vsel %vm7789_vm15, %v1910_v13, %v1911_v49  ;;  %v4261_v20 = vor.u32 %v4260_v11, %v8461_v42  ;;  %v8490_v37 = vsel %vm7789_vm15, %v5934_v50, %v1915_v47  ;;  %v1816_v3 = vld [vmem:[#allocation2 + $0x78] sm:$0xe]  ;;  %v8497_v49 = vld [vmem:[#allocation2 + $0x34] sm:$0xf] }
 0x154   : > { %v1917_v16 = vrot.slane %v1915_v47, 4  ;;  %v1925_v25 = vrot.slane %v7231_v5, 5  ;;  %v8494_v13 = vsel %vm7789_vm15, %v5935_v4, %v1922_v12  ;;  %v1924_v44 = vrot.slane %v1922_v12, 4  ;;  %9658 = vst [vmem:[#allocation19_spill] sm:$0xff] %v8497_v49  ;;  %v7173_v12 = vld [vmem:[#allocation2 + $0x78] sm:$0xff]  }
 0x155   : > { %v4285_v15 = vor.u32 %v4284_v55, %v8473_v35  ;;  %v4288_v11 = vshll.u32 %v4201_v40, 16  ;;  %v4293_v60 = vshrl.u32 %v4202_v31, 16  ;;  %v4296_v47 = vshll.u32 %v4202_v31, 16  ;;  %v7233_v40 = vld [vmem:[#allocation2 + $0x80] sm:$0x1] }
 0x156   : > { %v4252_v5 = vrot.slane %v4251_v45, 4  ;;  %v1931_v7 = vrot.slane %v1929_v30, 4  ;;  %v9659_v4 = vcombine.low %v8177_v32, %v8171_v10  ;;  %v1932_v51 = vrot.slane %v7233_v40, 5 }
 0x157   : > { %6583 = vmatmul.mubr.msk.bf16.gmra.mrb[20].mxu1 %vm1301_vm11, %v9656_v52  ;;  %v1817_v52 = vld [vmem:[#allocation2 + $0x84] sm:$0xe]  ;;  %v9660_v31 = vcombine.low %v8192_v24, %v8204_v23  ;;  %v8511_v45 = vsel %vm7789_vm15, %v1917_v16, %v1918_v27  ;;  %v4286_v10 = vrot.slane %v4285_v15, 4  ;;  %v4290_v32 = vrot.slane %v4288_v11, 5  ;;  %v8529_v11 = vld [vmem:[#allocation2 + $0x40] sm:$0xf] }
 0x158   : > { %6586 = vmatprep.mubr.msk.bf16.mxu1 %vm1301_vm11, %v9657_v1  ;;  %6741 = vmatmul.mubr.msk.bf16.gmra.mrb[8].mxu0 %vm1301_vm11, %v7169_v57  ;;  %v4275_v57 = vor.u32 %v4274_v29, %v4271_v34  ;;  %v7232_v1 = vld [vmem:[#allocation2 + $0x88] sm:$0xf]  ;;  %v4262_v34 = vrot.slane %v4261_v20, 4  ;;  %v5936_v29 = vrot.slane %v1816_v3, 9  ;;  %v5937_v20 = vrot.slane %v1817_v52, 9  ;;  %9662 = vst [vmem:[#allocation21_spill] sm:$0xff] %v8529_v11 }
 0x159   : > { %6744 = vmatprep.mubr.msk.bf16.mxu0 %vm1301_vm11, %v7170_v17  ;;  %v4266_v17 = vrot.slane %v4264_v62, 5  ;;  %v1936_v50 = vrot.slane %v7232_v1, 5  ;;  %v4302_v62 = vshll.u32 %v8497_v49, 16  ;;  %v4306_v1 = vshrl.u32 %v8497_v49, 16  ;;  %v8513_v3 = vld [vmem:[#allocation2 + $0x38] sm:$0x1] }
 0x15a   : > { %v4276_v55 = vrot.slane %v4275_v57, 4  ;;  %9661 = vst [vmem:[#allocation20_spill] sm:$0xff] %v8513_v3  ;;  %v4295_v48 = vrot.slane %v4293_v60, 4  ;;  %v4298_v2 = vrot.slane %v4296_v47, 5  ;;  %v4205_v49 = vld [vmem:[#allocation2 + $0x3c] sm:$0xf]  ;;  %v8518_v24 = vsel %vm7789_vm15, %v1924_v44, %v1925_v25 }
 0x15b   : > { %v1938_v57 = vrot.slane %v1936_v50, 4  ;;  %v4257_v27 = vsel %vm7667_vm12, %v4252_v5, %v8461_v42  ;;  %v4267_v16 = vsel %vm7667_vm12, %v4262_v34, %v4266_v17  ;;  %v8527_v15 = vsel %vm7789_vm15, %v5936_v29, %v1929_v30  ;;  %v7174_v5 = vld [vmem:[#allocation2 + $0x84] sm:$0xff]   ;;  %v7175_v34 = vld [vmem:[#allocation2 + $0x90] sm:$0xff]  }
 0x15c   : > { %v4281_v25 = vsel %vm7667_vm12, %v4276_v55, %v8473_v35  ;;  %v8537_v44 = vsel %vm7789_vm15, %v1931_v7, %v1932_v51  ;;  %v8539_v42 = vrot.slane %v4302_v62, 5  ;;  %v4308_v52 = vrot.slane %v4306_v1, 4  ;;  %v4208_v55 = vld [vmem:[#allocation2 + $0x48] sm:$0xf]  ;;  %v8583_v1 = vld [vmem:[#allocation2 + $0x58] sm:$0xf] }
 0x15d   : > { %v4291_v17 = vsel %vm7667_vm12, %v4286_v10, %v4290_v32  ;;  %v4312_v30 = vshll.u32 %v8513_v3, 16  ;;  %v4317_v60 = vshrl.u32 %v4205_v49, 16  ;;  %v4320_v47 = vshll.u32 %v4205_v49, 16  ;;  %v8571_v10 = vld [vmem:[#allocation2 + $0x44] sm:$0x1]  ;;  %9667 = vst [vmem:[#allocation24_spill] sm:$0xff] %v8583_v1 }
 0x15e   : > { %v4299_v51 = vor.u32 %v4298_v2, %v4295_v48  ;;  %v4326_v7 = vshll.u32 %v8529_v11, 16  ;;  %v9663_v62 = vcombine.low %v8223_v63, %v8240_v26  ;;  %v8564_v2 = vcombine.low %v4257_v27, %v4267_v16  ;;  %9664 = vst [vmem:[#allocation22_spill] sm:$0xff] %v8571_v10  ;;  %v1818_v32 = vld [vmem:[#allocation2 + $0x90] sm:$0xe]  ;;  %v4211_v16 = vld [vmem:[#allocation2 + $0x54] sm:$0xf] }
 0x15f   : > { %6587 = vmatmul.mubr.msk.bf16.gmra.mrb[24].mxu1 %vm1301_vm11, %v9659_v4  ;;  %v7234_v4 = vld [vmem:[#allocation2 + $0x8c] sm:$0x1]  ;;  %v8566_v48 = vcombine.low %v4281_v25, %v4291_v17  ;;  %v4322_v27 = vrot.slane %v4320_v47, 5  ;;  %v4365_v47 = vshrl.u32 %v4211_v16, 16 }
 0x160   : > { %6590 = vmatprep.mubr.msk.bf16.mxu1 %vm1301_vm11, %v9660_v31  ;;  %v1939_v40 = vrot.slane %v7234_v4, 5  ;;  %6745 = vmatmul.mubr.msk.bf16.gmra.mrb[12].mxu0 %vm1301_vm11, %v7171_v0  ;;  %v8546_v0 = vsel %vm7789_vm15, %v5937_v20, %v1936_v50  ;;  %v4330_v50 = vshrl.u32 %v8529_v11, 16  ;;  %v4309_v31 = vor.u32 %v4308_v52, %v8539_v42  ;;  %v8573_v20 = vld [vmem:[#allocation2 + $0x4c] sm:$0xf]  ;;  %v1819_v11 = vld [vmem:[#allocation2 + $0x9c] sm:$0xe] }
 0x161   : > { %6748 = vmatprep.mubr.msk.bf16.mxu0 %vm1301_vm11, %v7173_v12  ;;  %9665 = vst [vmem:[#allocation23_spill] sm:$0xff] %v8573_v20  ;;  %v4314_v4 = vrot.slane %v4312_v30, 5  ;;  %v4300_v25 = vrot.slane %v4299_v51, 4  ;;  %v8581_v17 = vrot.slane %v4326_v7, 5  ;;  %v4341_v52 = vshrl.u32 %v4208_v55, 16 }
 0x162   : > { %v8550_v35 = vsel %vm7789_vm15, %v1938_v57, %v1939_v40  ;;  %v9666_v57 = vcombine.low %v8377_v36, %v8383_v61  ;;  %v4319_v40 = vrot.slane %v4317_v60, 4  ;;  %v4332_v49 = vrot.slane %v4330_v50, 4  ;;  %v7235_v36 = vld [vmem:[#allocation2 + $0x94] sm:$0xf] }
 0x163   : > { %v1943_v61 = vrot.slane %v7235_v36, 5  ;;  %v4354_v63 = vshrl.u32 %v8573_v20, 16  ;;  %v4310_v30 = vrot.slane %v4309_v31, 4  ;;  %v4336_v60 = vshll.u32 %v8571_v10, 16  ;;  %v7236_v36 = vld [vmem:[#allocation2 + $0x98] sm:$0x1] }
 0x164   : > { %v4368_v51 = vshll.u32 %v4211_v16, 16  ;;  %v4323_v7 = vor.u32 %v4322_v27, %v4319_v40  ;;  %v4374_v12 = vshll.u32 %v8583_v1, 16  ;;  %v4305_v50 = vsel %vm7667_vm12, %v4300_v25, %v8539_v42  ;;  %v7176_v31 = vld [vmem:[#allocation2 + $0x9c] sm:$0xff]   ;;  %v8596_v16 = vld [vmem:[#allocation2 + $0x50] sm:$0x1]  ;;  %v7177_v42 = vld [vmem:[#allocation2 + $0xa8] sm:$0xff]  }
 0x165   : > { %v1946_v29 = vrot.slane %v7236_v36, 5  ;;  %v4343_v3 = vrot.slane %v4341_v52, 4  ;;  %v4333_v10 = vor.u32 %v4332_v49, %v8581_v17  ;;  %v4356_v40 = vrot.slane %v4354_v63, 4  ;;  %v7237_v52 = vld [vmem:[#allocation2 + $0xa0] sm:$0xf] }
 0x166   : > { %v9668_v27 = vcombine.low %v8387_v9, %v8391_v41  ;;  %v4315_v25 = vsel %vm7667_vm12, %v4310_v30, %v4314_v4  ;;  %v4367_v36 = vrot.slane %v4365_v47, 4  ;;  %v9669_v49 = vcombine.low %v8395_v43, %v8400_v53  ;;  %v8622_v47 = vld [vmem:[#allocation2 + $0x5c] sm:$0x1] }
 0x167   : > { %6591 = vmatmul.mubr.msk.bf16.gmra.mrb[28].mxu1 %vm1301_vm11, %v9663_v62  ;;  %v4344_v62 = vshll.u32 %v4208_v55, 16  ;;  %v5938_v55 = vrot.slane %v1818_v32, 9  ;;  %v8611_v63 = vrot.slane %v4323_v7, 4  ;;  %v5939_v9 = vrot.slane %v1819_v11, 9  ;;  %v8624_v43 = vld [vmem:[#allocation6 + $0x20] sm:$0xff]  }
 0x168   : > { %6596 = vmatprep.mubr.msk.bf16.mxu1 %vm1301_vm11, %v9666_v57  ;;  %6749 = vmatmul.mubr.msk.bf16.gmra.mrb[16].mxu0 %vm1301_vm11, %v7174_v5  ;;  %v4350_v57 = vshll.u32 %v8573_v20, 16  ;;  %v4378_v5 = vshrl.u32 %v8583_v1, 16  ;;  %v1945_v20 = vrot.slane %v1943_v61, 4  ;;  %v4370_v1 = vrot.slane %v4368_v51, 5  ;;  %9670 = vst [vmem:[#allocation25_spill] sm:$0xff] %v8624_v43 }
 0x169   : > { %6752 = vmatprep.mubr.msk.bf16.mxu0 %vm1301_vm11, %v7175_v34  ;;  %v4346_v34 = vrot.slane %v4344_v62, 5  ;;  %v1950_v62 = vrot.slane %v7237_v52, 5  ;;  %v8613_v41 = vrot.slane %v4374_v12, 5  ;;  %v8619_v4 = vsel %vm7789_vm15, %v5938_v55, %v1943_v61  ;;  %v7239_v11 = vld [vmem:[#allocation2 + $0xa4] sm:$0x1] }
 0x16a   : > { %v8598_v32 = vrot.slane %v4350_v57, 5  ;;  %v4380_v57 = vrot.slane %v4378_v5, 4  ;;  %v8628_v53 = vcombine.low %v4305_v50, %v4315_v25  ;;  %v1953_v12 = vrot.slane %v7239_v11, 5  ;;  %v4214_v51 = vld [vmem:[#allocation2 + $0x60] sm:$0xf] }
 0x16b   : > { %v4347_v30 = vor.u32 %v4346_v34, %v4343_v3  ;;  %v1957_v61 = vrot.slane %v8204_v23, 5  ;;  %v4334_v3 = vrot.slane %v4333_v10, 4  ;;  %v8635_v7 = vsel %vm7789_vm15, %v1945_v20, %v1946_v29  ;;  %v1820_v34 = vld [vmem:[#allocation2 + $0xa8] sm:$0xe]  ;;  %v8647_v20 = vld [vmem:[#allocation2 + $0x64] sm:$0xf] }
 0x16c   : > { %v1952_v55 = vrot.slane %v1950_v62, 4  ;;  %v4371_v5 = vor.u32 %v4370_v1, %v4367_v36  ;;  %v4329_v50 = vsel %vm7667_vm12, %v8611_v63, %v8581_v17  ;;  %v8643_v23 = vsel %vm7789_vm15, %v5939_v9, %v1950_v62  ;;  %v1821_v17 = vld [vmem:[#allocation2 + $0xb4] sm:$0xe]  ;;  %v7179_v63 = vld [vmem:[#allocation2 + $0xc0] sm:$0xff]  }
 0x16d   : > { %v4384_v10 = vshll.u32 %v8622_v47, 16  ;;  %v4389_v1 = vshrl.u32 %v4214_v51, 16  ;;  %v4392_v25 = vshll.u32 %v4214_v51, 16  ;;  %v5940_v36 = vrot.slane %v1820_v34, 9 }
 0x16e   : > { %v1960_v11 = vrot.slane %v8206_v19, 5  ;;  %v9671_v62 = vcombine.low %v8421_v6, %v8430_v33  ;;  %v9672_v19 = vcombine.low %v8425_v21, %v8434_v58  ;;  %v4398_v51 = vshll.u32 %v8647_v20, 16 }
 0x16f   : > { %6597 = vmatmul.mubr.msk.bf16.vlgmr.msra.gmra.mrb[0].mxu1 %vm1301_vm11, %v9668_v27  ;;  %v8615_v27 = vrot.slane %v4336_v60, 5  ;;  %v4357_v60 = vor.u32 %v4356_v40, %v8598_v32  ;;  %v4381_v40 = vor.u32 %v4380_v57, %v8613_v41  ;;  %v8659_v57 = vsel %vm7789_vm15, %v1952_v55, %v1953_v12 }
 0x170   : > { %6629 = vmatpush3.bf16.msra.mxu1 %v8295_v8  ;;  %6600 = vmatprep.mubr.msk.bf16.mxu1 %vm1301_vm11, %v9669_v49  ;;  %v4360_v8 = vshll.u32 %v8596_v16, 16  ;;  %v1959_v49 = vrot.slane %v1957_v61, 4  ;;  %v4386_v33 = vrot.slane %v4384_v10, 5  ;;  %v5941_v55 = vrot.slane %v1821_v17, 9  ;;  %v8685_v10 = vld [vmem:[#allocation2 + $0x70] sm:$0xf] }
 0x171   : > { %6832 = vmatprep.subr.bf16.mxu1 %v8624_v43  ;;  %6753 = vmatmul.mubr.msk.bf16.gmra.mrb[20].mxu0 %vm1301_vm11, %v7176_v31  ;;  %v7178_v31 = vld [vmem:[#allocation2 + $0xb4] sm:$0xff]   ;;  %v4358_v52 = vrot.slane %v4357_v60, 4  ;;  %v4339_v9 = vsel %vm7667_vm12, %v4334_v3, %v8615_v27  ;;  %v8662_v60 = vld [vmem:[#allocation2 + $0x68] sm:$0x1]  ;;  %v4382_v6 = vrot.slane %v4381_v40, 4  ;;  %v4402_v27 = vshrl.u32 %v8647_v20, 16 }
 0x172   : > { %6756 = vmatprep.mubr.msk.bf16.mxu0 %vm1301_vm11, %v7177_v42  ;;  %v4348_v42 = vrot.slane %v4347_v30, 4  ;;  %v4362_v29 = vrot.slane %v4360_v8, 5  ;;  %v4372_v30 = vrot.slane %v4371_v5, 4  ;;  %v1964_v8 = vrot.slane %v8240_v26, 5  ;;  %v4217_v3 = vld [vmem:[#allocation2 + $0x6c] sm:$0xf] }
 0x173   : > { %v4391_v26 = vrot.slane %v4389_v1, 4  ;;  %v4394_v5 = vrot.slane %v4392_v25, 5  ;;  %v8678_v58 = vsel %vm7789_vm15, %v5940_v36, %v1957_v61  ;;  %v8682_v34 = vsel %vm7789_vm15, %v1959_v49, %v1960_v11  ;;  %v8700_v11 = vld [vmem:[#allocation2 + $0x74] sm:$0x1]  ;;  %v7180_v17 = vld [vmem:[#allocation2 + $0xcc] sm:$0xff]  }
 0x174   : > { %v4353_v12 = vsel %vm7667_vm12, %v4348_v42, %v8598_v32  ;;  %v4363_v21 = vsel %vm7667_vm12, %v4358_v52, %v4362_v29  ;;  %9673 = vst [vmem:[#allocation26_spill] sm:$0xff] %v8678_v58  ;;  %9674 = vst [vmem:[#allocation27_spill] sm:$0xff] %v8682_v34  ;;  %v1967_v40 = vrot.slane %v8242_v28, 5  ;;  %v4377_v32 = vsel %vm7667_vm12, %v4372_v30, %v8613_v41  ;;  %v8761_v36 = vld [vmem:[#allocation2 + $0x80] sm:$0x1] }
 0x175   : > { %v4408_v42 = vshll.u32 %v8662_v60, 16  ;;  %v4413_v29 = vshrl.u32 %v4217_v3, 16  ;;  %v4387_v61 = vsel %vm7667_vm12, %v4382_v6, %v4386_v33  ;;  %v8694_v1 = vrot.slane %v4398_v51, 5  ;;  %9680 = vst [vmem:[#allocation31_spill] sm:$0xff] %v8761_v36  ;;  %v8765_v34 = vld [vmem:[#allocation2 + $0xa0] sm:$0xf] }
 0x176   : > { %v4404_v25 = vrot.slane %v4402_v27, 4  ;;  %v4416_v52 = vshll.u32 %v4217_v3, 16  ;;  %v8696_v28 = vcombine.low %v4329_v50, %v4339_v9  ;;  %v4395_v49 = vor.u32 %v4394_v5, %v4391_v26  ;;  %v4220_v9 = vld [vmem:[#allocation2 + $0x78] sm:$0xf]  ;;  %9681 = vst [vmem:[#allocation32_spill] sm:$0xff] %v8765_v34 }
 0x177   : > { %6601 = vmatmul.mubr.msk.bf16.gmra.mrb[4].mxu1 %vm1301_vm11, %v9671_v62  ;;  %v4422_v41 = vshll.u32 %v8685_v10, 16  ;;  %v8711_v50 = vsel %vm7789_vm15, %v5941_v55, %v1964_v8  ;;  %v9676_v6 = vcombine.low %v8438_v39, %v8442_v54  ;;  %v8719_v33 = vcombine.low %v4377_v32, %v4387_v61 }
 0x178   : > { %6604 = vmatprep.mubr.msk.bf16.mxu1 %vm1301_vm11, %v9672_v19  ;;  %v8713_v19 = vld [vmem:[#allocation2 + $0x7c] sm:$0xf]  ;;  %v8725_v27 = vrot.slane %v4408_v42, 5  ;;  %v8727_v3 = vrot.slane %v4413_v29, 4  ;;  %v9678_v55 = vcombine.low %v8455_v14, %v8459_v22  ;;  %v4405_v39 = vor.u32 %v4404_v25, %v8694_v1  ;;  %v8744_v29 = vld [vmem:[#allocation2 + $0x94] sm:$0xf] }
 0x179   : > { %6757 = vmatmul.mubr.msk.bf16.gmra.mrb[24].mxu0 %vm1301_vm11, %v7178_v31  ;;  %v1966_v31 = vrot.slane %v1964_v8, 4  ;;  %9675 = vst [vmem:[#allocation28_spill] sm:$0xff] %v8713_v19  ;;  %v4223_v8 = vld [vmem:[#allocation2 + $0x84] sm:$0xf]  ;;  %v8736_v54 = vrot.slane %v4416_v52, 5  ;;  %v4426_v26 = vshrl.u32 %v8685_v10, 16 }
 0x17a   : > { %6760 = vmatprep.mubr.msk.bf16.mxu0 %vm1301_vm11, %v7179_v63  ;;  %v8705_v63 = vcombine.low %v4353_v12, %v4363_v21  ;;  %v8729_v12 = vld [vmem:[#allocation2 + $0x88] sm:$0xf]  ;;  %v4432_v5 = vshll.u32 %v8700_v11, 16  ;;  %v4226_v21 = vld [vmem:[#allocation2 + $0x90] sm:$0xf]  ;;  %v8742_v32 = vrot.slane %v4422_v41, 5 }
 0x17b   : > { %v8723_v51 = vsel %vm7789_vm15, %v1966_v31, %v1967_v40  ;;  %9677 = vst [vmem:[#allocation29_spill] sm:$0xff] %v8729_v12  ;;  %v8740_v40 = vrot.slane %v4395_v49, 4  ;;  %v4437_v31 = vshrl.u32 %v4220_v9, 16  ;;  %v4440_v42 = vshll.u32 %v4220_v9, 16  ;;  %9679 = vst [vmem:[#allocation30_spill] sm:$0xff] %v8744_v29 }
 0x17c   : > { %v4446_v22 = vshll.u32 %v8713_v19, 16  ;;  %v4450_v14 = vshrl.u32 %v8713_v19, 16  ;;  %v4461_v61 = vshrl.u32 %v4223_v8, 16  ;;  %v4464_v25 = vshll.u32 %v4223_v8, 16  ;;  %v4229_v19 = vld [vmem:[#allocation2 + $0x9c] sm:$0xf] }
 0x17d   : > { %v4470_v52 = vshll.u32 %v8729_v12, 16  ;;  %v4474_v49 = vshrl.u32 %v8729_v12, 16  ;;  %v4485_v41 = vshrl.u32 %v4226_v21, 16  ;;  %v4428_v9 = vrot.slane %v4426_v26, 4 }
 0x17e   : > { %v4498_v30 = vshrl.u32 %v8744_v29, 16  ;;  %v8757_v62 = vrot.slane %v4405_v39, 4  ;;  %v4419_v8 = vor.u32 %v8736_v54, %v8727_v3  ;;  %v4442_v43 = vrot.slane %v4440_v42, 5  ;;  %v8771_v39 = vld [vmem:[#allocation2 + $0x8c] sm:$0x1] }
 0x17f   : > { %6605 = vmatmul.mubr.msk.bf16.gmra.mrb[8].mxu1 %vm1301_vm11, %v9676_v6  ;;  %v4488_v6 = vshll.u32 %v4226_v21, 16  ;;  %v8763_v12 = vrot.slane %v4446_v22, 5  ;;  %v4452_v21 = vrot.slane %v4450_v14, 4  ;;  %v4463_v26 = vrot.slane %v4461_v61, 4  ;;  %9683 = vst [vmem:[#allocation33_spill] sm:$0xff] %v8771_v39 }
 0x180   : > { %6608 = vmatprep.mubr.msk.bf16.mxu1 %vm1301_vm11, %v9678_v55  ;;  %v8753_v55 = vrot.slane %v4432_v5, 5  ;;  %v4466_v5 = vrot.slane %v4464_v25, 5  ;;  %v8773_v3 = vrot.slane %v4470_v52, 5  ;;  %v4476_v54 = vrot.slane %v4474_v49, 4  ;;  %v8779_v14 = vld [vmem:[#allocation2 + $0x98] sm:$0x1] }
 0x181   : > { %6761 = vmatmul.mubr.msk.bf16.gmra.mrb[28].mxu0 %vm1301_vm11, %v7180_v17  ;;  %v4494_v17 = vshll.u32 %v8744_v29, 16  ;;  %v9682_v29 = vcombine.low %v8479_v18, %v8484_v46  ;;  %v4490_v42 = vrot.slane %v4488_v6, 5  ;;  %v9684_v22 = vcombine.low %v8490_v37, %v8511_v45  ;;  %v335_v45 = vld [vmem:[#allocation2 + $0xd4] sm:$0x1] }
 0x182   : > { %6766 = vmatprep.mubr.msk.bf16.mxu0 %vm1301_vm11, %v8564_v2  ;;  %v4439_v2 = vrot.slane %v4437_v31, 4  ;;  %v4487_v31 = vrot.slane %v4485_v41, 4  ;;  %v4500_v25 = vrot.slane %v4498_v30, 4  ;;  %v4509_v18 = vshrl.u32 %v4229_v19, 16 }
 0x183   : > { %v8781_v61 = vrot.slane %v4494_v17, 5  ;;  %v4512_v46 = vshll.u32 %v4229_v19, 16  ;;  %v4429_v52 = vor.u32 %v4428_v9, %v8742_v32  ;;  %v4518_v49 = vshll.u32 %v8765_v34, 16 }
 0x184   : > { %v4522_v37 = vshrl.u32 %v8765_v34, 16  ;;  %v4443_v41 = vor.u32 %v4442_v43, %v4439_v2  ;;  %v4453_v30 = vor.u32 %v4452_v21, %v8763_v12  ;;  %v4456_v19 = vshll.u32 %v8761_v36, 16  ;;  %v4232_v21 = vld [vmem:[#allocation2 + $0xa8] sm:$0xf] }
 0x185   : > { %v4467_v6 = vor.u32 %v4466_v5, %v4463_v26  ;;  %v4477_v9 = vor.u32 %v4476_v54, %v8773_v3  ;;  %v4480_v17 = vshll.u32 %v8771_v39, 16  ;;  %v4511_v43 = vrot.slane %v4509_v18, 4 }
 0x186   : > { %v4514_v2 = vrot.slane %v4512_v46, 5  ;;  %v336_v26 = vsel %vm7620_vm5, 0, %v335_v45  ;;  %v4420_v5 = vrot.slane %v4419_v8, 4  ;;  %v8803_v36 = vrot.slane %v4518_v49, 5 }
 0x187   : > { %6609 = vmatmul.mubr.msk.bf16.gmra.mrb[12].mxu1 %vm1301_vm11, %v9682_v29  ;;  %v4504_v29 = vshll.u32 %v8779_v14, 16  ;;  %337 = vst [vmem:[#allocation2 + $0xd4] sm:$0x1] %v336_v26  ;;  %v4444_v54 = vrot.slane %v4443_v41, 4  ;;  %v4454_v58 = vrot.slane %v4453_v30, 4  ;;  %v4458_v39 = vrot.slane %v4456_v19, 5 }
 0x188   : > { %6612 = vmatprep.mubr.msk.bf16.mxu1 %vm1301_vm11, %v9684_v22  ;;  %v4491_v22 = vor.u32 %v4490_v42, %v4487_v31  ;;  %v4468_v31 = vrot.slane %v4467_v6, 4  ;;  %v8805_v42 = vld [vmem:[#allocation2 + $0xa4] sm:$0x1]  ;;  %v4478_v18 = vrot.slane %v4477_v9, 4  ;;  %v4482_v34 = vrot.slane %v4480_v17, 5 }
 0x189   : > { %6767 = vmatmul.mubr.msk.bf16.vlgmr.msra.gmra.mrb[0].mxu0 %vm1301_vm11, %v8566_v48  ;;  %v4501_v48 = vor.u32 %v4500_v25, %v8781_v61  ;;  %v9686_v25 = vcombine.low %v8494_v13, %v8518_v24  ;;  %v4533_v46 = vshrl.u32 %v4232_v21, 16  ;;  %v4536_v8 = vshll.u32 %v4232_v21, 16  ;;  %v8815_v30 = vld [vmem:[#allocation2 + $0xac] sm:$0xf] }
 0x18a   : > { %6799 = vmatpush3.bf16.msra.mxu0 %v8369_v38  ;;  %6770 = vmatprep.mubr.msk.bf16.mxu0 %vm1301_vm11, %v8628_v53  ;;  %v4430_v38 = vrot.slane %v4429_v52, 4  ;;  %v4524_v53 = vrot.slane %v4522_v37, 4  ;;  %v9687_v52 = vcombine.low %v8527_v15, %v8537_v44  ;;  %v4492_v49 = vrot.slane %v4491_v22, 4 }
 0x18b   : > { %v4502_v37 = vrot.slane %v4501_v48, 4  ;;  %v4506_v45 = vrot.slane %v4504_v29, 5  ;;  %v4515_v41 = vor.u32 %v4514_v2, %v4511_v43  ;;  %v4411_v13 = vsel %vm7667_vm12, %v8757_v62, %v8725_v27 }
 0x18c   : > { %v4425_v24 = vsel %vm7667_vm12, %v4420_v5, %v8742_v32  ;;  %v4525_v19 = vor.u32 %v4524_v53, %v8803_v36  ;;  %v4528_v15 = vshll.u32 %v8805_v42, 16  ;;  %v4435_v44 = vsel %vm7667_vm12, %v4430_v38, %v8753_v55  ;;  %v8839_v32 = vld [vmem:[#allocation2 + $0xb0] sm:$0x1]  ;;  %v8870_v38 = vld [vmem:[#allocation2 + $0xb8] sm:$0xf] }
 0x18d   : > { %v4449_v29 = vsel %vm7667_vm12, %v4444_v54, %v8763_v12  ;;  %v4459_v62 = vsel %vm7667_vm12, %v4454_v58, %v4458_v39  ;;  %v4473_v27 = vsel %vm7667_vm12, %v4468_v31, %v8773_v3  ;;  %v4535_v55 = vrot.slane %v4533_v46, 4  ;;  %v4235_v12 = vld [vmem:[#allocation2 + $0xb4] sm:$0xf]  ;;  %v9691_v46 = vld [vmem:[#allocation23_spill] sm:$0xff] }
 0x18e   : > { %v4538_v6 = vrot.slane %v4536_v8, 5  ;;  %v4542_v9 = vshll.u32 %v8815_v30, 16  ;;  %v4497_v58 = vsel %vm7667_vm12, %v4492_v49, %v8781_v61  ;;  %v4507_v39 = vsel %vm7667_vm12, %v4502_v37, %v4506_v45  ;;  %v4930_v61 = vld [vmem:[#allocation2 + $0x48] sm:$0xe]  ;;  %v4932_v45 = vld [vmem:[#allocation2 + $0x60] sm:$0xe] }
 0x18f   : > { %6613 = vmatmul.mubr.msk.bf16.gmra.mrb[16].mxu1 %vm1301_vm11, %v9686_v25  ;;  %v8851_v3 = vrot.slane %v4515_v41, 4  ;;  %v4546_v17 = vshrl.u32 %v8815_v30, 16  ;;  %v9688_v22 = vsel %vm7667_vm12, %v8740_v40, %v8694_v1  ;;  %v8861_v43 = vrot.slane %v4525_v19, 4 }
 0x190   : > { %6616 = vmatprep.mubr.msk.bf16.mxu1 %vm1301_vm11, %v9687_v52  ;;  %v6129_v48 = vcombine.low %v9688_v22, %v4411_v13  ;;  %v8863_v2 = vrot.slane %v4528_v15, 5  ;;  %v8865_v21 = vcombine.low %v4425_v24, %v4435_v44  ;;  %v8867_v26 = vcombine.low %v4449_v29, %v4459_v62  ;;  %v4931_v52 = vld [vmem:[#allocation2 + $0x54] sm:$0xe]  ;;  %v9692_v29 = vld [vmem:[#allocation24_spill] sm:$0xff]  ;;  %v4238_v22 = vld [vmem:[#allocation2 + $0xc0] sm:$0xf] }
 0x191   : > { %6771 = vmatmul.mubr.msk.bf16.gmra.mrb[4].mxu0 %vm1301_vm11, %v8696_v28  ;;  %v4483_v28 = vsel %vm7667_vm12, %v4478_v18, %v4482_v34  ;;  %v4552_v5 = vshll.u32 %v8839_v32, 16  ;;  %v4557_v53 = vshrl.u32 %v4235_v12, 16  ;;  %v9689_v54 = vcombine.low %v8546_v0, %v8550_v35 }
 0x192   : > { %6774 = vmatprep.mubr.msk.bf16.mxu0 %vm1301_vm11, %v8705_v63  ;;  %v5957_v63 = vcombine.low %v8711_v50, %v8723_v51  ;;  %v8876_v1 = vcombine.low %v4473_v27, %v4483_v28  ;;  %v8878_v40 = vcombine.low %v4497_v58, %v4507_v39  ;;  %v4539_v31 = vor.u32 %v4538_v6, %v4535_v55  ;;  %v4933_v27 = vld [vmem:[#allocation2 + $0x6c] sm:$0xe]  ;;  %v9702_v51 = vld [vmem:[#allocation33_spill] sm:$0xff] }
 0x193   : > { %v8880_v25 = vrot.slane %v4542_v9, 5  ;;  %v9690_v18 = vcombine.low %v8619_v4, %v8635_v7  ;;  %v4521_v34 = vsel %vm7667_vm12, %v8851_v3, %v8803_v36  ;;  %v4548_v0 = vrot.slane %v4546_v17, 4  ;;  %v8918_v9 = vld [vmem:[#allocation2 + $0xbc] sm:$0x1] }
 0x194   : > { %v6160_v35 = vrot.slane %v4930_v61, 9  ;;  %v5020_v8 = vrot.slane %v9691_v46, 5  ;;  %v4531_v49 = vsel %vm7667_vm12, %v8861_v43, %v8863_v2  ;;  %v4560_v37 = vshll.u32 %v4235_v12, 16  ;;  %v2656_v46 = vld [vmem:[#allocation2 + $0x78] sm:$0xf] }
 0x195   : > { %v4566_v4 = vshll.u32 %v8870_v38, 16  ;;  %v5023_v7 = vrot.slane %v8596_v16, 5  ;;  %v8899_v41 = vrot.slane %v4552_v5, 5  ;;  %v8901_v13 = vrot.slane %v4557_v53, 4  ;;  %v4937_v2 = vld [vmem:[#allocation2 + $0x9c] sm:$0xe] }
 0x196   : > { %v8905_v24 = vsel %vm7789_vm15, %v6160_v35, %v5020_v8  ;;  %v5022_v19 = vrot.slane %v5020_v8, 4  ;;  %v8908_v15 = vrot.slane %v4539_v31, 4  ;;  %v4570_v44 = vshrl.u32 %v8870_v38, 16 }
 0x197   : > { %6617 = vmatmul.mubr.msk.bf16.gmra.mrb[20].mxu1 %vm1301_vm11, %v9689_v54  ;;  %v6161_v16 = vrot.slane %v4931_v52, 9  ;;  %v5027_v62 = vrot.slane %v9692_v29, 5  ;;  %v5030_v55 = vrot.slane %v8622_v47, 5  ;;  %v6162_v6 = vrot.slane %v4932_v45, 9  ;;  %v4934_v29 = vld [vmem:[#allocation2 + $0x78] sm:$0xe] }
 0x198   : > { %6620 = vmatprep.mubr.msk.bf16.mxu1 %vm1301_vm11, %v9690_v18  ;;  %v8915_v28 = vsel %vm7789_vm15, %v5022_v19, %v5023_v7  ;;  %v5034_v17 = vrot.slane %v8647_v20, 5  ;;  %v6163_v61 = vrot.slane %v4933_v27, 9  ;;  %v5041_v5 = vrot.slane %v8685_v10, 5  ;;  %v9694_v18 = vld [vmem:[#allocation26_spill] sm:$0xff]  ;;  %v9695_v10 = vld [vmem:[#allocation27_spill] sm:$0xff] }
 0x199   : > { %6775 = vmatmul.mubr.msk.bf16.gmra.mrb[8].mxu0 %vm1301_vm11, %v8719_v33  ;;  %v4549_v33 = vor.u32 %v4548_v0, %v8880_v25  ;;  %v6176_v12 = vcombine.low %v8905_v24, %v8915_v28  ;;  %v8924_v58 = vsel %vm7789_vm15, %v6161_v16, %v5027_v62  ;;  %v5029_v39 = vrot.slane %v5027_v62, 4  ;;  %v4241_v27 = vld [vmem:[#allocation2 + $0xcc] sm:$0xf]  ;;  %v2662_v24 = vld [vmem:[#allocation2 + $0x90] sm:$0xf] }
 0x19a   : > { %6778 = vmatprep.mubr.msk.bf16.mxu0 %vm1301_vm11, %v6129_v48  ;;  %v5037_v48 = vrot.slane %v8662_v60, 5  ;;  %v5044_v47 = vrot.slane %v8700_v11, 5  ;;  %v9693_v53 = vcombine.low %v8643_v23, %v8659_v57  ;;  %v8934_v54 = vrot.slane %v4560_v37, 5  ;;  %v8959_v37 = vld [vmem:[#allocation2 + $0xc4] sm:$0xf] }
 0x19b   : > { %v8938_v31 = vsel %vm7789_vm15, %v5029_v39, %v5030_v55  ;;  %v8942_v20 = vsel %vm7789_vm15, %v6162_v6, %v5034_v17  ;;  %v5036_v60 = vrot.slane %v5034_v17, 4  ;;  %v9696_v0 = vcombine.low %v9694_v18, %v9695_v10  ;;  %v4935_v6 = vld [vmem:[#allocation2 + $0x84] sm:$0xe]  ;;  %v7182_v39 = vld [vmem:[#allocation2 + $0xc] sm:$0xff]  }
 0x19c   : > { %v8948_v11 = vrot.slane %v4566_v4, 5  ;;  %v6177_v23 = vcombine.low %v8924_v58, %v8938_v31  ;;  %v8954_v57 = vsel %vm7789_vm15, %v6163_v61, %v5041_v5  ;;  %v5043_v35 = vrot.slane %v5041_v5, 4  ;;  %v9697_v61 = vld [vmem:[#allocation17_spill] sm:$0xff]  ;;  %v9698_v5 = vld [vmem:[#allocation18_spill] sm:$0xff]  ;;  %v9700_v10 = vld [vmem:[#allocation31_spill] sm:$0xff] }
 0x19d   : > { %v8956_v8 = vrot.slane %v4570_v44, 4  ;;  %v4576_v52 = vshll.u32 %v8918_v9, 16  ;;  %v4581_v7 = vshrl.u32 %v4238_v22, 16  ;;  %v8963_v4 = vsel %vm7789_vm15, %v5036_v60, %v5037_v48  ;;  %v7247_v31 = vld [vmem:[#allocation2 + $0x94] sm:$0xf] }
 0x19e   : > { %v4545_v45 = vsel %vm7667_vm12, %v8908_v15, %v8880_v25  ;;  %v4584_v19 = vshll.u32 %v4238_v22, 16  ;;  %v6178_v44 = vcombine.low %v8942_v20, %v8963_v4  ;;  %v8975_v16 = vsel %vm7789_vm15, %v5043_v35, %v5044_v47  ;;  %v9705_v25 = vld [vmem:[#allocation30_spill] sm:$0xff] }
 0x19f   : > { %6621 = vmatmul.mubr.msk.bf16.gmra.mrb[24].mxu1 %vm1301_vm11, %v9693_v53  ;;  %v4550_v62 = vrot.slane %v4549_v33, 4  ;;  %v2894_v55 = vshrl.u32 %v2656_v46, 16  ;;  %v4590_v17 = vshll.u32 %v8959_v37, 16  ;;  %v4594_v22 = vshrl.u32 %v8959_v37, 16 }
 0x1a0   : > { %6624 = vmatprep.mubr.msk.bf16.mxu1 %vm1301_vm11, %v9696_v0  ;;  %v2897_v48 = vshll.u32 %v2656_v46, 16  ;;  %v4583_v33 = vrot.slane %v4581_v7, 4  ;;  %v6164_v53 = vrot.slane %v4934_v29, 9  ;;  %v4586_v60 = vrot.slane %v4584_v19, 5 }
 0x1a1   : > { %6779 = vmatmul.mubr.msk.bf16.gmra.mrb[12].mxu0 %vm1301_vm11, %v8865_v21  ;;  %v4563_v21 = vor.u32 %v8934_v54, %v8901_v13  ;;  %v2896_v47 = vrot.slane %v2894_v55, 4  ;;  %v9699_v13 = vld [vmem:[#allocation28_spill] sm:$0xff]  ;;  %v5051_v0 = vrot.slane %v9700_v10, 5  ;;  %v6165_v35 = vrot.slane %v4935_v6, 9  ;;  %v9701_v55 = vld [vmem:[#allocation29_spill] sm:$0xff] }
 0x1a2   : > { %6782 = vmatprep.mubr.msk.bf16.mxu0 %vm1301_vm11, %v8867_v26  ;;  %v2916_v26 = vsel %vm7667_vm12, %v9698_v5, %v9697_v61  ;;  %v5048_v54 = vrot.slane %v9699_v13, 5  ;;  %v2899_v18 = vrot.slane %v2897_v48, 5  ;;  %v4573_v46 = vor.u32 %v8956_v8, %v8948_v11  ;;  %v9005_v61 = vld [vmem:[#allocation2 + $0xd0] sm:$0xf]  ;;  %v9011_v5 = vld [vmem:[#allocation2 + $0xc8] sm:$0x1] }
 0x1a3   : > { %v5055_v19 = vrot.slane %v9701_v55, 5  ;;  %v9003_v48 = vrot.slane %v4590_v17, 5  ;;  %v4596_v6 = vrot.slane %v4594_v22, 4  ;;  %v4555_v8 = vsel %vm7667_vm12, %v4550_v62, %v8899_v41  ;;  %v7183_v62 = vld [vmem:[#allocation2 + $0x18] sm:$0xff]  }
 0x1a4   : > { %v8999_v7 = vsel %vm7789_vm15, %v6164_v53, %v5048_v54  ;;  %v5050_v29 = vrot.slane %v5048_v54, 4  ;;  %v2900_v50 = vor.u32 %v2899_v18, %v2896_v47  ;;  %v4587_v22 = vor.u32 %v4586_v60, %v4583_v33 }
 0x1a5   : > { %v5057_v17 = vrot.slane %v5055_v19, 4  ;;  %v4605_v47 = vshrl.u32 %v4241_v27, 16  ;;  %v4608_v54 = vshll.u32 %v4241_v27, 16  ;;  %v4614_v18 = vshll.u32 %v9005_v61, 16 }
 0x1a6   : > { %v9015_v53 = vsel %vm7789_vm15, %v5050_v29, %v5051_v0  ;;  %v2901_v13 = vrot.slane %v2900_v50, 4  ;;  %v4618_v10 = vshrl.u32 %v9005_v61, 16  ;;  %v4597_v33 = vor.u32 %v4596_v6, %v9003_v48 }
 0x1a7   : > { %6625 = vmatmul.mubr.msk.bf16.gmra.mrb[28].mxu1 %vm1301_vm11, %v5957_v63  ;;  %v5058_v63 = vrot.slane %v9702_v51, 5  ;;  %v6180_v41 = vcombine.low %v8999_v7, %v9015_v53  ;;  %v4600_v60 = vshll.u32 %v9011_v5, 16  ;;  %v4564_v27 = vrot.slane %v4563_v21, 4  ;;  %v4936_v51 = vld [vmem:[#allocation2 + $0x90] sm:$0xe] }
 0x1a8   : > { %6630 = vmatprep.mubr.msk.bf16.mxu1 %vm1301_vm11, %v7182_v39  ;;  %v9019_v39 = vsel %vm7789_vm15, %v6165_v35, %v5055_v19  ;;  %v9703_v35 = vld [vmem:[#allocation16_spill] sm:$0xff]  ;;  %v4574_v55 = vrot.slane %v4573_v46, 4  ;;  %v4578_v19 = vrot.slane %v4576_v52, 5  ;;  %v6134_v6 = vcombine.low %v4521_v34, %v4531_v49  ;;  %v9064_v34 = vld [vmem:[#allocation2 + $0xd4] sm:$0x1] }
 0x1a9   : > { %6783 = vmatmul.mubr.msk.bf16.gmra.mrb[16].mxu0 %vm1301_vm11, %v8876_v1  ;;  %v9031_v0 = vsel %vm7789_vm15, %v5057_v17, %v5058_v63  ;;  %v7184_v1 = vld [vmem:[#allocation2 + $0x24] sm:$0xff]   ;;  %v2906_v29 = vsel %vm7667_vm12, %v2901_v13, %v9703_v35  ;;  %v6135_v52 = vcombine.low %v4545_v45, %v4555_v8  ;;  %v4588_v21 = vrot.slane %v4587_v22, 4  ;;  %v9704_v17 = vld [vmem:[#allocation25_spill] sm:$0xff] }
 0x1aa   : > { %6786 = vmatprep.mubr.msk.bf16.mxu0 %vm1301_vm11, %v8878_v40  ;;  %v6181_v40 = vcombine.low %v9019_v39, %v9031_v0  ;;  %v9042_v50 = vcombine.low %v2906_v29, %v2916_v26  ;;  %v4607_v26 = vrot.slane %v4605_v47, 4  ;;  %v4610_v46 = vrot.slane %v4608_v54, 5  ;;  %v7185_v54 = vld [vmem:[#allocation2 + $0x30] sm:$0xff]   ;;  %v2674_v0 = vld [vmem:[#allocation2 + $0xc0] sm:$0xf] }
 0x1ab   : > { %v9060_v63 = vrot.slane %v4614_v18, 5  ;;  %v4620_v43 = vrot.slane %v4618_v10, 4  ;;  %v4598_v36 = vrot.slane %v4597_v33, 4  ;;  %v4602_v3 = vrot.slane %v4600_v60, 5  ;;  %v7186_v33 = vld [vmem:[#allocation2 + $0x3c] sm:$0xff]  }
 0x1ac   : > { %v6166_v49 = vrot.slane %v4936_v51, 9  ;;  %v5062_v15 = vrot.slane %v9705_v25, 5  ;;  %v4569_v45 = vsel %vm7667_vm12, %v4564_v27, %v8948_v11  ;;  %v4579_v8 = vsel %vm7667_vm12, %v4574_v55, %v4578_v19  ;;  %v7240_v60 = vld [vmem:[#allocation2 + $0x1c] sm:$0xf]  ;;  %v4926_v55 = vld [vmem:[#allocation2 + $0x18] sm:$0xe] }
 0x1ad   : > { %v4593_v22 = vsel %vm7667_vm12, %v4588_v21, %v9003_v48  ;;  %v4611_v11 = vor.u32 %v4610_v46, %v4607_v26  ;;  %v4621_v18 = vor.u32 %v4620_v43, %v9060_v63  ;;  %v4624_v10 = vshll.u32 %v9064_v34, 16 }
 0x1ae   : > { %v9078_v47 = vsel %vm7789_vm15, %v6166_v49, %v5062_v15  ;;  %v5064_v13 = vrot.slane %v5062_v15, 4  ;;  %v4603_v48 = vsel %vm7667_vm12, %v4598_v36, %v4602_v3  ;;  %v4992_v35 = vrot.slane %v7240_v60, 5  ;;  %v7241_v3 = vld [vmem:[#allocation2 + $0x20] sm:$0x1]  ;;  %v4938_v15 = vld [vmem:[#allocation2 + $0xa8] sm:$0xe] }
 0x1af   : > { %6631 = vmatmul.mubr.msk.bf16.vlgmr.msra.gmra.mrb[0].mxu1 %vm1301_vm11, %v7183_v62  ;;  %v5065_v62 = vrot.slane %v8779_v14, 5  ;;  %v9706_v14 = vld [vmem:[#allocation32_spill] sm:$0xff]  ;;  %v5072_v51 = vrot.slane %v8805_v42, 5  ;;  %v6137_v26 = vcombine.low %v4593_v22, %v4603_v48  ;;  %v4612_v46 = vrot.slane %v4611_v11, 4  ;;  %v4939_v11 = vld [vmem:[#allocation2 + $0xb4] sm:$0xe] }
 0x1b0   : > { %6833 = vmatpush3.bf16.msra.mxu1 %v9704_v17  ;;  %6634 = vmatprep.mubr.msk.bf16.mxu1 %vm1301_vm11, %v7184_v1  ;;  %v6167_v1 = vrot.slane %v4937_v2, 9  ;;  %v5069_v27 = vrot.slane %v9706_v14, 5  ;;  %v4622_v43 = vrot.slane %v4621_v18, 4  ;;  %v4626_v2 = vrot.slane %v4624_v10, 5  ;;  %v7188_v18 = vld [vmem:[#allocation2 + $0x54] sm:$0xff]   ;;  %v9707_v48 = vld [vmem:[#allocation19_spill] sm:$0xff] }
 0x1b1   : > { %6787 = vmatmul.mubr.msk.bf16.gmra.mrb[20].mxu0 %vm1301_vm11, %v6134_v6  ;;  %v9088_v29 = vsel %vm7789_vm15, %v5064_v13, %v5065_v62  ;;  %v6136_v6 = vcombine.low %v4569_v45, %v4579_v8  ;;  %v6156_v17 = vrot.slane %v4926_v55, 9  ;;  %v4994_v36 = vrot.slane %v4992_v35, 4  ;;  %v4927_v45 = vld [vmem:[#allocation2 + $0x24] sm:$0xe]  ;;  %v7242_v8 = vld [vmem:[#allocation2 + $0x28] sm:$0xf] }
 0x1b2   : > { %6790 = vmatprep.mubr.msk.bf16.mxu0 %vm1301_vm11, %v6135_v52  ;;  %v6182_v19 = vcombine.low %v9078_v47, %v9088_v29  ;;  %v9096_v52 = vsel %vm7789_vm15, %v6167_v1, %v5069_v27  ;;  %v5071_v21 = vrot.slane %v5069_v27, 4  ;;  %v4995_v49 = vrot.slane %v7241_v3, 5  ;;  %v7187_v13 = vld [vmem:[#allocation2 + $0x48] sm:$0xff]   ;;  %v7254_v47 = vld [vmem:[#allocation2 + $0xb0] sm:$0x1] }
 0x1b3   : > { %v4999_v22 = vrot.slane %v7242_v8, 5  ;;  %v4617_v62 = vsel %vm7667_vm12, %v4612_v46, %v9060_v63  ;;  %v4993_v10 = vsel %vm7789_vm15, %v6156_v17, %v4992_v35  ;;  %v5006_v60 = vrot.slane %v9707_v48, 5  ;;  %v7243_v55 = vld [vmem:[#allocation2 + $0x2c] sm:$0x1] }
 0x1b4   : > { %v9102_v42 = vsel %vm7789_vm15, %v5071_v21, %v5072_v51  ;;  %v4996_v1 = vsel %vm7789_vm15, %v4994_v36, %v4995_v49  ;;  %v6168_v14 = vrot.slane %v4938_v15, 9  ;;  %v6157_v27 = vrot.slane %v4927_v45, 9  ;;  %v9708_v3 = vld [vmem:[#allocation20_spill] sm:$0xff] }
 0x1b5   : > { %v6183_v25 = vcombine.low %v9096_v52, %v9102_v42  ;;  %v5002_v51 = vrot.slane %v7243_v55, 5  ;;  %v5076_v63 = vrot.slane %v8815_v30, 5  ;;  %v5001_v21 = vrot.slane %v4999_v22, 4 }
 0x1b6   : > { %v6169_v46 = vrot.slane %v4939_v11, 9  ;;  %v6172_v35 = vcombine.low %v4993_v10, %v4996_v1  ;;  %v5008_v36 = vrot.slane %v5006_v60, 4  ;;  %v5009_v49 = vrot.slane %v9708_v3, 5  ;;  %v9709_v11 = vld [vmem:[#allocation21_spill] sm:$0xff]  ;;  %v7190_v10 = vld [vmem:[#allocation2 + $0x6c] sm:$0xff]  }
 0x1b7   : > { %6635 = vmatmul.mubr.msk.bf16.gmra.mrb[4].mxu1 %vm1301_vm11, %v7185_v54  ;;  %v4627_v54 = vsel %vm7667_vm12, %v4622_v43, %v4626_v2  ;;  %v9123_v2 = vsel %vm7789_vm15, %v6168_v14, %v5076_v63  ;;  %v5078_v17 = vrot.slane %v5076_v63, 4  ;;  %v5083_v30 = vrot.slane %v8870_v38, 5  ;;  %v4940_v14 = vld [vmem:[#allocation2 + $0xc0] sm:$0xe]  ;;  %v7191_v3 = vld [vmem:[#allocation2 + $0x78] sm:$0xff]  }
 0x1b8   : > { %6638 = vmatprep.mubr.msk.bf16.mxu1 %vm1301_vm11, %v7186_v33  ;;  %v4928_v33 = vld [vmem:[#allocation2 + $0x30] sm:$0xe]  ;;  %v5086_v15 = vrot.slane %v8918_v9, 5  ;;  %v5000_v38 = vsel %vm7789_vm15, %v6157_v27, %v4999_v22  ;;  %v5003_v9 = vsel %vm7789_vm15, %v5001_v21, %v5002_v51  ;;  %v3009_v29 = vshll.u32 %v7254_v47, 16 }
 0x1b9   : > { %6791 = vmatmul.mubr.msk.bf16.gmra.mrb[24].mxu0 %vm1301_vm11, %v6136_v6  ;;  %v6138_v6 = vcombine.low %v4617_v62, %v4627_v54  ;;  %v6158_v43 = vrot.slane %v4928_v33, 9  ;;  %v9138_v8 = vsel %vm7789_vm15, %v6169_v46, %v5083_v30  ;;  %v7189_v62 = vld [vmem:[#allocation2 + $0x60] sm:$0xff]   ;;  %v4929_v54 = vld [vmem:[#allocation2 + $0x3c] sm:$0xe]  ;;  %v5010_v33 = vsel %vm7789_vm15, %v5008_v36, %v5009_v49 }
 0x1ba   : > { %6794 = vmatprep.mubr.msk.bf16.mxu0 %vm1301_vm11, %v6137_v26  ;;  %v5079_v26 = vrot.slane %v8839_v32, 5  ;;  %v6173_v27 = vcombine.low %v5000_v38, %v5003_v9  ;;  %v6159_v55 = vrot.slane %v4929_v54, 9  ;;  %v5090_v46 = vrot.slane %v8959_v37, 5 }
 0x1bb   : > { %v5007_v1 = vsel %vm7789_vm15, %v6158_v43, %v5006_v60  ;;  %v4941_v60 = vld [vmem:[#allocation2 + $0xcc] sm:$0xe] }
 0x1bc   : > { %v9131_v32 = vsel %vm7789_vm15, %v5078_v17, %v5079_v26  ;;  %v6174_v51 = vcombine.low %v5007_v1, %v5010_v33  ;;  %v6170_v26 = vrot.slane %v4940_v14, 9  ;;  %v2653_v43 = vld [vmem:[#allocation2 + $0x6c] sm:$0xf]  ;;  %v5093_v17 = vrot.slane %v9011_v5, 5 }
 0x1bd   : > { %v6184_v45 = vcombine.low %v9123_v2, %v9131_v32  ;;  %v6171_v36 = vrot.slane %v4941_v60, 9  ;;  %v5092_v37 = vrot.slane %v5090_v46, 4  ;;  %v2870_v38 = vshrl.u32 %v2653_v43, 16  ;;  %v2659_v60 = vld [vmem:[#allocation2 + $0x84] sm:$0xf] }
 0x1be   : > { %v2873_v9 = vshll.u32 %v2653_v43, 16  ;;  %v2918_v43 = vshrl.u32 %v2659_v60, 16  ;;  %v7257_v32 = vld [vmem:[#allocation2 + $0xc8] sm:$0x1] }
 0x1bf   : > { %6639 = vmatmul.mubr.msk.bf16.gmra.mrb[8].mxu1 %vm1301_vm11, %v7187_v13  ;;  %v5085_v13 = vrot.slane %v5083_v30, 4  ;;  %v9169_v30 = vsel %vm7789_vm15, %v6170_v26, %v5090_v46  ;;  %v9175_v5 = vsel %vm7789_vm15, %v5092_v37, %v5093_v17  ;;  %v2872_v14 = vrot.slane %v2870_v38, 4  ;;  %v7245_v46 = vld [vmem:[#allocation2 + $0x74] sm:$0x1]  ;;  %v2665_v38 = vld [vmem:[#allocation2 + $0x9c] sm:$0xf] }
 0x1c0   : > { %6642 = vmatprep.mubr.msk.bf16.mxu1 %vm1301_vm11, %v7188_v18  ;;  %v5013_v18 = vrot.slane %v9709_v11, 5  ;;  %v6186_v11 = vcombine.low %v9169_v30, %v9175_v5  ;;  %v2921_v17 = vshll.u32 %v2659_v60, 16  ;;  %v2966_v20 = vshrl.u32 %v2665_v38, 16 }
 0x1c1   : > { %6795 = vmatmul.mubr.msk.bf16.gmra.mrb[28].mxu0 %vm1301_vm11, %v6138_v6  ;;  %v9152_v48 = vsel %vm7789_vm15, %v5085_v13, %v5086_v15  ;;  %v9710_v6 = vld [vmem:[#allocation22_spill] sm:$0xff]  ;;  %v5097_v15 = vrot.slane %v9005_v61, 5  ;;  %v7192_v13 = vld [vmem:[#allocation2 + $0x84] sm:$0xff]   ;;  %v7244_v61 = vld [vmem:[#allocation2 + $0x70] sm:$0xf]  ;;  %v2969_v4 = vshll.u32 %v2665_v38, 16 }
 0x1c2   : > { %6800 = vmatprep.mubr.msk.bf16.mxu0 %vm1301_vm11, %v6172_v35  ;;  %v6185_v22 = vcombine.low %v9138_v8, %v9152_v48  ;;  %v5015_v63 = vrot.slane %v5013_v18, 4  ;;  %v5016_v21 = vrot.slane %v9710_v6, 5  ;;  %v5014_v35 = vsel %vm7789_vm15, %v6159_v55, %v5013_v18 }
 0x1c3   : > { %v9181_v18 = vsel %vm7789_vm15, %v6171_v36, %v5097_v15  ;;  %v2879_v1 = vshll.u32 %v7244_v61, 16  ;;  %v7246_v36 = vld [vmem:[#allocation2 + $0x88] sm:$0xf] }
 0x1c4   : > { %v5017_v49 = vsel %vm7789_vm15, %v5015_v63, %v5016_v21  ;;  %v7194_v21 = vld [vmem:[#allocation2 + $0x9c] sm:$0xff]  }
 0x1c5   : > { %v6175_v54 = vcombine.low %v5014_v35, %v5017_v49  ;;  %v2881_v63 = vrot.slane %v2879_v1, 5  ;;  %v2889_v35 = vshll.u32 %v7245_v46, 16  ;;  %v2931_v49 = vshrl.u32 %v7246_v36, 16 }
 0x1c6   : > { %v2945_v1 = vshll.u32 %v2662_v24, 16  ;;  %v9711_v46 = vcombine.low %v8954_v57, %v8975_v16 }
 0x1c7   : > { %6643 = vmatmul.mubr.msk.bf16.gmra.mrb[12].mxu1 %vm1301_vm11, %v7189_v62  ;;  %v5100_v62 = vrot.slane %v9064_v34, 5  ;;  %v2883_v34 = vshrl.u32 %v7244_v61, 16  ;;  %v2933_v61 = vrot.slane %v2931_v49, 4 }
 0x1c8   : > { %6646 = vmatprep.mubr.msk.bf16.mxu1 %vm1301_vm11, %v7190_v10  ;;  %v5099_v10 = vrot.slane %v5097_v15, 4  ;;  %v2891_v15 = vrot.slane %v2889_v35, 5 }
 0x1c9   : > { %6801 = vmatmul.mubr.msk.bf16.vlgmr.msra.gmra.mrb[0].mxu0 %vm1301_vm11, %v6173_v27  ;;  %v2875_v27 = vrot.slane %v2873_v9, 5  ;;  %v2885_v6 = vrot.slane %v2883_v34, 4  ;;  %v7196_v9 = vld [vmem:[#allocation2 + $0xb4] sm:$0xff]   ;;  %v2955_v34 = vshrl.u32 %v7247_v31, 16 }
 0x1ca   : > { %6804 = vmatprep.mubr.msk.bf16.mxu0 %vm1301_vm11, %v6174_v51  ;;  %v9187_v33 = vsel %vm7789_vm15, %v5099_v10, %v5100_v62  ;;  %v7193_v51 = vld [vmem:[#allocation2 + $0x90] sm:$0xff]   ;;  %v2942_v62 = vshrl.u32 %v2662_v24, 16 }
 0x1cb   : > { %v6187_v55 = vcombine.low %v9181_v18, %v9187_v33  ;;  %v2876_v59 = vor.u32 %v2875_v27, %v2872_v14  ;;  %v2886_v26 = vor.u32 %v2885_v6, %v2881_v63  ;;  %v7248_v14 = vld [vmem:[#allocation2 + $0x8c] sm:$0x1] }
 0x1cc   : > { %v2937_v27 = vshll.u32 %v7248_v14, 16 }
 0x1cd   : > { %v2877_v28 = vrot.slane %v2876_v59, 4  ;;  %v2887_v37 = vrot.slane %v2886_v26, 4  ;;  %v2944_v59 = vrot.slane %v2942_v62, 4  ;;  %v2947_v26 = vrot.slane %v2945_v1, 5 }
 0x1ce   : > { %v2939_v24 = vrot.slane %v2937_v27, 5 }
 0x1cf   : > { %6647 = vmatmul.mubr.msk.bf16.gmra.mrb[16].mxu1 %vm1301_vm11, %v7191_v3  ;;  %v2927_v3 = vshll.u32 %v7246_v36, 16  ;;  %v2882_v58 = vsel %vm7667_vm12, %v2877_v28, %v2881_v63  ;;  %v2971_v36 = vrot.slane %v2969_v4, 5 }
 0x1d0   : > { %6650 = vmatprep.mubr.msk.bf16.mxu1 %vm1301_vm11, %v7192_v13  ;;  %v2920_v13 = vrot.slane %v2918_v43, 4  ;;  %v2957_v43 = vrot.slane %v2955_v34, 4 }
 0x1d1   : > { %6805 = vmatmul.mubr.msk.bf16.gmra.mrb[4].mxu0 %vm1301_vm11, %v6175_v54  ;;  %v2923_v54 = vrot.slane %v2921_v17, 5  ;;  %v9206_v10 = vrot.slane %v2927_v3, 5  ;;  %v2968_v17 = vrot.slane %v2966_v20, 4  ;;  %v7197_v3 = vld [vmem:[#allocation2 + $0xc0] sm:$0xff]  }
 0x1d2   : > { %6808 = vmatprep.mubr.msk.bf16.mxu0 %vm1301_vm11, %v6176_v12  ;;  %v7195_v12 = vld [vmem:[#allocation2 + $0xa8] sm:$0xff]  }
 0x1d3   : > { %v2924_v60 = vor.u32 %v2923_v54, %v2920_v13  ;;  %v2934_v63 = vor.u32 %v2933_v61, %v9206_v10  ;;  %v7250_v13 = vld [vmem:[#allocation2 + $0x98] sm:$0x1]  ;;  %v7251_v54 = vld [vmem:[#allocation2 + $0xa4] sm:$0x1] }
 0x1d4   : > { %v2961_v62 = vshll.u32 %v7250_v13, 16  ;;  %v2985_v61 = vshll.u32 %v7251_v54, 16  ;;  %v7255_v13 = vld [vmem:[#allocation2 + $0xc4] sm:$0xf] }
 0x1d5   : > { %v2925_v57 = vrot.slane %v2924_v60, 4  ;;  %v2935_v16 = vrot.slane %v2934_v63, 4 }
 0x1d7   : > { %6651 = vmatmul.mubr.msk.bf16.gmra.mrb[20].mxu1 %vm1301_vm11, %v7193_v51  ;;  %v7249_v51 = vld [vmem:[#allocation2 + $0xa0] sm:$0xf]  ;;  %v2930_v34 = vsel %vm7667_vm12, %v2925_v57, %v9206_v10  ;;  %v2940_v20 = vsel %vm7667_vm12, %v2935_v16, %v2939_v24 }
 0x1d8   : > { %6654 = vmatprep.mubr.msk.bf16.mxu1 %vm1301_vm11, %v7194_v21  ;;  %v2975_v6 = vshll.u32 %v7249_v51, 16  ;;  %v2979_v21 = vshrl.u32 %v7249_v51, 16  ;;  %v7253_v51 = vld [vmem:[#allocation2 + $0xb8] sm:$0xf] }
 0x1d9   : > { %6809 = vmatmul.mubr.msk.bf16.gmra.mrb[8].mxu0 %vm1301_vm11, %v6177_v23  ;;  %v2951_v23 = vshll.u32 %v7247_v31, 16 }
 0x1da   : > { %6812 = vmatprep.mubr.msk.bf16.mxu0 %vm1301_vm11, %v6178_v44  ;;  %v2892_v44 = vsel %vm7667_vm12, %v2887_v37, %v2891_v15  ;;  %v9225_v28 = vrot.slane %v2975_v6, 5  ;;  %v2668_v37 = vld [vmem:[#allocation2 + $0xa8] sm:$0xf]  ;;  %v2948_v15 = vor.u32 %v2947_v26, %v2944_v59  ;;  %v3023_v6 = vshll.u32 %v7253_v51, 16 }
 0x1db   : > { %v9219_v35 = vrot.slane %v2951_v23, 5  ;;  %v6016_v49 = vcombine.low %v2882_v58, %v2892_v44  ;;  %v2990_v1 = vshrl.u32 %v2668_v37, 16  ;;  %v2671_v58 = vld [vmem:[#allocation2 + $0xb4] sm:$0xf]  ;;  %v2993_v53 = vshll.u32 %v2668_v37, 16 }
 0x1dc   : > { %v2949_v4 = vrot.slane %v2948_v15, 4  ;;  %v2963_v44 = vrot.slane %v2961_v62, 5  ;;  %v3014_v14 = vshrl.u32 %v2671_v58, 16  ;;  %v3017_v27 = vshll.u32 %v2671_v58, 16 }
 0x1dd   : > { %v2958_v38 = vor.u32 %v2957_v43, %v9219_v35  ;;  %v2987_v59 = vrot.slane %v2985_v61, 5  ;;  %v2992_v26 = vrot.slane %v2990_v1, 4  ;;  %v3025_v24 = vrot.slane %v3023_v6, 5  ;;  %v7256_v61 = vld [vmem:[#allocation2 + $0xbc] sm:$0x1] }
 0x1de   : > { %v3041_v15 = vshll.u32 %v2674_v0, 16  ;;  %v3047_v62 = vshll.u32 %v7255_v13, 16 }
 0x1df   : > { %6655 = vmatmul.mubr.msk.bf16.gmra.mrb[24].mxu1 %vm1301_vm11, %v7195_v12  ;;  %v2981_v12 = vrot.slane %v2979_v21, 4  ;;  %v3027_v21 = vshrl.u32 %v7253_v51, 16  ;;  %v2959_v60 = vrot.slane %v2958_v38, 4  ;;  %v3051_v38 = vshrl.u32 %v7255_v13, 16 }
 0x1e0   : > { %6658 = vmatprep.mubr.msk.bf16.mxu1 %vm1301_vm11, %v7196_v9  ;;  %v2972_v9 = vor.u32 %v2971_v36, %v2968_v17  ;;  %v6018_v36 = vcombine.low %v2930_v34, %v2940_v20 }
 0x1e1   : > { %6813 = vmatmul.mubr.msk.bf16.gmra.mrb[12].mxu0 %vm1301_vm11, %v9711_v46  ;;  %v2982_v7 = vor.u32 %v2981_v12, %v9225_v28  ;;  %v2995_v46 = vrot.slane %v2993_v53, 5  ;;  %v3029_v39 = vrot.slane %v3027_v21, 4  ;;  %v2964_v12 = vsel %vm7667_vm12, %v2959_v60, %v2963_v44 }
 0x1e2   : > { %6816 = vmatprep.mubr.msk.bf16.mxu0 %vm1301_vm11, %v6180_v41  ;;  %v7252_v41 = vld [vmem:[#allocation2 + $0xac] sm:$0xf]  ;;  %v2973_v63 = vrot.slane %v2972_v9, 4  ;;  %v3011_v53 = vrot.slane %v3009_v29, 5  ;;  %v3053_v34 = vrot.slane %v3051_v38, 4 }
 0x1e3   : > { %v2999_v31 = vshll.u32 %v7252_v41, 16  ;;  %v3003_v23 = vshrl.u32 %v7252_v41, 16  ;;  %v2983_v10 = vrot.slane %v2982_v7, 4  ;;  %v2996_v57 = vor.u32 %v2995_v46, %v2992_v26 }
 0x1e4   : > { %v3030_v54 = vor.u32 %v3029_v39, %v3025_v24 }
 0x1e5   : > { %v3001_v43 = vrot.slane %v2999_v31, 5  ;;  %v3005_v17 = vrot.slane %v3003_v23, 4  ;;  %v2988_v37 = vsel %vm7667_vm12, %v2983_v10, %v2987_v59  ;;  %v2997_v58 = vrot.slane %v2996_v57, 4 }
 0x1e6   : > { %v3043_v31 = vrot.slane %v3041_v15, 5  ;;  %v3049_v23 = vrot.slane %v3047_v62, 5 }
 0x1e7   : > { %6659 = vmatmul.mubr.msk.bf16.gmra.mrb[28].mxu1 %vm1301_vm11, %v7197_v3  ;;  %v3016_v3 = vrot.slane %v3014_v14, 4  ;;  %v3006_v16 = vor.u32 %v3005_v17, %v3001_v43  ;;  %v3002_v52 = vsel %vm7667_vm12, %v2997_v58, %v3001_v43 }
 0x1e8   : > { %6680 = vmatprep.mubr.msk.bf16.mxu1 %vm1301_vm11, %v6016_v49  ;;  %v3019_v49 = vrot.slane %v3017_v27, 5  ;;  %v3054_v2 = vor.u32 %v3053_v34, %v3049_v23 }
 0x1e9   : > { %6817 = vmatmul.mubr.msk.bf16.gmra.mrb[16].mxu0 %vm1301_vm11, %v6181_v40  ;;  %v2954_v40 = vsel %vm7667_vm12, %v2949_v4, %v9219_v35  ;;  %v3038_v35 = vshrl.u32 %v2674_v0, 16  ;;  %v3007_v7 = vrot.slane %v3006_v16, 4  ;;  %v3031_v4 = vrot.slane %v3030_v54, 4 }
 0x1ea   : > { %6820 = vmatprep.mubr.msk.bf16.mxu0 %vm1301_vm11, %v6182_v19  ;;  %v2978_v19 = vsel %vm7667_vm12, %v2973_v63, %v9225_v28  ;;  %v3020_v9 = vor.u32 %v3019_v49, %v3016_v3  ;;  %v6019_v1 = vcombine.low %v2954_v40, %v2964_v12  ;;  %v3055_v60 = vrot.slane %v3054_v2, 4 }
 0x1eb   : > { %v6020_v28 = vcombine.low %v2978_v19, %v2988_v37  ;;  %v3040_v41 = vrot.slane %v3038_v35, 4  ;;  %v3012_v42 = vsel %vm7667_vm12, %v3007_v7, %v3011_v53 }
 0x1ec   : > { %v3021_v20 = vrot.slane %v3020_v9, 4  ;;  %v6021_v51 = vcombine.low %v3002_v52, %v3012_v42 }
 0x1ee   : > { %v3026_v14 = vsel %vm7667_vm12, %v3021_v20, %v3025_v24 }
 0x1ef   : > { %6681 = vmatmul.mubr.msk.bf16.vlgmr.msra.gmra.mrb[16].mxu1 %vm1301_vm11, %v9042_v50  ;;  %v3033_v50 = vshll.u32 %v7256_v61, 16 }
 0x1f0   : > { %6684 = vmatprep.mubr.msk.bf16.mxu1 %vm1301_vm11, %v6018_v36 }
 0x1f1   : > { %6821 = vmatmul.mubr.msk.bf16.gmra.mrb[20].mxu0 %vm1301_vm11, %v6183_v25  ;;  %v3035_v44 = vrot.slane %v3033_v50, 5  ;;  %v3044_v25 = vor.u32 %v3043_v31, %v3040_v41 }
 0x1f2   : > { %6824 = vmatprep.mubr.msk.bf16.mxu0 %vm1301_vm11, %v6184_v45  ;;  %v3057_v45 = vshll.u32 %v7257_v32, 16 }
 0x1f3   : > { %v3036_v27 = vsel %vm7667_vm12, %v3031_v4, %v3035_v44  ;;  %v3045_v21 = vrot.slane %v3044_v25, 4 }
 0x1f4   : > { %v6022_v6 = vcombine.low %v3026_v14, %v3036_v27  ;;  %v3059_v63 = vrot.slane %v3057_v45, 5 }
 0x1f5   : > { %v3050_v59 = vsel %vm7667_vm12, %v3045_v21, %v3049_v23 }
 0x1f6   : > { %v3060_v8 = vsel %vm7667_vm12, %v3055_v60, %v3059_v63 }
 0x1f7   : > { %6685 = vmatmul.mubr.msk.bf16.gmra.mrb[20].mxu1 %vm1301_vm11, %v6019_v1  ;;  %v6023_v48 = vcombine.low %v3050_v59, %v3060_v8 }
 0x1f8   : > { %6688 = vmatprep.mubr.msk.bf16.mxu1 %vm1301_vm11, %v6020_v28 }
 0x1f9   : > { %6825 = vmatmul.mubr.msk.bf16.gmra.mrb[24].mxu0 %vm1301_vm11, %v6185_v22 }
 0x1fa   : > { %6828 = vmatprep.mubr.msk.bf16.mxu0 %vm1301_vm11, %v6186_v11 }
 0x1ff   : > { %6689 = vmatmul.mubr.msk.bf16.gmra.mrb[24].mxu1 %vm1301_vm11, %v6021_v51 }
 0x200   : > { %6692 = vmatprep.mubr.msk.bf16.mxu1 %vm1301_vm11, %v6022_v6 }
 0x201   : > { %6829 = vmatmul.mubr.msk.bf16.gmra.mrb[28].mxu0 %vm1301_vm11, %v6187_v55 }
 0x207   : > { %6693 = vmatmul.mubr.msk.bf16.gmra.mrb[28].mxu1 %vm1301_vm11, %v6023_v48 }
 0x282   : > { %v6632_v22 = vpop.f32.mrb[0].mxu1 }
 0x283   : > { %v2470_v30 = vpop.f32.mrb[1].mxu1 }
 0x284   : > { %v6633_v5 = vpop.f32.mrb[2].mxu1 }
 0x285   : > { %v2473_v11 = vpop.f32.mrb[3].mxu1 }
 0x28a   : > { %v6636_v26 = vpop.f32.mrb[4].mxu1 }
 0x28b   : > { %v2486_v10 = vpop.f32.mrb[5].mxu1 }
 0x28c   : > { %v6637_v46 = vpop.f32.mrb[6].mxu1 }
 0x28d   : > { %v2489_v43 = vpop.f32.mrb[7].mxu1 }
 0x292   : > { %v6640_v17 = vpop.f32.mrb[8].mxu1 }
 0x293   : > { %v2502_v36 = vpop.f32.mrb[9].mxu1 }
 0x294   : > { %v6641_v56 = vpop.f32.mrb[10].mxu1 }
 0x295   : > { %v2505_v3 = vpop.f32.mrb[11].mxu1 }
 0x29a   : > { %v6644_v49 = vpop.f32.mrb[12].mxu1 }
 0x29b   : > { %v2518_v18 = vpop.f32.mrb[13].mxu1 }
 0x29c   : > { %v6645_v33 = vpop.f32.mrb[14].mxu1  ;;  %v6802_v24 = vpop.f32.mrb[0].mxu0 }
 0x29d   : > { %v2521_v55 = vpop.f32.mrb[15].mxu1  ;;  %v9294_v39 = vadd.f32 %v6802_v24, %v6632_v22  ;;  %v5241_v0 = vpop.f32.mrb[1].mxu0 }
 0x29e   : > { %v9296_v40 = vadd.f32 %v5241_v0, %v2470_v30  ;;  %v6803_v12 = vpop.f32.mrb[2].mxu0 }
 0x29f   : > { %v9298_v47 = vadd.f32 %v6803_v12, %v6633_v5  ;;  %v5244_v29 = vpop.f32.mrb[3].mxu0 }
 0x2a0   : > { %v9300_v19 = vadd.f32 %v5244_v29, %v2473_v11 }
 0x2a1   : > { %v6286_v37 = vpack.c.bf16 %v9298_v47, %v9294_v39 }
 0x2a2   : > { %v6281_v57 = vpack.c.bf16 %v9300_v19, %v9296_v40  ;;  %v5560_v16 = vadd.f32 %v9300_v19, %v9296_v40 }
 0x2a3   : > { %6358 = vst [vmem:[%s9310_s18 + $0x8] sm:$0xff] %v6286_v37  }
 0x2a4   : > { %6282 = vst [vmem:[%s9310_s18] sm:$0xff] %v6281_v57   ;;  %v5561_v35 = vadd.f32 %v9294_v39, %v5560_v16  ;;  %v6806_v15 = vpop.f32.mrb[4].mxu0 }
 0x2a5   : > { %v9315_v13 = vadd.f32 %v6806_v15, %v6636_v26  ;;  %v5257_v62 = vpop.f32.mrb[5].mxu0 }
 0x2a6   : > { %v9317_v38 = vadd.f32 %v5257_v62, %v2486_v10  ;;  %v5562_v9 = vadd.f32 %v9298_v47, %v5561_v35  ;;  %v6807_v54 = vpop.f32.mrb[6].mxu0 }
 0x2a7   : > { %v9320_v61 = vadd.f32 %v6807_v54, %v6637_v46  ;;  %v5260_v50 = vpop.f32.mrb[7].mxu0 }
 0x2a8   : > { %v5563_v1 = vadd.f32 %v9317_v38, %v5562_v9  ;;  %v9323_v28 = vadd.f32 %v5260_v50, %v2489_v43 }
 0x2a9   : > { %v6296_v58 = vpack.c.bf16 %v9320_v61, %v9315_v13 }
 0x2aa   : > { %v6291_v7 = vpack.c.bf16 %v9323_v28, %v9317_v38  ;;  %v5564_v53 = vadd.f32 %v9323_v28, %v5563_v1 }
 0x2ab   : > { %6360 = vst [vmem:[%s9310_s18 + $0x18] sm:$0xff] %v6296_v58  }
 0x2ac   : > { %6359 = vst [vmem:[%s9310_s18 + $0x10] sm:$0xff] %v6291_v7   ;;  %v5565_v41 = vadd.f32 %v9315_v13, %v5564_v53  ;;  %v6810_v31 = vpop.f32.mrb[8].mxu0 }
 0x2ad   : > { %v9333_v23 = vadd.f32 %v6810_v31, %v6640_v17  ;;  %v5273_v34 = vpop.f32.mrb[9].mxu0 }
 0x2ae   : > { %v9335_v20 = vadd.f32 %v5273_v34, %v2502_v36  ;;  %v5566_v4 = vadd.f32 %v9320_v61, %v5565_v41  ;;  %v6811_v44 = vpop.f32.mrb[10].mxu0 }
 0x2af   : > { %v9338_v52 = vadd.f32 %v6811_v44, %v6641_v56  ;;  %v5276_v42 = vpop.f32.mrb[11].mxu0 }
 0x2b0   : > { %v5567_v25 = vadd.f32 %v9335_v20, %v5566_v4  ;;  %v9341_v2 = vadd.f32 %v5276_v42, %v2505_v3 }
 0x2b1   : > { %v6306_v32 = vpack.c.bf16 %v9338_v52, %v9333_v23 }
 0x2b2   : > { %v6301_v45 = vpack.c.bf16 %v9341_v2, %v9335_v20  ;;  %v5568_v14 = vadd.f32 %v9341_v2, %v5567_v25 }
 0x2b3   : > { %6362 = vst [vmem:[%s9310_s18 + $0x28] sm:$0xff] %v6306_v32  }
 0x2b4   : > { %6361 = vst [vmem:[%s9310_s18 + $0x20] sm:$0xff] %v6301_v45   ;;  %v5569_v27 = vadd.f32 %v9333_v23, %v5568_v14  ;;  %v6814_v51 = vpop.f32.mrb[12].mxu0 }
 0x2b5   : > { %v9351_v6 = vadd.f32 %v6814_v51, %v6644_v49  ;;  %v5289_v21 = vpop.f32.mrb[13].mxu0 }
 0x2b6   : > { %v9353_v60 = vadd.f32 %v5289_v21, %v2518_v18  ;;  %v5570_v63 = vadd.f32 %v9338_v52, %v5569_v27  ;;  %v6815_v59 = vpop.f32.mrb[14].mxu0 }
 0x2b7   : > { %v9356_v8 = vadd.f32 %v6815_v59, %v6645_v33  ;;  %v5292_v48 = vpop.f32.mrb[15].mxu0 }
 0x2b8   : > { %v5571_v22 = vadd.f32 %v9353_v60, %v5570_v63  ;;  %v9359_v30 = vadd.f32 %v5292_v48, %v2521_v55 }
 0x2b9   : > { %v6316_v5 = vpack.c.bf16 %v9356_v8, %v9351_v6 }
 0x2ba   : > { %v6311_v11 = vpack.c.bf16 %v9359_v30, %v9353_v60  ;;  %v5572_v26 = vadd.f32 %v9359_v30, %v5571_v22 }
 0x2bb   : > { %6364 = vst [vmem:[%s9310_s18 + $0x38] sm:$0xff] %v6316_v5  }
 0x2bc   : > { %6363 = vst [vmem:[%s9310_s18 + $0x30] sm:$0xff] %v6311_v11   ;;  %v5573_v10 = vadd.f32 %v9351_v6, %v5572_v26  ;;  %v6818_v46 = vpop.f32.mrb[16].mxu0 }
 0x2bd   : > { %v5305_v43 = vpop.f32.mrb[17].mxu0 }
 0x2be   : > { %v5574_v17 = vadd.f32 %v9356_v8, %v5573_v10  ;;  %v6819_v36 = vpop.f32.mrb[18].mxu0 }
 0x2bf   : > { %v5308_v56 = vpop.f32.mrb[19].mxu0 }
 0x2c2   : > { %v6682_v3 = vpop.f32.mrb[16].mxu1 }
 0x2c3   : > { %v3264_v49 = vpop.f32.mrb[17].mxu1  ;;  %v9370_v18 = vadd.f32 %v6818_v46, %v6682_v3 }
 0x2c4   : > { %v6683_v33 = vpop.f32.mrb[18].mxu1  ;;  %v9372_v55 = vadd.f32 %v5305_v43, %v3264_v49  ;;  %v6822_v12 = vpop.f32.mrb[20].mxu0 }
 0x2c5   : > { %v3267_v24 = vpop.f32.mrb[19].mxu1  ;;  %v9374_v0 = vadd.f32 %v6819_v36, %v6683_v33  ;;  %v5321_v57 = vpop.f32.mrb[21].mxu0 }
 0x2c6   : > { %v5575_v29 = vadd.f32 %v9372_v55, %v5574_v17  ;;  %v9377_v37 = vadd.f32 %v5308_v56, %v3267_v24  ;;  %v6823_v35 = vpop.f32.mrb[22].mxu0 }
 0x2c7   : > { %v6326_v16 = vpack.c.bf16 %v9374_v0, %v9370_v18  ;;  %v5324_v9 = vpop.f32.mrb[23].mxu0 }
 0x2c8   : > { %v6321_v15 = vpack.c.bf16 %v9377_v37, %v9372_v55  ;;  %v5576_v62 = vadd.f32 %v9377_v37, %v5575_v29 }
 0x2c9   : > { %6366 = vst [vmem:[%s9310_s18 + $0x48] sm:$0xff] %v6326_v16  }
 0x2ca   : > { %6365 = vst [vmem:[%s9310_s18 + $0x40] sm:$0xff] %v6321_v15   ;;  %v5577_v54 = vadd.f32 %v9370_v18, %v5576_v62  ;;  %v6686_v50 = vpop.f32.mrb[20].mxu1 }
 0x2cb   : > { %v3280_v1 = vpop.f32.mrb[21].mxu1  ;;  %v9387_v58 = vadd.f32 %v6822_v12, %v6686_v50 }
 0x2cc   : > { %v6687_v7 = vpop.f32.mrb[22].mxu1  ;;  %v9389_v53 = vadd.f32 %v5321_v57, %v3280_v1  ;;  %v5578_v41 = vadd.f32 %v9374_v0, %v5577_v54  ;;  %v6826_v4 = vpop.f32.mrb[24].mxu0 }
 0x2cd   : > { %v3283_v31 = vpop.f32.mrb[23].mxu1  ;;  %v9392_v34 = vadd.f32 %v6823_v35, %v6687_v7  ;;  %v5337_v25 = vpop.f32.mrb[25].mxu0 }
 0x2ce   : > { %v5579_v44 = vadd.f32 %v9389_v53, %v5578_v41  ;;  %v9395_v42 = vadd.f32 %v5324_v9, %v3283_v31  ;;  %v6827_v45 = vpop.f32.mrb[26].mxu0 }
 0x2cf   : > { %v6336_v32 = vpack.c.bf16 %v9392_v34, %v9387_v58  ;;  %v5340_v51 = vpop.f32.mrb[27].mxu0 }
 0x2d0   : > { %v6331_v14 = vpack.c.bf16 %v9395_v42, %v9389_v53  ;;  %v5580_v27 = vadd.f32 %v9395_v42, %v5579_v44 }
 0x2d1   : > { %6368 = vst [vmem:[%s9310_s18 + $0x58] sm:$0xff] %v6336_v32  }
 0x2d2   : > { %6367 = vst [vmem:[%s9310_s18 + $0x50] sm:$0xff] %v6331_v14   ;;  %v5581_v21 = vadd.f32 %v9387_v58, %v5580_v27  ;;  %v6690_v63 = vpop.f32.mrb[24].mxu1 }
 0x2d3   : > { %v3296_v59 = vpop.f32.mrb[25].mxu1  ;;  %v9405_v48 = vadd.f32 %v6826_v4, %v6690_v63 }
 0x2d4   : > { %v6691_v22 = vpop.f32.mrb[26].mxu1  ;;  %v9407_v5 = vadd.f32 %v5337_v25, %v3296_v59  ;;  %v5582_v11 = vadd.f32 %v9392_v34, %v5581_v21  ;;  %v6830_v46 = vpop.f32.mrb[28].mxu0 }
 0x2d5   : > { %v3299_v26 = vpop.f32.mrb[27].mxu1  ;;  %v9410_v10 = vadd.f32 %v6827_v45, %v6691_v22  ;;  %v5353_v36 = vpop.f32.mrb[29].mxu0 }
 0x2d6   : > { %v5583_v43 = vadd.f32 %v9407_v5, %v5582_v11  ;;  %v9413_v17 = vadd.f32 %v5340_v51, %v3299_v26  ;;  %v6831_v3 = vpop.f32.mrb[30].mxu0 }
 0x2d7   : > { %v6346_v56 = vpack.c.bf16 %v9410_v10, %v9405_v48  ;;  %v5356_v24 = vpop.f32.mrb[31].mxu0 }
 0x2d8   : > { %v6341_v49 = vpack.c.bf16 %v9413_v17, %v9407_v5  ;;  %v5584_v33 = vadd.f32 %v9413_v17, %v5583_v43 }
 0x2d9   : > { %6370 = vst [vmem:[%s9310_s18 + $0x68] sm:$0xff] %v6346_v56  }
 0x2da   : > { %6369 = vst [vmem:[%s9310_s18 + $0x60] sm:$0xff] %v6341_v49   ;;  %v5585_v12 = vadd.f32 %v9405_v48, %v5584_v33  ;;  %v6694_v29 = vpop.f32.mrb[28].mxu1 }
 0x2db   : > { %v3312_v57 = vpop.f32.mrb[29].mxu1  ;;  %v9423_v16 = vadd.f32 %v6830_v46, %v6694_v29 }
 0x2dc   : > { %v6695_v35 = vpop.f32.mrb[30].mxu1  ;;  %v9425_v15 = vadd.f32 %v5353_v36, %v3312_v57  ;;  %v5586_v62 = vadd.f32 %v9410_v10, %v5585_v12 }
 0x2dd   : > { %v3315_v9 = vpop.f32.mrb[31].mxu1  ;;  %v9430_v54 = vadd.f32 %v6831_v3, %v6695_v35 }
 0x2de   : > { %v5587_v50 = vadd.f32 %v9425_v15, %v5586_v62  ;;  %v9433_v1 = vadd.f32 %v5356_v24, %v3315_v9 }
 0x2df   : > { %v6356_v7 = vpack.c.bf16 %v9430_v54, %v9423_v16 }
 0x2e0   : > { %v6351_v41 = vpack.c.bf16 %v9433_v1, %v9425_v15  ;;  %v5588_v31 = vadd.f32 %v9433_v1, %v5587_v50 }
 0x2e1   : > { %6372 = vst [vmem:[%s9310_s18 + $0x78] sm:$0xff] %v6356_v7  }
 0x2e2   : > { %6371 = vst [vmem:[%s9310_s18 + $0x70] sm:$0xff] %v6351_v41   ;;  %v5589_v4 = vadd.f32 %v9423_v16, %v5588_v31 }
 0x2e3   : > { %7329 = shalt.err (!%p7326_p7)
}
 0x2e4   : > { %s7330_s29 = scalar_lea.hbm %s9440_s25, 2048  ;;  %s7334_s7 = scalar_lea.hbm %s9607_s2, 4096 }
 0x2e5   : > { %p7331_p9 = scmp.ne.s32.totalorder %s9440_s25, %s7330_s29  ;;  %p7335_p5 = scmp.lt.u32.totalorder %s9440_s25, %s9607_s2 }
 0x2e6   : > { %p7336_p11 = scmp.lt.u32.totalorder %s7334_s7, %s7330_s29  ;;  %p7338_p4 = scmp.lt.u32.totalorder %s7330_s29, %s9440_s25 }
 0x2e7   : > { %p7332_p1 = pnand %p7331_p9, %p7543_p12 }
 0x2e8   : > { %p7337_p2 = por %p7336_p11, %p7335_p5 }
 0x2e9   : > { %p7333_p0 = pneg %p7332_p1 }
 0x2ea   : > { %p7339_p6 = por %p7338_p4, %p7337_p2 }
 0x2ec   : > { %p7340_p8 = pnand %p7339_p6, %p7333_p0 }
 0x2ee   : > { %7343 = shalt.err (!%p7340_p8)
}
 0x2ef   : > { %s7426_s18 = smov 64   ;;  %s7427_s20 = smov 4   ;;  %v5590_v44 = vadd.f32 %v9430_v54, %v5589_v4 }
 0x2f0   : > { %7096 = dma.vmem_to_hbm [thread:$0]  (%p7543_p12), %s9442_s8, 2048, %s9440_s25, %s5702_s5, %s7426_s18, %s7426_s18, %s7427_s20  }
 0x2f1   : > { %v5591_v25 = vrot.slane %v5590_v44, 4  ;;  %s5859_s9 = sshll.u32 %s7594_s6, 1  ;;  %s6241_s8 = sshll.u32 %s7470_s16, 5 }
 0x2f2   : > { %s9476_s4 = scalar_lea.vmem [#allocation9], %s5859_s9  ;;  %s9560_s27 = scalar_lea.hbm %s9608_s3, %s6241_s8 }
 0x2f3   : > { %v5592_v32 = vadd.f32 %v5591_v25, %v5590_v44  ;;  %s5736_s25 = sshll.u32 %s9476_s4, 4  ;;  %s5707_s28 = scalar_lea.sflag [#allocation10], %s7594_s6  ;;  %s9562_s25 = int_to_ptr.vmem [resolvable:$true] %s5736_s25 }
 0x2f4   : > { %s7344_s23 = scalar_lea.vmem %s9562_s25, 32  ;;  %s7428_s16 = smov [#allocation9]  }
 0x2f5   : > { %v5593_v45 = vrot.slane %v5592_v32, 2  ;;  %p7345_p10 = scmp.ne.s32.totalorder %s9562_s25, %s7344_s23  ;;  %s7348_s29 = sshll.u32 %s7428_s16, 4  ;;  %s7349_s29 = int_to_ptr.vmem [resolvable:$false] %s7348_s29 }
 0x2f6   : > { %s7350_s30 = scalar_lea.vmem %s7349_s29, 64  ;;  %p7351_p7 = scmp.lt.s32.totalorder %s9562_s25, %s7349_s29 }
 0x2f7   : > { %v5594_v14 = vadd.f32 %v5593_v45, %v5592_v32  ;;  %p7346_p13 = pnand %p7345_p10, %p7543_p12  ;;  %p7352_p9 = scmp.lt.s32.totalorder %s7350_s30, %s7344_s23 }
 0x2f9   : > { %v5595_v27 = vrot.slane %v5594_v14, 1  ;;  %p7347_p3 = pneg %p7346_p13  ;;  %p7353_p1 = por %p7352_p9, %p7351_p7 }
 0x2fb   : > { %v5596_v51 = vadd.f32 %v5595_v27, %v5594_v14  ;;  %p7354_p0 = pnand %p7353_p1, %p7347_p3 }
 0x2fd   : > { %5699 = vst [vmem:[%s9476_s4] sm:$0x1] %v5596_v51  ;;  %v5597_v21 = vmul.f32 0.00390625, %v5596_v51 }
 0x2ff   : > { %v5610_v63 = vsub.f32 %v9353_v60, %v5597_v21  ;;  %v5611_v59 = vsub.f32 %v9359_v30, %v5597_v21  ;;  %v5612_v22 = vsub.f32 %v9351_v6, %v5597_v21  ;;  %v5613_v11 = vsub.f32 %v9356_v8, %v5597_v21 }
 0x300   : > { %v5614_v26 = vsub.f32 %v9372_v55, %v5597_v21  ;;  %v5615_v46 = vsub.f32 %v9377_v37, %v5597_v21  ;;  %v5616_v43 = vsub.f32 %v9370_v18, %v5597_v21  ;;  %v5617_v36 = vsub.f32 %v9374_v0, %v5597_v21 }
 0x301   : > { %v5618_v56 = vsub.f32 %v9389_v53, %v5597_v21  ;;  %v9489_v3 = vsub.f32 %v9395_v42, %v5597_v21  ;;  %v9492_v60 = vsub.f32 %v9387_v58, %v5597_v21  ;;  %v9495_v6 = vsub.f32 %v9392_v34, %v5597_v21 }
 0x302   : > { %v9498_v8 = vsub.f32 %v9407_v5, %v5597_v21  ;;  %v9501_v30 = vsub.f32 %v9413_v17, %v5597_v21  ;;  %v9504_v18 = vsub.f32 %v9405_v48, %v5597_v21  ;;  %v9507_v55 = vsub.f32 %v9410_v10, %v5597_v21 }
 0x303   : > { %v9510_v0 = vsub.f32 %v9425_v15, %v5597_v21  ;;  %v9513_v37 = vsub.f32 %v9433_v1, %v5597_v21  ;;  %v9516_v58 = vsub.f32 %v9423_v16, %v5597_v21  ;;  %v9519_v53 = vsub.f32 %v9430_v54, %v5597_v21 }
 0x304   : > { %v5598_v34 = vsub.f32 %v9296_v40, %v5597_v21  ;;  %v5599_v42 = vsub.f32 %v9300_v19, %v5597_v21  ;;  %v5600_v48 = vsub.f32 %v9294_v39, %v5597_v21  ;;  %v5601_v17 = vsub.f32 %v9298_v47, %v5597_v21 }
 0x305   : > { %v5602_v49 = vsub.f32 %v9317_v38, %v5597_v21  ;;  %v5603_v12 = vsub.f32 %v9323_v28, %v5597_v21  ;;  %v5604_v16 = vsub.f32 %v9315_v13, %v5597_v21  ;;  %v5605_v19 = vsub.f32 %v9320_v61, %v5597_v21 }
 0x306   : > { %v5630_v5 = vmul.f32 %v5598_v34, %v5598_v34  ;;  %v5631_v10 = vmul.f32 %v5599_v42, %v5599_v42  ;;  %v5632_v33 = vmul.f32 %v5600_v48, %v5600_v48  ;;  %v5633_v29 = vmul.f32 %v5601_v17, %v5601_v17 }
 0x307   : > { %v5634_v35 = vmul.f32 %v5602_v49, %v5602_v49  ;;  %v5635_v15 = vmul.f32 %v5603_v12, %v5603_v12  ;;  %v5606_v62 = vsub.f32 %v9335_v20, %v5597_v21  ;;  %v5636_v9 = vmul.f32 %v5604_v16, %v5604_v16 }
 0x308   : > { %v5662_v24 = vadd.f32 %v5631_v10, %v5630_v5  ;;  %v5607_v38 = vsub.f32 %v9341_v2, %v5597_v21  ;;  %v5637_v54 = vmul.f32 %v5605_v19, %v5605_v19  ;;  %v5608_v28 = vsub.f32 %v9333_v23, %v5597_v21 }
 0x309   : > { %v5638_v1 = vmul.f32 %v5606_v62, %v5606_v62  ;;  %v5609_v13 = vsub.f32 %v9338_v52, %v5597_v21  ;;  %v5642_v32 = vmul.f32 %v5610_v63, %v5610_v63  ;;  %v5643_v45 = vmul.f32 %v5611_v59, %v5611_v59 }
 0x30a   : > { %v5663_v57 = vadd.f32 %v5662_v24, %v5632_v33  ;;  %v5639_v41 = vmul.f32 %v5607_v38, %v5607_v38  ;;  %v5640_v4 = vmul.f32 %v5608_v28, %v5608_v28  ;;  %v5644_v27 = vmul.f32 %v5612_v22, %v5612_v22 }
 0x30b   : > { %v5641_v44 = vmul.f32 %v5609_v13, %v5609_v13  ;;  %v5645_v51 = vmul.f32 %v5613_v11, %v5613_v11  ;;  %v5646_v42 = vmul.f32 %v5614_v26, %v5614_v26  ;;  %v5647_v48 = vmul.f32 %v5615_v46, %v5615_v46 }
 0x30c   : > { %v5664_v40 = vadd.f32 %v5663_v57, %v5633_v29  ;;  %v5648_v10 = vmul.f32 %v5616_v43, %v5616_v43  ;;  %v5649_v21 = vmul.f32 %v5617_v36, %v5617_v36  ;;  %v5650_v49 = vmul.f32 %v5618_v56, %v5618_v56 }
 0x30d   : > { %v5651_v63 = vmul.f32 %v9489_v3, %v9489_v3  ;;  %v5652_v59 = vmul.f32 %v9492_v60, %v9492_v60  ;;  %v5653_v11 = vmul.f32 %v9495_v6, %v9495_v6  ;;  %v5654_v46 = vmul.f32 %v9498_v8, %v9498_v8 }
 0x30e   : > { %v5665_v39 = vadd.f32 %v5664_v40, %v5634_v35  ;;  %v5655_v36 = vmul.f32 %v9501_v30, %v9501_v30  ;;  %v5656_v3 = vmul.f32 %v9504_v18, %v9504_v18  ;;  %v5657_v60 = vmul.f32 %v9507_v55, %v9507_v55 }
 0x30f   : > { %v5658_v6 = vmul.f32 %v9510_v0, %v9510_v0  ;;  %v5659_v8 = vmul.f32 %v9513_v37, %v9513_v37  ;;  %v5660_v30 = vmul.f32 %v9516_v58, %v9516_v58  ;;  %v5661_v35 = vmul.f32 %v9519_v53, %v9519_v53 }
 0x310   : > { %v5666_v47 = vadd.f32 %v5665_v39, %v5635_v15 }
 0x312   : > { %v5667_v50 = vadd.f32 %v5666_v47, %v5636_v9 }
 0x314   : > { %v5668_v7 = vadd.f32 %v5667_v50, %v5637_v54 }
 0x316   : > { %v5669_v31 = vadd.f32 %v5668_v7, %v5638_v1 }
 0x318   : > { %v5670_v61 = vadd.f32 %v5669_v31, %v5639_v41 }
 0x31a   : > { %v5671_v25 = vadd.f32 %v5670_v61, %v5640_v4 }
 0x31c   : > { %v5672_v20 = vadd.f32 %v5671_v25, %v5641_v44 }
 0x31e   : > { %v5673_v14 = vadd.f32 %v5672_v20, %v5642_v32 }
 0x320   : > { %v5674_v2 = vadd.f32 %v5673_v14, %v5643_v45 }
 0x322   : > { %v5675_v34 = vadd.f32 %v5674_v2, %v5644_v27 }
 0x324   : > { %v5676_v23 = vadd.f32 %v5675_v34, %v5645_v51 }
 0x326   : > { %v5677_v5 = vadd.f32 %v5676_v23, %v5646_v42 }
 0x328   : > { %v5678_v52 = vadd.f32 %v5677_v5, %v5647_v48 }
 0x32a   : > { %v5679_v17 = vadd.f32 %v5678_v52, %v5648_v10 }
 0x32c   : > { %v5680_v33 = vadd.f32 %v5679_v17, %v5649_v21 }
 0x32e   : > { %v5681_v24 = vadd.f32 %v5680_v33, %v5650_v49 }
 0x330   : > { %v5682_v22 = vadd.f32 %v5681_v24, %v5651_v63 }
 0x332   : > { %v5683_v26 = vadd.f32 %v5682_v22, %v5652_v59 }
 0x334   : > { %v5684_v43 = vadd.f32 %v5683_v26, %v5653_v11 }
 0x336   : > { %v5685_v56 = vadd.f32 %v5684_v43, %v5654_v46 }
 0x338   : > { %v5686_v12 = vadd.f32 %v5685_v56, %v5655_v36 }
 0x33a   : > { %v5687_v29 = vadd.f32 %v5686_v12, %v5656_v3 }
 0x33c   : > { %v5688_v57 = vadd.f32 %v5687_v29, %v5657_v60 }
 0x33e   : > { %v5689_v16 = vadd.f32 %v5688_v57, %v5658_v6 }
 0x340   : > { %v5690_v18 = vadd.f32 %v5689_v16, %v5659_v8 }
 0x342   : > { %v5691_v55 = vadd.f32 %v5690_v18, %v5660_v30 }
 0x344   : > { %v5692_v40 = vadd.f32 %v5691_v55, %v5661_v35 }
 0x346   : > { %v5693_v19 = vrot.slane %v5692_v40, 4 }
 0x348   : > { %v5694_v15 = vadd.f32 %v5693_v19, %v5692_v40 }
 0x34a   : > { %v5695_v0 = vrot.slane %v5694_v15, 2 }
 0x34c   : > { %v5696_v39 = vadd.f32 %v5695_v0, %v5694_v15 }
 0x34e   : > { %v5697_v37 = vrot.slane %v5696_v39, 1 }
 0x350   : > { %v5698_v62 = vadd.f32 %v5697_v37, %v5696_v39 }
 0x352   : > { %5700 = vst [vmem:[%s9476_s4 + $0x1] sm:$0x1] %v5698_v62 }
 0x353   : > { %7357 = shalt.err (!%p7354_p0)
}
 0x354   : > { %s7358_s6 = scalar_lea.hbm %s9560_s27, 32  ;;  %s7362_s10 = scalar_lea.hbm %s9608_s3, 64 }
 0x355   : > { %p7359_p5 = scmp.ne.s32.totalorder %s9560_s27, %s7358_s6  ;;  %p7363_p4 = scmp.lt.u32.totalorder %s9560_s27, %s9608_s3 }
 0x356   : > { %p7364_p6 = scmp.lt.u32.totalorder %s7362_s10, %s7358_s6  ;;  %p7366_p10 = scmp.lt.u32.totalorder %s7358_s6, %s9560_s27 }
 0x357   : > { %p7360_p11 = pnand %p7359_p5, %p7543_p12 }
 0x358   : > { %p7365_p8 = por %p7364_p6, %p7363_p4 }
 0x359   : > { %p7361_p2 = pneg %p7360_p11 }
 0x35a   : > { %p7367_p13 = por %p7366_p10, %p7365_p8 }
 0x35c   : > { %p7368_p3 = pnand %p7367_p13, %p7361_p2 }
 0x35e   : > { %7371 = shalt.err (!%p7368_p3)
}
 0x35f   : > { %7097 = dma.vmem_to_hbm [thread:$0]  (%p7543_p12), %s9562_s25, 32, %s9560_s27, %s5707_s28  }
 0x360 PF: > { %s5748_s20 = sand.u32 1, %s7406_s12   ;;  %p9712_p7 = scmp.ne.s32.totalorder %s9630_s19, 0 }
 0x361   : > { %p9713_p9 = scmp.ge.s32.totalorder %s7418_s15, 2  ;;  %s5749_s9 = scalar_lea.sflag [#allocation5], %s5748_s20 }
 0x363   : > { %p7109_p1 = pnand %p9713_p9, %p9712_p7 }
 0x365   : > { %7397 = dma.done.wait (!%p7109_p1), %s5749_s9, 2048  }
 0x366   : > { %7399 = vsyncadd (!%p7109_p1), %s5749_s9, 4294965248  ;;  %s5758_s4 = scalar_lea.sflag [#allocation10], %s5748_s20 }
 0x367   : > { %7401 = dma.done.wait (!%p7109_p1), %s5758_s4, 32  }
 0x368   : > { %7403 = vsyncadd (!%p7109_p1), %s5758_s4, 4294967264  ;;  %p21_p12 = scmp.ge.s32.totalorder %s7505_s24, 4   ;;  %s9714_s12 = smov %s7410_s13 }
 0x369   : > { %s9715_s13 = smov %s7414_s14  ;;  %s9716_s14 = smov %s7539_s17 }
 0x36a   : > { %s9717_s15 = smov %s7505_s24  ;;  %23 = sbr.rel (!%p21_p12) target bundleno = 8 (0x8), region = 105 }
 0x371   :  { %5763 = vsyncpa [#allocation4], 1 }
 0x372   :  { %5765 = vsyncpa [#allocation4 + $0x1], 1 }
 0x373   :  { %5766 = vsyncpa [#allocation7], 1 }
 0x374   :  { %5767 = vsyncpa [#allocation5], 1 }
 0x375   :  { %5769 = vsyncpa [#allocation5 + $0x1], 1 }
 0x376   :  { %5770 = vsyncpa [#allocation10], 1 }
 0x377   :  { %5772 = vsyncpa [#allocation10 + $0x1], 1 }

</bundles_post_ra>
